<compile_context>
chip_gen: v6e
topology: v6e:2x2x1
jax: 0.10.0
libtpu: 0.0.40
codegen_flags: <defaults>
</compile_context>

<pallas_src>
import functools

import numpy as np
import jax
import jax.numpy as jnp
from jax.experimental import pallas as pl
from jax.experimental.pallas import tpu as pltpu

# ----------------------------- model dims -----------------------------------
C_IN = 3          # RGB input channels (EfficientNet expects 3)
C0 = 16           # stem / block-1 channels (logical)
E = 64            # MBConv expanded channels (logical)
SE_DIM = 4        # squeeze-excite reduced dim (logical)
C2 = 32           # block-2 output channels (logical)
C_HEAD = 64       # head channels (logical)
NUM_CLASSES = 3   # num_classes=3 from MangoNet.__init__
LANE = 128        # physical lane width; all channel dims zero-padded to this


# --------------------- selection matrices for 3x3 convs ----------------------
@functools.lru_cache(maxsize=None)
def _conv3x3_sel_np(H, W, stride):
    """(9, Ho*Wo, H*W) 0/1 matrices: tap t of a 3x3/pad-1 conv as a gather matmul.

    Out-of-bounds taps have an all-zero row (== zero padding); stride is baked in.
    """
    Ho = (H - 1) // stride + 1
    Wo = (W - 1) // stride + 1
    sel = np.zeros((9, Ho * Wo, H * W), np.float32)
    for t in range(9):
        di, dj = t // 3, t % 3
        for oi in range(Ho):
            ii = oi * stride + di - 1
            if not 0 <= ii < H:
                continue
            for oj in range(Wo):
                jj = oj * stride + dj - 1
                if 0 <= jj < W:
                    sel[t, oi * Wo + oj, ii * W + jj] = 1.0
    return sel


# ----------------------------- Pallas kernels --------------------------------
def _stem_kernel(x_ref, sel_ref, w_ref, s_ref, b_ref, o_ref):
    """Fused stem: 3x3 stride-2 conv (9 selection matmuls) + BN + swish."""
    x = x_ref[0]                                                # (H*W, Cp) bf16
    no, cp = o_ref.shape[1], o_ref.shape[2]
    acc = jnp.zeros((no, cp), jnp.float32)
    for t in range(9):
        tap = jnp.dot(sel_ref[t], x, preferred_element_type=jnp.float32)
        acc = acc + jnp.dot(tap.astype(jnp.bfloat16), w_ref[t],
                            preferred_element_type=jnp.float32)
    y = acc * s_ref[...] + b_ref[...]
    y = y * jax.nn.sigmoid(y)                                   # swish (f32)
    o_ref[0] = y.astype(o_ref.dtype)


def _mbconv_kernel(x_ref, sel_ref, exp_w_ref, exp_s_ref, exp_b_ref,
                   dw_w_ref, dw_s_ref, dw_b_ref,
                   se1_w_ref, se1_b_ref, se2_w_ref, se2_b_ref,
                   proj_w_ref, proj_s_ref, proj_b_ref, o_ref, *, use_skip):
    """One fused MBConv block: expand 1x1 -> depthwise 3x3 (stride folded into
    the selection matrices) -> squeeze-excite -> project 1x1 -> residual."""
    x = x_ref[0]                                                # (H*W, Cp) bf16
    # expand 1x1 + BN + swish
    h = jnp.dot(x, exp_w_ref[...], preferred_element_type=jnp.float32)
    h = h * exp_s_ref[...] + exp_b_ref[...]
    h = h * jax.nn.sigmoid(h)
    h16 = h.astype(jnp.bfloat16)                                # (H*W, Ep)
    # depthwise 3x3 + BN + swish (taps are MXU matmuls; stride baked into sel)
    no, ep = o_ref.shape[1], h.shape[1]
    acc = jnp.zeros((no, ep), jnp.float32)
    for t in range(9):
        tap = jnp.dot(sel_ref[t], h16, preferred_element_type=jnp.float32)
        acc = acc + tap * dw_w_ref[t]
    hd = acc * dw_s_ref[...] + dw_b_ref[...]
    hd = hd * jax.nn.sigmoid(hd)                                # (No, Ep) f32
    # squeeze-excite: GAP -> fc -> swish -> fc -> sigmoid gate (all in-kernel)
    pooled = jnp.mean(hd, axis=0, keepdims=True).astype(jnp.bfloat16)
    s1 = jnp.dot(pooled, se1_w_ref[...],
                 preferred_element_type=jnp.float32) + se1_b_ref[...]
    s1 = s1 * jax.nn.sigmoid(s1)
    gate = jnp.dot(s1.astype(jnp.bfloat16), se2_w_ref[...],
                   preferred_element_type=jnp.float32) + se2_b_ref[...]
    gate = jax.nn.sigmoid(gate)                                 # (1, Ep)
    hg = (hd * gate).astype(jnp.bfloat16)
    # project 1x1 + BN, SE gate & residual fused into the matmul epilogue
    out = jnp.dot(hg, proj_w_ref[...], preferred_element_type=jnp.float32)
    out = out * proj_s_ref[...] + proj_b_ref[...]
    if use_skip:
        out = out + x.astype(jnp.float32)
    o_ref[0] = out.astype(o_ref.dtype)


def _head_kernel(x_ref, w_ref, s_ref, b_ref, fc_w_ref, fc_b_ref, o_ref):
    """Fused head: 1x1 conv + BN + swish -> global avg pool -> classifier."""
    x = x_ref[0]                                                # (HW, Cp) bf16
    h = jnp.dot(x, w_ref[...], preferred_element_type=jnp.float32)
    h = h * s_ref[...] + b_ref[...]
    h = h * jax.nn.sigmoid(h)
    pooled = jnp.mean(h, axis=0, keepdims=True).astype(jnp.bfloat16)
    logits = jnp.dot(pooled, fc_w_ref[...],
                     preferred_element_type=jnp.float32) + fc_b_ref[...]
    # broadcast to a sublane-aligned (8, 128) slab so the store is unmasked
    o_ref[0] = jnp.broadcast_to(logits, o_ref.shape[1:]).astype(o_ref.dtype)


# ----------------------------- pallas_call wrappers ---------------------------
def _rep_spec(shape):
    """Full-array block replicated across the batch grid."""
    nd = len(shape)
    return pl.BlockSpec(shape, lambda i: (0,) * nd)


def stem_conv(x, sel, w, scale, shift):
    n, hw, cp = x.shape
    no = sel.shape[1]
    return pl.pallas_call(
        _stem_kernel,
        out_shape=jax.ShapeDtypeStruct((n, no, LANE), jnp.bfloat16),
        grid=(n,),
        in_specs=[pl.BlockSpec((1, hw, cp), lambda i: (i, 0, 0)),
                  _rep_spec(sel.shape), _rep_spec(w.shape),
                  _rep_spec(scale.shape), _rep_spec(shift.shape)],
        out_specs=pl.BlockSpec((1, no, LANE), lambda i: (i, 0, 0)),
        compiler_params=pltpu.CompilerParams(dimension_semantics=("parallel",)),
    )(x, sel, w, scale, shift)


def mbconv_block(x, sel, p, blk, use_skip):
    n, hw, cp = x.shape
    no = sel.shape[1]
    weights = (p[f"{blk}_exp_w"], p[f"{blk}_exp_s"], p[f"{blk}_exp_b"],
               p[f"{blk}_dw_w"], p[f"{blk}_dw_s"], p[f"{blk}_dw_b"],
               p[f"{blk}_se1_w"], p[f"{blk}_se1_b"],
               p[f"{blk}_se2_w"], p[f"{blk}_se2_b"],
               p[f"{blk}_proj_w"], p[f"{blk}_proj_s"], p[f"{blk}_proj_b"])
    return pl.pallas_call(
        functools.partial(_mbconv_kernel, use_skip=use_skip),
        out_shape=jax.ShapeDtypeStruct((n, no, LANE), jnp.bfloat16),
        grid=(n,),
        in_specs=[pl.BlockSpec((1, hw, cp), lambda i: (i, 0, 0)),
                  _rep_spec(sel.shape)] + [_rep_spec(w.shape) for w in weights],
        out_specs=pl.BlockSpec((1, no, LANE), lambda i: (i, 0, 0)),
        compiler_params=pltpu.CompilerParams(dimension_semantics=("parallel",)),
    )(x, sel, *weights)


def head_pool_fc(x, w, scale, shift, fc_w, fc_b):
    n, hw, cp = x.shape
    return pl.pallas_call(
        _head_kernel,
        out_shape=jax.ShapeDtypeStruct((n, 8, LANE), jnp.float32),
        grid=(n,),
        in_specs=[pl.BlockSpec((1, hw, cp), lambda i: (i, 0, 0)),
                  _rep_spec(w.shape), _rep_spec(scale.shape), _rep_spec(shift.shape),
                  _rep_spec(fc_w.shape), _rep_spec(fc_b.shape)],
        out_specs=pl.BlockSpec((1, 8, LANE), lambda i: (i, 0, 0)),
        compiler_params=pltpu.CompilerParams(dimension_semantics=("parallel",)),
    )(x, w, scale, shift, fc_w, fc_b)


# ----------------------------- parameters ------------------------------------
def init_params(seed=1):
    key = jax.random.PRNGKey(seed)
    p = {}

    def rand(shape, scale=0.1):
        nonlocal key
        key, sub = jax.random.split(key)
        return jax.random.normal(sub, shape, jnp.float32) * scale

    def pad(a, shape, dtype=jnp.float32):
        return jnp.pad(a, [(0, t - s) for s, t in zip(a.shape, shape)]).astype(dtype)

    def bn(c):  # folded inference BatchNorm; padded channels get scale=shift=0 -> stay 0
        return (pad(1.0 + rand((1, c), 0.05), (1, LANE)),
                pad(rand((1, c), 0.05), (1, LANE)))

    p["stem_w"] = pad(rand((9, C_IN, C0), 0.2), (9, LANE, LANE), jnp.bfloat16)
    p["stem_s"], p["stem_b"] = bn(C0)
    for blk, cin, cout in (("b1", C0, C0), ("b2", C0, C2)):
        p[f"{blk}_exp_w"] = pad(rand((cin, E), 0.2), (LANE, LANE), jnp.bfloat16)
        p[f"{blk}_exp_s"], p[f"{blk}_exp_b"] = bn(E)
        p[f"{blk}_dw_w"] = pad(rand((9, 1, E), 0.2), (9, 1, LANE))
        p[f"{blk}_dw_s"], p[f"{blk}_dw_b"] = bn(E)
        p[f"{blk}_se1_w"] = pad(rand((E, SE_DIM), 0.2), (LANE, LANE), jnp.bfloat16)
        p[f"{blk}_se1_b"] = pad(rand((1, SE_DIM), 0.05), (1, LANE))
        p[f"{blk}_se2_w"] = pad(rand((SE_DIM, E), 0.2), (LANE, LANE), jnp.bfloat16)
        p[f"{blk}_se2_b"] = pad(rand((1, E), 0.05), (1, LANE))
        p[f"{blk}_proj_w"] = pad(rand((E, cout), 0.2), (LANE, LANE), jnp.bfloat16)
        p[f"{blk}_proj_s"], p[f"{blk}_proj_b"] = bn(cout)
    p["head_w"] = pad(rand((C2, C_HEAD), 0.2), (LANE, LANE), jnp.bfloat16)
    p["head_s"], p["head_b"] = bn(C_HEAD)
    p["fc_w"] = pad(rand((C_HEAD, NUM_CLASSES), 0.2), (LANE, LANE), jnp.bfloat16)
    p["fc_b"] = pad(rand((1, NUM_CLASSES), 0.05), (1, LANE))
    return p


# ----------------------------- forward pass -----------------------------------
def mango_net_forward(x_nchw, p):
    # layout: PyTorch NCHW -> NHWC, channels zero-padded to 128 lanes, spatial flattened.
    x = jnp.transpose(x_nchw, (0, 2, 3, 1)).astype(jnp.float32)
    n, h, w, c = x.shape
    x = jnp.pad(x, ((0, 0), (0, 0), (0, 0), (0, LANE - c)))
    x = x.reshape(n, h * w, LANE).astype(jnp.bfloat16)

    # stem: 3x3 stride-2 conv + BN + swish (fully fused, one pallas_call)
    sel_stem = jnp.asarray(_conv3x3_sel_np(h, w, 2), jnp.bfloat16)
    y = stem_conv(x, sel_stem, p["stem_w"], p["stem_s"], p["stem_b"])
    h1, w1 = (h - 1) // 2 + 1, (w - 1) // 2 + 1

    # MBConv stack (representative of the B7 backbone) — one pallas_call per block
    sel1 = jnp.asarray(_conv3x3_sel_np(h1, w1, 1), jnp.bfloat16)
    y = mbconv_block(y, sel1, p, "b1", use_skip=True)
    sel2 = jnp.asarray(_conv3x3_sel_np(h1, w1, 2), jnp.bfloat16)   # stride-2 folded in
    y = mbconv_block(y, sel2, p, "b2", use_skip=False)

    # head 1x1 conv + BN + swish + global-avg-pool + classifier (dropout = identity in eval)
    logits = head_pool_fc(y, p["head_w"], p["head_s"], p["head_b"],
                          p["fc_w"], p["fc_b"])
    return logits[:, 0, :NUM_CLASSES]


# ----------------------------- main -------------------------------------------
if __name__ == "__main__":
    x = jax.random.normal(jax.random.PRNGKey(0), (2, C_IN, 16, 16), jnp.float32)
    params = init_params(seed=1)
    fwd = jax.jit(mango_net_forward)
    out = jax.block_until_ready(fwd(x, params))
    assert out.shape == (2, NUM_CLASSES), out.shape
    assert bool(jnp.all(jnp.isfinite(out)))
    print("KERNEL_OK")
</pallas_src>

<mosaic_0001>
module attributes {stable_mosaic.version = 11 : i64} {
  func.func @_stem_kernel(%arg0: i32, %arg1: memref<1x256x128xbf16, #tpu.memory_space<vmem>>, %arg2: memref<9x64x256xbf16, #tpu.memory_space<vmem>>, %arg3: memref<9x128x128xbf16, #tpu.memory_space<vmem>>, %arg4: memref<1x128xf32, #tpu.memory_space<vmem>>, %arg5: memref<1x128xf32, #tpu.memory_space<vmem>>, %arg6: memref<1x64x128xbf16, #tpu.memory_space<vmem>>) attributes {dimension_semantics = [#tpu.dimension_semantics<parallel>], iteration_bounds = array<i64: 2>, scalar_prefetch = 0 : i64, scratch_operands = 0 : i64, tpu.core_type = #tpu.core_type<tc>, window_params = [{transform_indices = @transform_0, window_bounds = array<i64: 1, 256, 128>}, {pipeline_mode = #tpu.pipeline_mode<synchronous>, transform_indices = @transform_1, window_bounds = array<i64: 9, 64, 256>}, {pipeline_mode = #tpu.pipeline_mode<synchronous>, transform_indices = @transform_2, window_bounds = array<i64: 9, 128, 128>}, {pipeline_mode = #tpu.pipeline_mode<synchronous>, transform_indices = @transform_3, window_bounds = array<i64: 1, 128>}, {pipeline_mode = #tpu.pipeline_mode<synchronous>, transform_indices = @transform_4, window_bounds = array<i64: 1, 128>}, {transform_indices = @transform_5, window_bounds = array<i64: 1, 64, 128>}]} {
    %c0 = arith.constant 0 : index
    %c0_0 = arith.constant 0 : index
    %c0_1 = arith.constant 0 : index
    %0 = vector.load %arg1[%c0, %c0_0, %c0_1] : memref<1x256x128xbf16, #tpu.memory_space<vmem>>, vector<1x256x128xbf16>
    %1 = vector.shape_cast %0 : vector<1x256x128xbf16> to vector<256x128xbf16>
    %cst = arith.constant 0.000000e+00 : f32
    %2 = vector.broadcast %cst : f32 to vector<64x128xf32>
    %c0_2 = arith.constant 0 : index
    %c0_3 = arith.constant 0 : index
    %c0_4 = arith.constant 0 : index
    %3 = vector.load %arg2[%c0_2, %c0_3, %c0_4] : memref<9x64x256xbf16, #tpu.memory_space<vmem>>, vector<1x64x256xbf16>
    %4 = vector.shape_cast %3 : vector<1x64x256xbf16> to vector<64x256xbf16>
    %cst_5 = arith.constant dense<0.000000e+00> : vector<64x128xf32>
    %5 = tpu.matmul %4, %1, %cst_5 {dimension_numbers = #tpu.dot_dimension_numbers<[1], [0], [0], [1], [0, 0, 1, 1], [], []>} : vector<64x256xbf16>, vector<256x128xbf16>, vector<64x128xf32> -> vector<64x128xf32>
    %6 = arith.truncf %5 : vector<64x128xf32> to vector<64x128xbf16>
    %c0_6 = arith.constant 0 : index
    %c0_7 = arith.constant 0 : index
    %c0_8 = arith.constant 0 : index
    %7 = vector.load %arg3[%c0_6, %c0_7, %c0_8] : memref<9x128x128xbf16, #tpu.memory_space<vmem>>, vector<1x128x128xbf16>
    %8 = vector.shape_cast %7 : vector<1x128x128xbf16> to vector<128x128xbf16>
    %cst_9 = arith.constant dense<0.000000e+00> : vector<64x128xf32>
    %9 = tpu.matmul %6, %8, %cst_9 {dimension_numbers = #tpu.dot_dimension_numbers<[1], [0], [0], [1], [0, 0, 1, 1], [], []>} : vector<64x128xbf16>, vector<128x128xbf16>, vector<64x128xf32> -> vector<64x128xf32>
    %10 = arith.addf %2, %9 : vector<64x128xf32>
    %c1 = arith.constant 1 : index
    %c0_10 = arith.constant 0 : index
    %c0_11 = arith.constant 0 : index
    %11 = vector.load %arg2[%c1, %c0_10, %c0_11] : memref<9x64x256xbf16, #tpu.memory_space<vmem>>, vector<1x64x256xbf16>
    %12 = vector.shape_cast %11 : vector<1x64x256xbf16> to vector<64x256xbf16>
    %cst_12 = arith.constant dense<0.000000e+00> : vector<64x128xf32>
    %13 = tpu.matmul %12, %1, %cst_12 {dimension_numbers = #tpu.dot_dimension_numbers<[1], [0], [0], [1], [0, 0, 1, 1], [], []>} : vector<64x256xbf16>, vector<256x128xbf16>, vector<64x128xf32> -> vector<64x128xf32>
    %14 = arith.truncf %13 : vector<64x128xf32> to vector<64x128xbf16>
    %c1_13 = arith.constant 1 : index
    %c0_14 = arith.constant 0 : index
    %c0_15 = arith.constant 0 : index
    %15 = vector.load %arg3[%c1_13, %c0_14, %c0_15] : memref<9x128x128xbf16, #tpu.memory_space<vmem>>, vector<1x128x128xbf16>
    %16 = vector.shape_cast %15 : vector<1x128x128xbf16> to vector<128x128xbf16>
    %cst_16 = arith.constant dense<0.000000e+00> : vector<64x128xf32>
    %17 = tpu.matmul %14, %16, %cst_16 {dimension_numbers = #tpu.dot_dimension_numbers<[1], [0], [0], [1], [0, 0, 1, 1], [], []>} : vector<64x128xbf16>, vector<128x128xbf16>, vector<64x128xf32> -> vector<64x128xf32>
    %18 = arith.addf %10, %17 : vector<64x128xf32>
    %c2 = arith.constant 2 : index
    %c0_17 = arith.constant 0 : index
    %c0_18 = arith.constant 0 : index
    %19 = vector.load %arg2[%c2, %c0_17, %c0_18] : memref<9x64x256xbf16, #tpu.memory_space<vmem>>, vector<1x64x256xbf16>
    %20 = vector.shape_cast %19 : vector<1x64x256xbf16> to vector<64x256xbf16>
    %cst_19 = arith.constant dense<0.000000e+00> : vector<64x128xf32>
    %21 = tpu.matmul %20, %1, %cst_19 {dimension_numbers = #tpu.dot_dimension_numbers<[1], [0], [0], [1], [0, 0, 1, 1], [], []>} : vector<64x256xbf16>, vector<256x128xbf16>, vector<64x128xf32> -> vector<64x128xf32>
    %22 = arith.truncf %21 : vector<64x128xf32> to vector<64x128xbf16>
    %c2_20 = arith.constant 2 : index
    %c0_21 = arith.constant 0 : index
    %c0_22 = arith.constant 0 : index
    %23 = vector.load %arg3[%c2_20, %c0_21, %c0_22] : memref<9x128x128xbf16, #tpu.memory_space<vmem>>, vector<1x128x128xbf16>
    %24 = vector.shape_cast %23 : vector<1x128x128xbf16> to vector<128x128xbf16>
    %cst_23 = arith.constant dense<0.000000e+00> : vector<64x128xf32>
    %25 = tpu.matmul %22, %24, %cst_23 {dimension_numbers = #tpu.dot_dimension_numbers<[1], [0], [0], [1], [0, 0, 1, 1], [], []>} : vector<64x128xbf16>, vector<128x128xbf16>, vector<64x128xf32> -> vector<64x128xf32>
    %26 = arith.addf %18, %25 : vector<64x128xf32>
    %c3 = arith.constant 3 : index
    %c0_24 = arith.constant 0 : index
    %c0_25 = arith.constant 0 : index
    %27 = vector.load %arg2[%c3, %c0_24, %c0_25] : memref<9x64x256xbf16, #tpu.memory_space<vmem>>, vector<1x64x256xbf16>
    %28 = vector.shape_cast %27 : vector<1x64x256xbf16> to vector<64x256xbf16>
    %cst_26 = arith.constant dense<0.000000e+00> : vector<64x128xf32>
    %29 = tpu.matmul %28, %1, %cst_26 {dimension_numbers = #tpu.dot_dimension_numbers<[1], [0], [0], [1], [0, 0, 1, 1], [], []>} : vector<64x256xbf16>, vector<256x128xbf16>, vector<64x128xf32> -> vector<64x128xf32>
    %30 = arith.truncf %29 : vector<64x128xf32> to vector<64x128xbf16>
    %c3_27 = arith.constant 3 : index
    %c0_28 = arith.constant 0 : index
    %c0_29 = arith.constant 0 : index
    %31 = vector.load %arg3[%c3_27, %c0_28, %c0_29] : memref<9x128x128xbf16, #tpu.memory_space<vmem>>, vector<1x128x128xbf16>
    %32 = vector.shape_cast %31 : vector<1x128x128xbf16> to vector<128x128xbf16>
    %cst_30 = arith.constant dense<0.000000e+00> : vector<64x128xf32>
    %33 = tpu.matmul %30, %32, %cst_30 {dimension_numbers = #tpu.dot_dimension_numbers<[1], [0], [0], [1], [0, 0, 1, 1], [], []>} : vector<64x128xbf16>, vector<128x128xbf16>, vector<64x128xf32> -> vector<64x128xf32>
    %34 = arith.addf %26, %33 : vector<64x128xf32>
    %c4 = arith.constant 4 : index
    %c0_31 = arith.constant 0 : index
    %c0_32 = arith.constant 0 : index
    %35 = vector.load %arg2[%c4, %c0_31, %c0_32] : memref<9x64x256xbf16, #tpu.memory_space<vmem>>, vector<1x64x256xbf16>
    %36 = vector.shape_cast %35 : vector<1x64x256xbf16> to vector<64x256xbf16>
    %cst_33 = arith.constant dense<0.000000e+00> : vector<64x128xf32>
    %37 = tpu.matmul %36, %1, %cst_33 {dimension_numbers = #tpu.dot_dimension_numbers<[1], [0], [0], [1], [0, 0, 1, 1], [], []>} : vector<64x256xbf16>, vector<256x128xbf16>, vector<64x128xf32> -> vector<64x128xf32>
    %38 = arith.truncf %37 : vector<64x128xf32> to vector<64x128xbf16>
    %c4_34 = arith.constant 4 : index
    %c0_35 = arith.constant 0 : index
    %c0_36 = arith.constant 0 : index
    %39 = vector.load %arg3[%c4_34, %c0_35, %c0_36] : memref<9x128x128xbf16, #tpu.memory_space<vmem>>, vector<1x128x128xbf16>
    %40 = vector.shape_cast %39 : vector<1x128x128xbf16> to vector<128x128xbf16>
    %cst_37 = arith.constant dense<0.000000e+00> : vector<64x128xf32>
    %41 = tpu.matmul %38, %40, %cst_37 {dimension_numbers = #tpu.dot_dimension_numbers<[1], [0], [0], [1], [0, 0, 1, 1], [], []>} : vector<64x128xbf16>, vector<128x128xbf16>, vector<64x128xf32> -> vector<64x128xf32>
    %42 = arith.addf %34, %41 : vector<64x128xf32>
    %c5 = arith.constant 5 : index
    %c0_38 = arith.constant 0 : index
    %c0_39 = arith.constant 0 : index
    %43 = vector.load %arg2[%c5, %c0_38, %c0_39] : memref<9x64x256xbf16, #tpu.memory_space<vmem>>, vector<1x64x256xbf16>
    %44 = vector.shape_cast %43 : vector<1x64x256xbf16> to vector<64x256xbf16>
    %cst_40 = arith.constant dense<0.000000e+00> : vector<64x128xf32>
    %45 = tpu.matmul %44, %1, %cst_40 {dimension_numbers = #tpu.dot_dimension_numbers<[1], [0], [0], [1], [0, 0, 1, 1], [], []>} : vector<64x256xbf16>, vector<256x128xbf16>, vector<64x128xf32> -> vector<64x128xf32>
    %46 = arith.truncf %45 : vector<64x128xf32> to vector<64x128xbf16>
    %c5_41 = arith.constant 5 : index
    %c0_42 = arith.constant 0 : index
    %c0_43 = arith.constant 0 : index
    %47 = vector.load %arg3[%c5_41, %c0_42, %c0_43] : memref<9x128x128xbf16, #tpu.memory_space<vmem>>, vector<1x128x128xbf16>
    %48 = vector.shape_cast %47 : vector<1x128x128xbf16> to vector<128x128xbf16>
    %cst_44 = arith.constant dense<0.000000e+00> : vector<64x128xf32>
    %49 = tpu.matmul %46, %48, %cst_44 {dimension_numbers = #tpu.dot_dimension_numbers<[1], [0], [0], [1], [0, 0, 1, 1], [], []>} : vector<64x128xbf16>, vector<128x128xbf16>, vector<64x128xf32> -> vector<64x128xf32>
    %50 = arith.addf %42, %49 : vector<64x128xf32>
    %c6 = arith.constant 6 : index
    %c0_45 = arith.constant 0 : index
    %c0_46 = arith.constant 0 : index
    %51 = vector.load %arg2[%c6, %c0_45, %c0_46] : memref<9x64x256xbf16, #tpu.memory_space<vmem>>, vector<1x64x256xbf16>
    %52 = vector.shape_cast %51 : vector<1x64x256xbf16> to vector<64x256xbf16>
    %cst_47 = arith.constant dense<0.000000e+00> : vector<64x128xf32>
    %53 = tpu.matmul %52, %1, %cst_47 {dimension_numbers = #tpu.dot_dimension_numbers<[1], [0], [0], [1], [0, 0, 1, 1], [], []>} : vector<64x256xbf16>, vector<256x128xbf16>, vector<64x128xf32> -> vector<64x128xf32>
    %54 = arith.truncf %53 : vector<64x128xf32> to vector<64x128xbf16>
    %c6_48 = arith.constant 6 : index
    %c0_49 = arith.constant 0 : index
    %c0_50 = arith.constant 0 : index
    %55 = vector.load %arg3[%c6_48, %c0_49, %c0_50] : memref<9x128x128xbf16, #tpu.memory_space<vmem>>, vector<1x128x128xbf16>
    %56 = vector.shape_cast %55 : vector<1x128x128xbf16> to vector<128x128xbf16>
    %cst_51 = arith.constant dense<0.000000e+00> : vector<64x128xf32>
    %57 = tpu.matmul %54, %56, %cst_51 {dimension_numbers = #tpu.dot_dimension_numbers<[1], [0], [0], [1], [0, 0, 1, 1], [], []>} : vector<64x128xbf16>, vector<128x128xbf16>, vector<64x128xf32> -> vector<64x128xf32>
    %58 = arith.addf %50, %57 : vector<64x128xf32>
    %c7 = arith.constant 7 : index
    %c0_52 = arith.constant 0 : index
    %c0_53 = arith.constant 0 : index
    %59 = vector.load %arg2[%c7, %c0_52, %c0_53] : memref<9x64x256xbf16, #tpu.memory_space<vmem>>, vector<1x64x256xbf16>
    %60 = vector.shape_cast %59 : vector<1x64x256xbf16> to vector<64x256xbf16>
    %cst_54 = arith.constant dense<0.000000e+00> : vector<64x128xf32>
    %61 = tpu.matmul %60, %1, %cst_54 {dimension_numbers = #tpu.dot_dimension_numbers<[1], [0], [0], [1], [0, 0, 1, 1], [], []>} : vector<64x256xbf16>, vector<256x128xbf16>, vector<64x128xf32> -> vector<64x128xf32>
    %62 = arith.truncf %61 : vector<64x128xf32> to vector<64x128xbf16>
    %c7_55 = arith.constant 7 : index
    %c0_56 = arith.constant 0 : index
    %c0_57 = arith.constant 0 : index
    %63 = vector.load %arg3[%c7_55, %c0_56, %c0_57] : memref<9x128x128xbf16, #tpu.memory_space<vmem>>, vector<1x128x128xbf16>
    %64 = vector.shape_cast %63 : vector<1x128x128xbf16> to vector<128x128xbf16>
    %cst_58 = arith.constant dense<0.000000e+00> : vector<64x128xf32>
    %65 = tpu.matmul %62, %64, %cst_58 {dimension_numbers = #tpu.dot_dimension_numbers<[1], [0], [0], [1], [0, 0, 1, 1], [], []>} : vector<64x128xbf16>, vector<128x128xbf16>, vector<64x128xf32> -> vector<64x128xf32>
    %66 = arith.addf %58, %65 : vector<64x128xf32>
    %c8 = arith.constant 8 : index
    %c0_59 = arith.constant 0 : index
    %c0_60 = arith.constant 0 : index
    %67 = vector.load %arg2[%c8, %c0_59, %c0_60] : memref<9x64x256xbf16, #tpu.memory_space<vmem>>, vector<1x64x256xbf16>
    %68 = vector.shape_cast %67 : vector<1x64x256xbf16> to vector<64x256xbf16>
    %cst_61 = arith.constant dense<0.000000e+00> : vector<64x128xf32>
    %69 = tpu.matmul %68, %1, %cst_61 {dimension_numbers = #tpu.dot_dimension_numbers<[1], [0], [0], [1], [0, 0, 1, 1], [], []>} : vector<64x256xbf16>, vector<256x128xbf16>, vector<64x128xf32> -> vector<64x128xf32>
    %70 = arith.truncf %69 : vector<64x128xf32> to vector<64x128xbf16>
    %c8_62 = arith.constant 8 : index
    %c0_63 = arith.constant 0 : index
    %c0_64 = arith.constant 0 : index
    %71 = vector.load %arg3[%c8_62, %c0_63, %c0_64] : memref<9x128x128xbf16, #tpu.memory_space<vmem>>, vector<1x128x128xbf16>
    %72 = vector.shape_cast %71 : vector<1x128x128xbf16> to vector<128x128xbf16>
    %cst_65 = arith.constant dense<0.000000e+00> : vector<64x128xf32>
    %73 = tpu.matmul %70, %72, %cst_65 {dimension_numbers = #tpu.dot_dimension_numbers<[1], [0], [0], [1], [0, 0, 1, 1], [], []>} : vector<64x128xbf16>, vector<128x128xbf16>, vector<64x128xf32> -> vector<64x128xf32>
    %74 = arith.addf %66, %73 : vector<64x128xf32>
    %c0_66 = arith.constant 0 : index
    %c0_67 = arith.constant 0 : index
    %75 = vector.load %arg4[%c0_66, %c0_67] : memref<1x128xf32, #tpu.memory_space<vmem>>, vector<1x128xf32>
    %76 = vector.broadcast %75 : vector<1x128xf32> to vector<64x128xf32>
    %77 = arith.mulf %74, %76 : vector<64x128xf32>
    %c0_68 = arith.constant 0 : index
    %c0_69 = arith.constant 0 : index
    %78 = vector.load %arg5[%c0_68, %c0_69] : memref<1x128xf32, #tpu.memory_space<vmem>>, vector<1x128xf32>
    %79 = vector.broadcast %78 : vector<1x128xf32> to vector<64x128xf32>
    %80 = arith.addf %77, %79 : vector<64x128xf32>
    %81 = arith.negf %80 : vector<64x128xf32>
    %82 = math.exp %81 : vector<64x128xf32>
    %cst_70 = arith.constant 1.000000e+00 : f32
    %83 = vector.broadcast %cst_70 : f32 to vector<64x128xf32>
    %84 = arith.addf %83, %82 : vector<64x128xf32>
    %85 = arith.divf %83, %84 : vector<64x128xf32>
    %86 = arith.mulf %80, %85 : vector<64x128xf32>
    %87 = arith.truncf %86 : vector<64x128xf32> to vector<64x128xbf16>
    %c0_71 = arith.constant 0 : index
    %c0_72 = arith.constant 0 : index
    %c0_73 = arith.constant 0 : index
    %88 = vector.load %arg6[%c0_71, %c0_72, %c0_73] : memref<1x64x128xbf16, #tpu.memory_space<vmem>>, vector<1x64x128xbf16>
    %89 = vector.shape_cast %88 : vector<1x64x128xbf16> to vector<64x128xbf16>
    %90 = vector.shape_cast %87 : vector<64x128xbf16> to vector<1x64x128xbf16>
    tpu.vector_store %arg6[%c0_71, %c0_72, %c0_73], %90 {strides = array<i32>} : memref<1x64x128xbf16, #tpu.memory_space<vmem>>, vector<1x64x128xbf16>,
    return
  }
  func.func @transform_0(%arg0: i32) -> (i32, i32, i32) {
    %c0_i32 = arith.constant 0 : i32
    %c0_i32_0 = arith.constant 0 : i32
    %c0_i32_1 = arith.constant 0 : i32
    return %arg0, %c0_i32, %c0_i32_0 : i32, i32, i32
  }
  func.func @transform_1(%arg0: i32) -> (i32, i32, i32) {
    %c0_i32 = arith.constant 0 : i32
    %c0_i32_0 = arith.constant 0 : i32
    %c0_i32_1 = arith.constant 0 : i32
    %c0_i32_2 = arith.constant 0 : i32
    return %c0_i32, %c0_i32_0, %c0_i32_1 : i32, i32, i32
  }
  func.func @transform_2(%arg0: i32) -> (i32, i32, i32) {
    %c0_i32 = arith.constant 0 : i32
    %c0_i32_0 = arith.constant 0 : i32
    %c0_i32_1 = arith.constant 0 : i32
    %c0_i32_2 = arith.constant 0 : i32
    return %c0_i32, %c0_i32_0, %c0_i32_1 : i32, i32, i32
  }
  func.func @transform_3(%arg0: i32) -> (i32, i32) {
    %c0_i32 = arith.constant 0 : i32
    %c0_i32_0 = arith.constant 0 : i32
    %c0_i32_1 = arith.constant 0 : i32
    return %c0_i32, %c0_i32_0 : i32, i32
  }
  func.func @transform_4(%arg0: i32) -> (i32, i32) {
    %c0_i32 = arith.constant 0 : i32
    %c0_i32_0 = arith.constant 0 : i32
    %c0_i32_1 = arith.constant 0 : i32
    return %c0_i32, %c0_i32_0 : i32, i32
  }
  func.func @transform_5(%arg0: i32) -> (i32, i32, i32) {
    %c0_i32 = arith.constant 0 : i32
    %c0_i32_0 = arith.constant 0 : i32
    %c0_i32_1 = arith.constant 0 : i32
    return %arg0, %c0_i32, %c0_i32_0 : i32, i32, i32
  }
}

module attributes {stable_mosaic.version = 11 : i64} {
  func.func @_mbconv_kernel(%arg0: i32, %arg1: memref<1x64x128xbf16, #tpu.memory_space<vmem>>, %arg2: memref<9x64x64xbf16, #tpu.memory_space<vmem>>, %arg3: memref<128x128xbf16, #tpu.memory_space<vmem>>, %arg4: memref<1x128xf32, #tpu.memory_space<vmem>>, %arg5: memref<1x128xf32, #tpu.memory_space<vmem>>, %arg6: memref<9x1x128xf32, #tpu.memory_space<vmem>>, %arg7: memref<1x128xf32, #tpu.memory_space<vmem>>, %arg8: memref<1x128xf32, #tpu.memory_space<vmem>>, %arg9: memref<128x128xbf16, #tpu.memory_space<vmem>>, %arg10: memref<1x128xf32, #tpu.memory_space<vmem>>, %arg11: memref<128x128xbf16, #tpu.memory_space<vmem>>, %arg12: memref<1x128xf32, #tpu.memory_space<vmem>>, %arg13: memref<128x128xbf16, #tpu.memory_space<vmem>>, %arg14: memref<1x128xf32, #tpu.memory_space<vmem>>, %arg15: memref<1x128xf32, #tpu.memory_space<vmem>>, %arg16: memref<1x64x128xbf16, #tpu.memory_space<vmem>>) attributes {dimension_semantics = [#tpu.dimension_semantics<parallel>], iteration_bounds = array<i64: 2>, scalar_prefetch = 0 : i64, scratch_operands = 0 : i64, tpu.core_type = #tpu.core_type<tc>, window_params = [{transform_indices = @transform_0, window_bounds = array<i64: 1, 64, 128>}, {pipeline_mode = #tpu.pipeline_mode<synchronous>, transform_indices = @transform_1, window_bounds = array<i64: 9, 64, 64>}, {pipeline_mode = #tpu.pipeline_mode<synchronous>, transform_indices = @transform_2, window_bounds = array<i64: 128, 128>}, {pipeline_mode = #tpu.pipeline_mode<synchronous>, transform_indices = @transform_3, window_bounds = array<i64: 1, 128>}, {pipeline_mode = #tpu.pipeline_mode<synchronous>, transform_indices = @transform_4, window_bounds = array<i64: 1, 128>}, {pipeline_mode = #tpu.pipeline_mode<synchronous>, transform_indices = @transform_5, window_bounds = array<i64: 9, 1, 128>}, {pipeline_mode = #tpu.pipeline_mode<synchronous>, transform_indices = @transform_6, window_bounds = array<i64: 1, 128>}, {pipeline_mode = #tpu.pipeline_mode<synchronous>, transform_indices = @transform_7, window_bounds = array<i64: 1, 128>}, {pipeline_mode = #tpu.pipeline_mode<synchronous>, transform_indices = @transform_8, window_bounds = array<i64: 128, 128>}, {pipeline_mode = #tpu.pipeline_mode<synchronous>, transform_indices = @transform_9, window_bounds = array<i64: 1, 128>}, {pipeline_mode = #tpu.pipeline_mode<synchronous>, transform_indices = @transform_10, window_bounds = array<i64: 128, 128>}, {pipeline_mode = #tpu.pipeline_mode<synchronous>, transform_indices = @transform_11, window_bounds = array<i64: 1, 128>}, {pipeline_mode = #tpu.pipeline_mode<synchronous>, transform_indices = @transform_12, window_bounds = array<i64: 128, 128>}, {pipeline_mode = #tpu.pipeline_mode<synchronous>, transform_indices = @transform_13, window_bounds = array<i64: 1, 128>}, {pipeline_mode = #tpu.pipeline_mode<synchronous>, transform_indices = @transform_14, window_bounds = array<i64: 1, 128>}, {transform_indices = @transform_15, window_bounds = array<i64: 1, 64, 128>}]} {
    %c0 = arith.constant 0 : index
    %c0_0 = arith.constant 0 : index
    %c0_1 = arith.constant 0 : index
    %0 = vector.load %arg1[%c0, %c0_0, %c0_1] : memref<1x64x128xbf16, #tpu.memory_space<vmem>>, vector<1x64x128xbf16>
    %1 = vector.shape_cast %0 : vector<1x64x128xbf16> to vector<64x128xbf16>
    %c0_2 = arith.constant 0 : index
    %c0_3 = arith.constant 0 : index
    %2 = vector.load %arg3[%c0_2, %c0_3] : memref<128x128xbf16, #tpu.memory_space<vmem>>, vector<128x128xbf16>
    %cst = arith.constant dense<0.000000e+00> : vector<64x128xf32>
    %3 = tpu.matmul %1, %2, %cst {dimension_numbers = #tpu.dot_dimension_numbers<[1], [0], [0], [1], [0, 0, 1, 1], [], []>} : vector<64x128xbf16>, vector<128x128xbf16>, vector<64x128xf32> -> vector<64x128xf32>
    %c0_4 = arith.constant 0 : index
    %c0_5 = arith.constant 0 : index
    %4 = vector.load %arg4[%c0_4, %c0_5] : memref<1x128xf32, #tpu.memory_space<vmem>>, vector<1x128xf32>
    %5 = vector.broadcast %4 : vector<1x128xf32> to vector<64x128xf32>
    %6 = arith.mulf %3, %5 : vector<64x128xf32>
    %c0_6 = arith.constant 0 : index
    %c0_7 = arith.constant 0 : index
    %7 = vector.load %arg5[%c0_6, %c0_7] : memref<1x128xf32, #tpu.memory_space<vmem>>, vector<1x128xf32>
    %8 = vector.broadcast %7 : vector<1x128xf32> to vector<64x128xf32>
    %9 = arith.addf %6, %8 : vector<64x128xf32>
    %10 = arith.negf %9 : vector<64x128xf32>
    %11 = math.exp %10 : vector<64x128xf32>
    %cst_8 = arith.constant 1.000000e+00 : f32
    %12 = vector.broadcast %cst_8 : f32 to vector<64x128xf32>
    %13 = arith.addf %12, %11 : vector<64x128xf32>
    %14 = arith.divf %12, %13 : vector<64x128xf32>
    %15 = arith.mulf %9, %14 : vector<64x128xf32>
    %16 = arith.truncf %15 : vector<64x128xf32> to vector<64x128xbf16>
    %cst_9 = arith.constant 0.000000e+00 : f32
    %17 = vector.broadcast %cst_9 : f32 to vector<64x128xf32>
    %c0_10 = arith.constant 0 : index
    %c0_11 = arith.constant 0 : index
    %c0_12 = arith.constant 0 : index
    %18 = vector.load %arg2[%c0_10, %c0_11, %c0_12] : memref<9x64x64xbf16, #tpu.memory_space<vmem>>, vector<1x64x64xbf16>
    %19 = vector.shape_cast %18 : vector<1x64x64xbf16> to vector<64x64xbf16>
    %cst_13 = arith.constant dense<0.000000e+00> : vector<64x128xf32>
    %20 = tpu.matmul %19, %16, %cst_13 {dimension_numbers = #tpu.dot_dimension_numbers<[1], [0], [0], [1], [0, 0, 1, 1], [], []>} : vector<64x64xbf16>, vector<64x128xbf16>, vector<64x128xf32> -> vector<64x128xf32>
    %c0_14 = arith.constant 0 : index
    %c0_15 = arith.constant 0 : index
    %c0_16 = arith.constant 0 : index
    %21 = vector.load %arg6[%c0_14, %c0_15, %c0_16] : memref<9x1x128xf32, #tpu.memory_space<vmem>>, vector<1x1x128xf32>
    %22 = vector.shape_cast %21 : vector<1x1x128xf32> to vector<1x128xf32>
    %23 = vector.broadcast %22 : vector<1x128xf32> to vector<64x128xf32>
    %24 = arith.mulf %20, %23 : vector<64x128xf32>
    %25 = arith.addf %17, %24 : vector<64x128xf32>
    %c1 = arith.constant 1 : index
    %c0_17 = arith.constant 0 : index
    %c0_18 = arith.constant 0 : index
    %26 = vector.load %arg2[%c1, %c0_17, %c0_18] : memref<9x64x64xbf16, #tpu.memory_space<vmem>>, vector<1x64x64xbf16>
    %27 = vector.shape_cast %26 : vector<1x64x64xbf16> to vector<64x64xbf16>
    %cst_19 = arith.constant dense<0.000000e+00> : vector<64x128xf32>
    %28 = tpu.matmul %27, %16, %cst_19 {dimension_numbers = #tpu.dot_dimension_numbers<[1], [0], [0], [1], [0, 0, 1, 1], [], []>} : vector<64x64xbf16>, vector<64x128xbf16>, vector<64x128xf32> -> vector<64x128xf32>
    %c1_20 = arith.constant 1 : index
    %c0_21 = arith.constant 0 : index
    %c0_22 = arith.constant 0 : index
    %29 = vector.load %arg6[%c1_20, %c0_21, %c0_22] : memref<9x1x128xf32, #tpu.memory_space<vmem>>, vector<1x1x128xf32>
    %30 = vector.shape_cast %29 : vector<1x1x128xf32> to vector<1x128xf32>
    %31 = vector.broadcast %30 : vector<1x128xf32> to vector<64x128xf32>
    %32 = arith.mulf %28, %31 : vector<64x128xf32>
    %33 = arith.addf %25, %32 : vector<64x128xf32>
    %c2 = arith.constant 2 : index
    %c0_23 = arith.constant 0 : index
    %c0_24 = arith.constant 0 : index
    %34 = vector.load %arg2[%c2, %c0_23, %c0_24] : memref<9x64x64xbf16, #tpu.memory_space<vmem>>, vector<1x64x64xbf16>
    %35 = vector.shape_cast %34 : vector<1x64x64xbf16> to vector<64x64xbf16>
    %cst_25 = arith.constant dense<0.000000e+00> : vector<64x128xf32>
    %36 = tpu.matmul %35, %16, %cst_25 {dimension_numbers = #tpu.dot_dimension_numbers<[1], [0], [0], [1], [0, 0, 1, 1], [], []>} : vector<64x64xbf16>, vector<64x128xbf16>, vector<64x128xf32> -> vector<64x128xf32>
    %c2_26 = arith.constant 2 : index
    %c0_27 = arith.constant 0 : index
    %c0_28 = arith.constant 0 : index
    %37 = vector.load %arg6[%c2_26, %c0_27, %c0_28] : memref<9x1x128xf32, #tpu.memory_space<vmem>>, vector<1x1x128xf32>
    %38 = vector.shape_cast %37 : vector<1x1x128xf32> to vector<1x128xf32>
    %39 = vector.broadcast %38 : vector<1x128xf32> to vector<64x128xf32>
    %40 = arith.mulf %36, %39 : vector<64x128xf32>
    %41 = arith.addf %33, %40 : vector<64x128xf32>
    %c3 = arith.constant 3 : index
    %c0_29 = arith.constant 0 : index
    %c0_30 = arith.constant 0 : index
    %42 = vector.load %arg2[%c3, %c0_29, %c0_30] : memref<9x64x64xbf16, #tpu.memory_space<vmem>>, vector<1x64x64xbf16>
    %43 = vector.shape_cast %42 : vector<1x64x64xbf16> to vector<64x64xbf16>
    %cst_31 = arith.constant dense<0.000000e+00> : vector<64x128xf32>
    %44 = tpu.matmul %43, %16, %cst_31 {dimension_numbers = #tpu.dot_dimension_numbers<[1], [0], [0], [1], [0, 0, 1, 1], [], []>} : vector<64x64xbf16>, vector<64x128xbf16>, vector<64x128xf32> -> vector<64x128xf32>
    %c3_32 = arith.constant 3 : index
    %c0_33 = arith.constant 0 : index
    %c0_34 = arith.constant 0 : index
    %45 = vector.load %arg6[%c3_32, %c0_33, %c0_34] : memref<9x1x128xf32, #tpu.memory_space<vmem>>, vector<1x1x128xf32>
    %46 = vector.shape_cast %45 : vector<1x1x128xf32> to vector<1x128xf32>
    %47 = vector.broadcast %46 : vector<1x128xf32> to vector<64x128xf32>
    %48 = arith.mulf %44, %47 : vector<64x128xf32>
    %49 = arith.addf %41, %48 : vector<64x128xf32>
    %c4 = arith.constant 4 : index
    %c0_35 = arith.constant 0 : index
    %c0_36 = arith.constant 0 : index
    %50 = vector.load %arg2[%c4, %c0_35, %c0_36] : memref<9x64x64xbf16, #tpu.memory_space<vmem>>, vector<1x64x64xbf16>
    %51 = vector.shape_cast %50 : vector<1x64x64xbf16> to vector<64x64xbf16>
    %cst_37 = arith.constant dense<0.000000e+00> : vector<64x128xf32>
    %52 = tpu.matmul %51, %16, %cst_37 {dimension_numbers = #tpu.dot_dimension_numbers<[1], [0], [0], [1], [0, 0, 1, 1], [], []>} : vector<64x64xbf16>, vector<64x128xbf16>, vector<64x128xf32> -> vector<64x128xf32>
    %c4_38 = arith.constant 4 : index
    %c0_39 = arith.constant 0 : index
    %c0_40 = arith.constant 0 : index
    %53 = vector.load %arg6[%c4_38, %c0_39, %c0_40] : memref<9x1x128xf32, #tpu.memory_space<vmem>>, vector<1x1x128xf32>
    %54 = vector.shape_cast %53 : vector<1x1x128xf32> to vector<1x128xf32>
    %55 = vector.broadcast %54 : vector<1x128xf32> to vector<64x128xf32>
    %56 = arith.mulf %52, %55 : vector<64x128xf32>
    %57 = arith.addf %49, %56 : vector<64x128xf32>
    %c5 = arith.constant 5 : index
    %c0_41 = arith.constant 0 : index
    %c0_42 = arith.constant 0 : index
    %58 = vector.load %arg2[%c5, %c0_41, %c0_42] : memref<9x64x64xbf16, #tpu.memory_space<vmem>>, vector<1x64x64xbf16>
    %59 = vector.shape_cast %58 : vector<1x64x64xbf16> to vector<64x64xbf16>
    %cst_43 = arith.constant dense<0.000000e+00> : vector<64x128xf32>
    %60 = tpu.matmul %59, %16, %cst_43 {dimension_numbers = #tpu.dot_dimension_numbers<[1], [0], [0], [1], [0, 0, 1, 1], [], []>} : vector<64x64xbf16>, vector<64x128xbf16>, vector<64x128xf32> -> vector<64x128xf32>
    %c5_44 = arith.constant 5 : index
    %c0_45 = arith.constant 0 : index
    %c0_46 = arith.constant 0 : index
    %61 = vector.load %arg6[%c5_44, %c0_45, %c0_46] : memref<9x1x128xf32, #tpu.memory_space<vmem>>, vector<1x1x128xf32>
    %62 = vector.shape_cast %61 : vector<1x1x128xf32> to vector<1x128xf32>
    %63 = vector.broadcast %62 : vector<1x128xf32> to vector<64x128xf32>
    %64 = arith.mulf %60, %63 : vector<64x128xf32>
    %65 = arith.addf %57, %64 : vector<64x128xf32>
    %c6 = arith.constant 6 : index
    %c0_47 = arith.constant 0 : index
    %c0_48 = arith.constant 0 : index
    %66 = vector.load %arg2[%c6, %c0_47, %c0_48] : memref<9x64x64xbf16, #tpu.memory_space<vmem>>, vector<1x64x64xbf16>
    %67 = vector.shape_cast %66 : vector<1x64x64xbf16> to vector<64x64xbf16>
    %cst_49 = arith.constant dense<0.000000e+00> : vector<64x128xf32>
    %68 = tpu.matmul %67, %16, %cst_49 {dimension_numbers = #tpu.dot_dimension_numbers<[1], [0], [0], [1], [0, 0, 1, 1], [], []>} : vector<64x64xbf16>, vector<64x128xbf16>, vector<64x128xf32> -> vector<64x128xf32>
    %c6_50 = arith.constant 6 : index
    %c0_51 = arith.constant 0 : index
    %c0_52 = arith.constant 0 : index
    %69 = vector.load %arg6[%c6_50, %c0_51, %c0_52] : memref<9x1x128xf32, #tpu.memory_space<vmem>>, vector<1x1x128xf32>
    %70 = vector.shape_cast %69 : vector<1x1x128xf32> to vector<1x128xf32>
    %71 = vector.broadcast %70 : vector<1x128xf32> to vector<64x128xf32>
    %72 = arith.mulf %68, %71 : vector<64x128xf32>
    %73 = arith.addf %65, %72 : vector<64x128xf32>
    %c7 = arith.constant 7 : index
    %c0_53 = arith.constant 0 : index
    %c0_54 = arith.constant 0 : index
    %74 = vector.load %arg2[%c7, %c0_53, %c0_54] : memref<9x64x64xbf16, #tpu.memory_space<vmem>>, vector<1x64x64xbf16>
    %75 = vector.shape_cast %74 : vector<1x64x64xbf16> to vector<64x64xbf16>
    %cst_55 = arith.constant dense<0.000000e+00> : vector<64x128xf32>
    %76 = tpu.matmul %75, %16, %cst_55 {dimension_numbers = #tpu.dot_dimension_numbers<[1], [0], [0], [1], [0, 0, 1, 1], [], []>} : vector<64x64xbf16>, vector<64x128xbf16>, vector<64x128xf32> -> vector<64x128xf32>
    %c7_56 = arith.constant 7 : index
    %c0_57 = arith.constant 0 : index
    %c0_58 = arith.constant 0 : index
    %77 = vector.load %arg6[%c7_56, %c0_57, %c0_58] : memref<9x1x128xf32, #tpu.memory_space<vmem>>, vector<1x1x128xf32>
    %78 = vector.shape_cast %77 : vector<1x1x128xf32> to vector<1x128xf32>
    %79 = vector.broadcast %78 : vector<1x128xf32> to vector<64x128xf32>
    %80 = arith.mulf %76, %79 : vector<64x128xf32>
    %81 = arith.addf %73, %80 : vector<64x128xf32>
    %c8 = arith.constant 8 : index
    %c0_59 = arith.constant 0 : index
    %c0_60 = arith.constant 0 : index
    %82 = vector.load %arg2[%c8, %c0_59, %c0_60] : memref<9x64x64xbf16, #tpu.memory_space<vmem>>, vector<1x64x64xbf16>
    %83 = vector.shape_cast %82 : vector<1x64x64xbf16> to vector<64x64xbf16>
    %cst_61 = arith.constant dense<0.000000e+00> : vector<64x128xf32>
    %84 = tpu.matmul %83, %16, %cst_61 {dimension_numbers = #tpu.dot_dimension_numbers<[1], [0], [0], [1], [0, 0, 1, 1], [], []>} : vector<64x64xbf16>, vector<64x128xbf16>, vector<64x128xf32> -> vector<64x128xf32>
    %c8_62 = arith.constant 8 : index
    %c0_63 = arith.constant 0 : index
    %c0_64 = arith.constant 0 : index
    %85 = vector.load %arg6[%c8_62, %c0_63, %c0_64] : memref<9x1x128xf32, #tpu.memory_space<vmem>>, vector<1x1x128xf32>
    %86 = vector.shape_cast %85 : vector<1x1x128xf32> to vector<1x128xf32>
    %87 = vector.broadcast %86 : vector<1x128xf32> to vector<64x128xf32>
    %88 = arith.mulf %84, %87 : vector<64x128xf32>
    %89 = arith.addf %81, %88 : vector<64x128xf32>
    %c0_65 = arith.constant 0 : index
    %c0_66 = arith.constant 0 : index
    %90 = vector.load %arg7[%c0_65, %c0_66] : memref<1x128xf32, #tpu.memory_space<vmem>>, vector<1x128xf32>
    %91 = vector.broadcast %90 : vector<1x128xf32> to vector<64x128xf32>
    %92 = arith.mulf %89, %91 : vector<64x128xf32>
    %c0_67 = arith.constant 0 : index
    %c0_68 = arith.constant 0 : index
    %93 = vector.load %arg8[%c0_67, %c0_68] : memref<1x128xf32, #tpu.memory_space<vmem>>, vector<1x128xf32>
    %94 = vector.broadcast %93 : vector<1x128xf32> to vector<64x128xf32>
    %95 = arith.addf %92, %94 : vector<64x128xf32>
    %96 = arith.negf %95 : vector<64x128xf32>
    %97 = math.exp %96 : vector<64x128xf32>
    %cst_69 = arith.constant 1.000000e+00 : f32
    %98 = vector.broadcast %cst_69 : f32 to vector<64x128xf32>
    %99 = arith.addf %98, %97 : vector<64x128xf32>
    %100 = arith.divf %98, %99 : vector<64x128xf32>
    %101 = arith.mulf %95, %100 : vector<64x128xf32>
    %cst_70 = arith.constant dense<0.000000e+00> : vector<128xf32>
    %102 = vector.multi_reduction <add>, %101, %cst_70 [0] : vector<64x128xf32> to vector<128xf32>
    %103 = vector.shape_cast %102 : vector<128xf32> to vector<1x128xf32>
    %cst_71 = arith.constant 6.400000e+01 : f32
    %104 = vector.broadcast %cst_71 : f32 to vector<1x128xf32>
    %105 = arith.divf %103, %104 : vector<1x128xf32>
    %106 = arith.truncf %105 : vector<1x128xf32> to vector<1x128xbf16>
    %c0_72 = arith.constant 0 : index
    %c0_73 = arith.constant 0 : index
    %107 = vector.load %arg9[%c0_72, %c0_73] : memref<128x128xbf16, #tpu.memory_space<vmem>>, vector<128x128xbf16>
    %cst_74 = arith.constant dense<0.000000e+00> : vector<1x128xf32>
    %108 = tpu.matmul %106, %107, %cst_74 {dimension_numbers = #tpu.dot_dimension_numbers<[1], [0], [0], [1], [0, 0, 1, 1], [], []>} : vector<1x128xbf16>, vector<128x128xbf16>, vector<1x128xf32> -> vector<1x128xf32>
    %c0_75 = arith.constant 0 : index
    %c0_76 = arith.constant 0 : index
    %109 = vector.load %arg10[%c0_75, %c0_76] : memref<1x128xf32, #tpu.memory_space<vmem>>, vector<1x128xf32>
    %110 = arith.addf %108, %109 : vector<1x128xf32>
    %111 = arith.negf %110 : vector<1x128xf32>
    %112 = math.exp %111 : vector<1x128xf32>
    %cst_77 = arith.constant 1.000000e+00 : f32
    %113 = vector.broadcast %cst_77 : f32 to vector<1x128xf32>
    %114 = arith.addf %113, %112 : vector<1x128xf32>
    %115 = arith.divf %113, %114 : vector<1x128xf32>
    %116 = arith.mulf %110, %115 : vector<1x128xf32>
    %117 = arith.truncf %116 : vector<1x128xf32> to vector<1x128xbf16>
    %c0_78 = arith.constant 0 : index
    %c0_79 = arith.constant 0 : index
    %118 = vector.load %arg11[%c0_78, %c0_79] : memref<128x128xbf16, #tpu.memory_space<vmem>>, vector<128x128xbf16>
    %cst_80 = arith.constant dense<0.000000e+00> : vector<1x128xf32>
    %119 = tpu.matmul %117, %118, %cst_80 {dimension_numbers = #tpu.dot_dimension_numbers<[1], [0], [0], [1], [0, 0, 1, 1], [], []>} : vector<1x128xbf16>, vector<128x128xbf16>, vector<1x128xf32> -> vector<1x128xf32>
    %c0_81 = arith.constant 0 : index
    %c0_82 = arith.constant 0 : index
    %120 = vector.load %arg12[%c0_81, %c0_82] : memref<1x128xf32, #tpu.memory_space<vmem>>, vector<1x128xf32>
    %121 = arith.addf %119, %120 : vector<1x128xf32>
    %122 = arith.negf %121 : vector<1x128xf32>
    %123 = math.exp %122 : vector<1x128xf32>
    %cst_83 = arith.constant 1.000000e+00 : f32
    %124 = vector.broadcast %cst_83 : f32 to vector<1x128xf32>
    %125 = arith.addf %124, %123 : vector<1x128xf32>
    %126 = arith.divf %124, %125 : vector<1x128xf32>
    %127 = vector.broadcast %126 : vector<1x128xf32> to vector<64x128xf32>
    %128 = arith.mulf %101, %127 : vector<64x128xf32>
    %129 = arith.truncf %128 : vector<64x128xf32> to vector<64x128xbf16>
    %c0_84 = arith.constant 0 : index
    %c0_85 = arith.constant 0 : index
    %130 = vector.load %arg13[%c0_84, %c0_85] : memref<128x128xbf16, #tpu.memory_space<vmem>>, vector<128x128xbf16>
    %cst_86 = arith.constant dense<0.000000e+00> : vector<64x128xf32>
    %131 = tpu.matmul %129, %130, %cst_86 {dimension_numbers = #tpu.dot_dimension_numbers<[1], [0], [0], [1], [0, 0, 1, 1], [], []>} : vector<64x128xbf16>, vector<128x128xbf16>, vector<64x128xf32> -> vector<64x128xf32>
    %c0_87 = arith.constant 0 : index
    %c0_88 = arith.constant 0 : index
    %132 = vector.load %arg14[%c0_87, %c0_88] : memref<1x128xf32, #tpu.memory_space<vmem>>, vector<1x128xf32>
    %133 = vector.broadcast %132 : vector<1x128xf32> to vector<64x128xf32>
    %134 = arith.mulf %131, %133 : vector<64x128xf32>
    %c0_89 = arith.constant 0 : index
    %c0_90 = arith.constant 0 : index
    %135 = vector.load %arg15[%c0_89, %c0_90] : memref<1x128xf32, #tpu.memory_space<vmem>>, vector<1x128xf32>
    %136 = vector.broadcast %135 : vector<1x128xf32> to vector<64x128xf32>
    %137 = arith.addf %134, %136 : vector<64x128xf32>
    %138 = arith.extf %1 : vector<64x128xbf16> to vector<64x128xf32>
    %139 = arith.addf %137, %138 : vector<64x128xf32>
    %140 = arith.truncf %139 : vector<64x128xf32> to vector<64x128xbf16>
    %c0_91 = arith.constant 0 : index
    %c0_92 = arith.constant 0 : index
    %c0_93 = arith.constant 0 : index
    %141 = vector.load %arg16[%c0_91, %c0_92, %c0_93] : memref<1x64x128xbf16, #tpu.memory_space<vmem>>, vector<1x64x128xbf16>
    %142 = vector.shape_cast %141 : vector<1x64x128xbf16> to vector<64x128xbf16>
    %143 = vector.shape_cast %140 : vector<64x128xbf16> to vector<1x64x128xbf16>
    tpu.vector_store %arg16[%c0_91, %c0_92, %c0_93], %143 {strides = array<i32>} : memref<1x64x128xbf16, #tpu.memory_space<vmem>>, vector<1x64x128xbf16>,
    return
  }
  func.func @transform_0(%arg0: i32) -> (i32, i32, i32) {
    %c0_i32 = arith.constant 0 : i32
    %c0_i32_0 = arith.constant 0 : i32
    %c0_i32_1 = arith.constant 0 : i32
    return %arg0, %c0_i32, %c0_i32_0 : i32, i32, i32
  }
  func.func @transform_1(%arg0: i32) -> (i32, i32, i32) {
    %c0_i32 = arith.constant 0 : i32
    %c0_i32_0 = arith.constant 0 : i32
    %c0_i32_1 = arith.constant 0 : i32
    %c0_i32_2 = arith.constant 0 : i32
    return %c0_i32, %c0_i32_0, %c0_i32_1 : i32, i32, i32
  }
  func.func @transform_2(%arg0: i32) -> (i32, i32) {
    %c0_i32 = arith.constant 0 : i32
    %c0_i32_0 = arith.constant 0 : i32
    %c0_i32_1 = arith.constant 0 : i32
    return %c0_i32, %c0_i32_0 : i32, i32
  }
  func.func @transform_3(%arg0: i32) -> (i32, i32) {
    %c0_i32 = arith.constant 0 : i32
    %c0_i32_0 = arith.constant 0 : i32
    %c0_i32_1 = arith.constant 0 : i32
    return %c0_i32, %c0_i32_0 : i32, i32
  }
  func.func @transform_4(%arg0: i32) -> (i32, i32) {
    %c0_i32 = arith.constant 0 : i32
    %c0_i32_0 = arith.constant 0 : i32
    %c0_i32_1 = arith.constant 0 : i32
    return %c0_i32, %c0_i32_0 : i32, i32
  }
  func.func @transform_5(%arg0: i32) -> (i32, i32, i32) {
    %c0_i32 = arith.constant 0 : i32
    %c0_i32_0 = arith.constant 0 : i32
    %c0_i32_1 = arith.constant 0 : i32
    %c0_i32_2 = arith.constant 0 : i32
    return %c0_i32, %c0_i32_0, %c0_i32_1 : i32, i32, i32
  }
  func.func @transform_6(%arg0: i32) -> (i32, i32) {
    %c0_i32 = arith.constant 0 : i32
    %c0_i32_0 = arith.constant 0 : i32
    %c0_i32_1 = arith.constant 0 : i32
    return %c0_i32, %c0_i32_0 : i32, i32
  }
  func.func @transform_7(%arg0: i32) -> (i32, i32) {
    %c0_i32 = arith.constant 0 : i32
    %c0_i32_0 = arith.constant 0 : i32
    %c0_i32_1 = arith.constant 0 : i32
    return %c0_i32, %c0_i32_0 : i32, i32
  }
  func.func @transform_8(%arg0: i32) -> (i32, i32) {
    %c0_i32 = arith.constant 0 : i32
    %c0_i32_0 = arith.constant 0 : i32
    %c0_i32_1 = arith.constant 0 : i32
    return %c0_i32, %c0_i32_0 : i32, i32
  }
  func.func @transform_9(%arg0: i32) -> (i32, i32) {
    %c0_i32 = arith.constant 0 : i32
    %c0_i32_0 = arith.constant 0 : i32
    %c0_i32_1 = arith.constant 0 : i32
    return %c0_i32, %c0_i32_0 : i32, i32
  }
  func.func @transform_10(%arg0: i32) -> (i32, i32) {
    %c0_i32 = arith.constant 0 : i32
    %c0_i32_0 = arith.constant 0 : i32
    %c0_i32_1 = arith.constant 0 : i32
    return %c0_i32, %c0_i32_0 : i32, i32
  }
  func.func @transform_11(%arg0: i32) -> (i32, i32) {
    %c0_i32 = arith.constant 0 : i32
    %c0_i32_0 = arith.constant 0 : i32
    %c0_i32_1 = arith.constant 0 : i32
    return %c0_i32, %c0_i32_0 : i32, i32
  }
  func.func @transform_12(%arg0: i32) -> (i32, i32) {
    %c0_i32 = arith.constant 0 : i32
    %c0_i32_0 = arith.constant 0 : i32
    %c0_i32_1 = arith.constant 0 : i32
    return %c0_i32, %c0_i32_0 : i32, i32
  }
  func.func @transform_13(%arg0: i32) -> (i32, i32) {
    %c0_i32 = arith.constant 0 : i32
    %c0_i32_0 = arith.constant 0 : i32
    %c0_i32_1 = arith.constant 0 : i32
    return %c0_i32, %c0_i32_0 : i32, i32
  }
  func.func @transform_14(%arg0: i32) -> (i32, i32) {
    %c0_i32 = arith.constant 0 : i32
    %c0_i32_0 = arith.constant 0 : i32
    %c0_i32_1 = arith.constant 0 : i32
    return %c0_i32, %c0_i32_0 : i32, i32
  }
  func.func @transform_15(%arg0: i32) -> (i32, i32, i32) {
    %c0_i32 = arith.constant 0 : i32
    %c0_i32_0 = arith.constant 0 : i32
    %c0_i32_1 = arith.constant 0 : i32
    return %arg0, %c0_i32, %c0_i32_0 : i32, i32, i32
  }
}

module attributes {stable_mosaic.version = 11 : i64} {
  func.func @_mbconv_kernel(%arg0: i32, %arg1: memref<1x64x128xbf16, #tpu.memory_space<vmem>>, %arg2: memref<9x16x64xbf16, #tpu.memory_space<vmem>>, %arg3: memref<128x128xbf16, #tpu.memory_space<vmem>>, %arg4: memref<1x128xf32, #tpu.memory_space<vmem>>, %arg5: memref<1x128xf32, #tpu.memory_space<vmem>>, %arg6: memref<9x1x128xf32, #tpu.memory_space<vmem>>, %arg7: memref<1x128xf32, #tpu.memory_space<vmem>>, %arg8: memref<1x128xf32, #tpu.memory_space<vmem>>, %arg9: memref<128x128xbf16, #tpu.memory_space<vmem>>, %arg10: memref<1x128xf32, #tpu.memory_space<vmem>>, %arg11: memref<128x128xbf16, #tpu.memory_space<vmem>>, %arg12: memref<1x128xf32, #tpu.memory_space<vmem>>, %arg13: memref<128x128xbf16, #tpu.memory_space<vmem>>, %arg14: memref<1x128xf32, #tpu.memory_space<vmem>>, %arg15: memref<1x128xf32, #tpu.memory_space<vmem>>, %arg16: memref<1x16x128xbf16, #tpu.memory_space<vmem>>) attributes {dimension_semantics = [#tpu.dimension_semantics<parallel>], iteration_bounds = array<i64: 2>, scalar_prefetch = 0 : i64, scratch_operands = 0 : i64, tpu.core_type = #tpu.core_type<tc>, window_params = [{transform_indices = @transform_0, window_bounds = array<i64: 1, 64, 128>}, {pipeline_mode = #tpu.pipeline_mode<synchronous>, transform_indices = @transform_1, window_bounds = array<i64: 9, 16, 64>}, {pipeline_mode = #tpu.pipeline_mode<synchronous>, transform_indices = @transform_2, window_bounds = array<i64: 128, 128>}, {pipeline_mode = #tpu.pipeline_mode<synchronous>, transform_indices = @transform_3, window_bounds = array<i64: 1, 128>}, {pipeline_mode = #tpu.pipeline_mode<synchronous>, transform_indices = @transform_4, window_bounds = array<i64: 1, 128>}, {pipeline_mode = #tpu.pipeline_mode<synchronous>, transform_indices = @transform_5, window_bounds = array<i64: 9, 1, 128>}, {pipeline_mode = #tpu.pipeline_mode<synchronous>, transform_indices = @transform_6, window_bounds = array<i64: 1, 128>}, {pipeline_mode = #tpu.pipeline_mode<synchronous>, transform_indices = @transform_7, window_bounds = array<i64: 1, 128>}, {pipeline_mode = #tpu.pipeline_mode<synchronous>, transform_indices = @transform_8, window_bounds = array<i64: 128, 128>}, {pipeline_mode = #tpu.pipeline_mode<synchronous>, transform_indices = @transform_9, window_bounds = array<i64: 1, 128>}, {pipeline_mode = #tpu.pipeline_mode<synchronous>, transform_indices = @transform_10, window_bounds = array<i64: 128, 128>}, {pipeline_mode = #tpu.pipeline_mode<synchronous>, transform_indices = @transform_11, window_bounds = array<i64: 1, 128>}, {pipeline_mode = #tpu.pipeline_mode<synchronous>, transform_indices = @transform_12, window_bounds = array<i64: 128, 128>}, {pipeline_mode = #tpu.pipeline_mode<synchronous>, transform_indices = @transform_13, window_bounds = array<i64: 1, 128>}, {pipeline_mode = #tpu.pipeline_mode<synchronous>, transform_indices = @transform_14, window_bounds = array<i64: 1, 128>}, {transform_indices = @transform_15, window_bounds = array<i64: 1, 16, 128>}]} {
    %c0 = arith.constant 0 : index
    %c0_0 = arith.constant 0 : index
    %c0_1 = arith.constant 0 : index
    %0 = vector.load %arg1[%c0, %c0_0, %c0_1] : memref<1x64x128xbf16, #tpu.memory_space<vmem>>, vector<1x64x128xbf16>
    %1 = vector.shape_cast %0 : vector<1x64x128xbf16> to vector<64x128xbf16>
    %c0_2 = arith.constant 0 : index
    %c0_3 = arith.constant 0 : index
    %2 = vector.load %arg3[%c0_2, %c0_3] : memref<128x128xbf16, #tpu.memory_space<vmem>>, vector<128x128xbf16>
    %cst = arith.constant dense<0.000000e+00> : vector<64x128xf32>
    %3 = tpu.matmul %1, %2, %cst {dimension_numbers = #tpu.dot_dimension_numbers<[1], [0], [0], [1], [0, 0, 1, 1], [], []>} : vector<64x128xbf16>, vector<128x128xbf16>, vector<64x128xf32> -> vector<64x128xf32>
    %c0_4 = arith.constant 0 : index
    %c0_5 = arith.constant 0 : index
    %4 = vector.load %arg4[%c0_4, %c0_5] : memref<1x128xf32, #tpu.memory_space<vmem>>, vector<1x128xf32>
    %5 = vector.broadcast %4 : vector<1x128xf32> to vector<64x128xf32>
    %6 = arith.mulf %3, %5 : vector<64x128xf32>
    %c0_6 = arith.constant 0 : index
    %c0_7 = arith.constant 0 : index
    %7 = vector.load %arg5[%c0_6, %c0_7] : memref<1x128xf32, #tpu.memory_space<vmem>>, vector<1x128xf32>
    %8 = vector.broadcast %7 : vector<1x128xf32> to vector<64x128xf32>
    %9 = arith.addf %6, %8 : vector<64x128xf32>
    %10 = arith.negf %9 : vector<64x128xf32>
    %11 = math.exp %10 : vector<64x128xf32>
    %cst_8 = arith.constant 1.000000e+00 : f32
    %12 = vector.broadcast %cst_8 : f32 to vector<64x128xf32>
    %13 = arith.addf %12, %11 : vector<64x128xf32>
    %14 = arith.divf %12, %13 : vector<64x128xf32>
    %15 = arith.mulf %9, %14 : vector<64x128xf32>
    %16 = arith.truncf %15 : vector<64x128xf32> to vector<64x128xbf16>
    %cst_9 = arith.constant 0.000000e+00 : f32
    %17 = vector.broadcast %cst_9 : f32 to vector<16x128xf32>
    %c0_10 = arith.constant 0 : index
    %c0_11 = arith.constant 0 : index
    %c0_12 = arith.constant 0 : index
    %18 = vector.load %arg2[%c0_10, %c0_11, %c0_12] : memref<9x16x64xbf16, #tpu.memory_space<vmem>>, vector<1x16x64xbf16>
    %19 = vector.shape_cast %18 : vector<1x16x64xbf16> to vector<16x64xbf16>
    %cst_13 = arith.constant dense<0.000000e+00> : vector<16x128xf32>
    %20 = tpu.matmul %19, %16, %cst_13 {dimension_numbers = #tpu.dot_dimension_numbers<[1], [0], [0], [1], [0, 0, 1, 1], [], []>} : vector<16x64xbf16>, vector<64x128xbf16>, vector<16x128xf32> -> vector<16x128xf32>
    %c0_14 = arith.constant 0 : index
    %c0_15 = arith.constant 0 : index
    %c0_16 = arith.constant 0 : index
    %21 = vector.load %arg6[%c0_14, %c0_15, %c0_16] : memref<9x1x128xf32, #tpu.memory_space<vmem>>, vector<1x1x128xf32>
    %22 = vector.shape_cast %21 : vector<1x1x128xf32> to vector<1x128xf32>
    %23 = vector.broadcast %22 : vector<1x128xf32> to vector<16x128xf32>
    %24 = arith.mulf %20, %23 : vector<16x128xf32>
    %25 = arith.addf %17, %24 : vector<16x128xf32>
    %c1 = arith.constant 1 : index
    %c0_17 = arith.constant 0 : index
    %c0_18 = arith.constant 0 : index
    %26 = vector.load %arg2[%c1, %c0_17, %c0_18] : memref<9x16x64xbf16, #tpu.memory_space<vmem>>, vector<1x16x64xbf16>
    %27 = vector.shape_cast %26 : vector<1x16x64xbf16> to vector<16x64xbf16>
    %cst_19 = arith.constant dense<0.000000e+00> : vector<16x128xf32>
    %28 = tpu.matmul %27, %16, %cst_19 {dimension_numbers = #tpu.dot_dimension_numbers<[1], [0], [0], [1], [0, 0, 1, 1], [], []>} : vector<16x64xbf16>, vector<64x128xbf16>, vector<16x128xf32> -> vector<16x128xf32>
    %c1_20 = arith.constant 1 : index
    %c0_21 = arith.constant 0 : index
    %c0_22 = arith.constant 0 : index
    %29 = vector.load %arg6[%c1_20, %c0_21, %c0_22] : memref<9x1x128xf32, #tpu.memory_space<vmem>>, vector<1x1x128xf32>
    %30 = vector.shape_cast %29 : vector<1x1x128xf32> to vector<1x128xf32>
    %31 = vector.broadcast %30 : vector<1x128xf32> to vector<16x128xf32>
    %32 = arith.mulf %28, %31 : vector<16x128xf32>
    %33 = arith.addf %25, %32 : vector<16x128xf32>
    %c2 = arith.constant 2 : index
    %c0_23 = arith.constant 0 : index
    %c0_24 = arith.constant 0 : index
    %34 = vector.load %arg2[%c2, %c0_23, %c0_24] : memref<9x16x64xbf16, #tpu.memory_space<vmem>>, vector<1x16x64xbf16>
    %35 = vector.shape_cast %34 : vector<1x16x64xbf16> to vector<16x64xbf16>
    %cst_25 = arith.constant dense<0.000000e+00> : vector<16x128xf32>
    %36 = tpu.matmul %35, %16, %cst_25 {dimension_numbers = #tpu.dot_dimension_numbers<[1], [0], [0], [1], [0, 0, 1, 1], [], []>} : vector<16x64xbf16>, vector<64x128xbf16>, vector<16x128xf32> -> vector<16x128xf32>
    %c2_26 = arith.constant 2 : index
    %c0_27 = arith.constant 0 : index
    %c0_28 = arith.constant 0 : index
    %37 = vector.load %arg6[%c2_26, %c0_27, %c0_28] : memref<9x1x128xf32, #tpu.memory_space<vmem>>, vector<1x1x128xf32>
    %38 = vector.shape_cast %37 : vector<1x1x128xf32> to vector<1x128xf32>
    %39 = vector.broadcast %38 : vector<1x128xf32> to vector<16x128xf32>
    %40 = arith.mulf %36, %39 : vector<16x128xf32>
    %41 = arith.addf %33, %40 : vector<16x128xf32>
    %c3 = arith.constant 3 : index
    %c0_29 = arith.constant 0 : index
    %c0_30 = arith.constant 0 : index
    %42 = vector.load %arg2[%c3, %c0_29, %c0_30] : memref<9x16x64xbf16, #tpu.memory_space<vmem>>, vector<1x16x64xbf16>
    %43 = vector.shape_cast %42 : vector<1x16x64xbf16> to vector<16x64xbf16>
    %cst_31 = arith.constant dense<0.000000e+00> : vector<16x128xf32>
    %44 = tpu.matmul %43, %16, %cst_31 {dimension_numbers = #tpu.dot_dimension_numbers<[1], [0], [0], [1], [0, 0, 1, 1], [], []>} : vector<16x64xbf16>, vector<64x128xbf16>, vector<16x128xf32> -> vector<16x128xf32>
    %c3_32 = arith.constant 3 : index
    %c0_33 = arith.constant 0 : index
    %c0_34 = arith.constant 0 : index
    %45 = vector.load %arg6[%c3_32, %c0_33, %c0_34] : memref<9x1x128xf32, #tpu.memory_space<vmem>>, vector<1x1x128xf32>
    %46 = vector.shape_cast %45 : vector<1x1x128xf32> to vector<1x128xf32>
    %47 = vector.broadcast %46 : vector<1x128xf32> to vector<16x128xf32>
    %48 = arith.mulf %44, %47 : vector<16x128xf32>
    %49 = arith.addf %41, %48 : vector<16x128xf32>
    %c4 = arith.constant 4 : index
    %c0_35 = arith.constant 0 : index
    %c0_36 = arith.constant 0 : index
    %50 = vector.load %arg2[%c4, %c0_35, %c0_36] : memref<9x16x64xbf16, #tpu.memory_space<vmem>>, vector<1x16x64xbf16>
    %51 = vector.shape_cast %50 : vector<1x16x64xbf16> to vector<16x64xbf16>
    %cst_37 = arith.constant dense<0.000000e+00> : vector<16x128xf32>
    %52 = tpu.matmul %51, %16, %cst_37 {dimension_numbers = #tpu.dot_dimension_numbers<[1], [0], [0], [1], [0, 0, 1, 1], [], []>} : vector<16x64xbf16>, vector<64x128xbf16>, vector<16x128xf32> -> vector<16x128xf32>
    %c4_38 = arith.constant 4 : index
    %c0_39 = arith.constant 0 : index
    %c0_40 = arith.constant 0 : index
    %53 = vector.load %arg6[%c4_38, %c0_39, %c0_40] : memref<9x1x128xf32, #tpu.memory_space<vmem>>, vector<1x1x128xf32>
    %54 = vector.shape_cast %53 : vector<1x1x128xf32> to vector<1x128xf32>
    %55 = vector.broadcast %54 : vector<1x128xf32> to vector<16x128xf32>
    %56 = arith.mulf %52, %55 : vector<16x128xf32>
    %57 = arith.addf %49, %56 : vector<16x128xf32>
    %c5 = arith.constant 5 : index
    %c0_41 = arith.constant 0 : index
    %c0_42 = arith.constant 0 : index
    %58 = vector.load %arg2[%c5, %c0_41, %c0_42] : memref<9x16x64xbf16, #tpu.memory_space<vmem>>, vector<1x16x64xbf16>
    %59 = vector.shape_cast %58 : vector<1x16x64xbf16> to vector<16x64xbf16>
    %cst_43 = arith.constant dense<0.000000e+00> : vector<16x128xf32>
    %60 = tpu.matmul %59, %16, %cst_43 {dimension_numbers = #tpu.dot_dimension_numbers<[1], [0], [0], [1], [0, 0, 1, 1], [], []>} : vector<16x64xbf16>, vector<64x128xbf16>, vector<16x128xf32> -> vector<16x128xf32>
    %c5_44 = arith.constant 5 : index
    %c0_45 = arith.constant 0 : index
    %c0_46 = arith.constant 0 : index
    %61 = vector.load %arg6[%c5_44, %c0_45, %c0_46] : memref<9x1x128xf32, #tpu.memory_space<vmem>>, vector<1x1x128xf32>
    %62 = vector.shape_cast %61 : vector<1x1x128xf32> to vector<1x128xf32>
    %63 = vector.broadcast %62 : vector<1x128xf32> to vector<16x128xf32>
    %64 = arith.mulf %60, %63 : vector<16x128xf32>
    %65 = arith.addf %57, %64 : vector<16x128xf32>
    %c6 = arith.constant 6 : index
    %c0_47 = arith.constant 0 : index
    %c0_48 = arith.constant 0 : index
    %66 = vector.load %arg2[%c6, %c0_47, %c0_48] : memref<9x16x64xbf16, #tpu.memory_space<vmem>>, vector<1x16x64xbf16>
    %67 = vector.shape_cast %66 : vector<1x16x64xbf16> to vector<16x64xbf16>
    %cst_49 = arith.constant dense<0.000000e+00> : vector<16x128xf32>
    %68 = tpu.matmul %67, %16, %cst_49 {dimension_numbers = #tpu.dot_dimension_numbers<[1], [0], [0], [1], [0, 0, 1, 1], [], []>} : vector<16x64xbf16>, vector<64x128xbf16>, vector<16x128xf32> -> vector<16x128xf32>
    %c6_50 = arith.constant 6 : index
    %c0_51 = arith.constant 0 : index
    %c0_52 = arith.constant 0 : index
    %69 = vector.load %arg6[%c6_50, %c0_51, %c0_52] : memref<9x1x128xf32, #tpu.memory_space<vmem>>, vector<1x1x128xf32>
    %70 = vector.shape_cast %69 : vector<1x1x128xf32> to vector<1x128xf32>
    %71 = vector.broadcast %70 : vector<1x128xf32> to vector<16x128xf32>
    %72 = arith.mulf %68, %71 : vector<16x128xf32>
    %73 = arith.addf %65, %72 : vector<16x128xf32>
    %c7 = arith.constant 7 : index
    %c0_53 = arith.constant 0 : index
    %c0_54 = arith.constant 0 : index
    %74 = vector.load %arg2[%c7, %c0_53, %c0_54] : memref<9x16x64xbf16, #tpu.memory_space<vmem>>, vector<1x16x64xbf16>
    %75 = vector.shape_cast %74 : vector<1x16x64xbf16> to vector<16x64xbf16>
    %cst_55 = arith.constant dense<0.000000e+00> : vector<16x128xf32>
    %76 = tpu.matmul %75, %16, %cst_55 {dimension_numbers = #tpu.dot_dimension_numbers<[1], [0], [0], [1], [0, 0, 1, 1], [], []>} : vector<16x64xbf16>, vector<64x128xbf16>, vector<16x128xf32> -> vector<16x128xf32>
    %c7_56 = arith.constant 7 : index
    %c0_57 = arith.constant 0 : index
    %c0_58 = arith.constant 0 : index
    %77 = vector.load %arg6[%c7_56, %c0_57, %c0_58] : memref<9x1x128xf32, #tpu.memory_space<vmem>>, vector<1x1x128xf32>
    %78 = vector.shape_cast %77 : vector<1x1x128xf32> to vector<1x128xf32>
    %79 = vector.broadcast %78 : vector<1x128xf32> to vector<16x128xf32>
    %80 = arith.mulf %76, %79 : vector<16x128xf32>
    %81 = arith.addf %73, %80 : vector<16x128xf32>
    %c8 = arith.constant 8 : index
    %c0_59 = arith.constant 0 : index
    %c0_60 = arith.constant 0 : index
    %82 = vector.load %arg2[%c8, %c0_59, %c0_60] : memref<9x16x64xbf16, #tpu.memory_space<vmem>>, vector<1x16x64xbf16>
    %83 = vector.shape_cast %82 : vector<1x16x64xbf16> to vector<16x64xbf16>
    %cst_61 = arith.constant dense<0.000000e+00> : vector<16x128xf32>
    %84 = tpu.matmul %83, %16, %cst_61 {dimension_numbers = #tpu.dot_dimension_numbers<[1], [0], [0], [1], [0, 0, 1, 1], [], []>} : vector<16x64xbf16>, vector<64x128xbf16>, vector<16x128xf32> -> vector<16x128xf32>
    %c8_62 = arith.constant 8 : index
    %c0_63 = arith.constant 0 : index
    %c0_64 = arith.constant 0 : index
    %85 = vector.load %arg6[%c8_62, %c0_63, %c0_64] : memref<9x1x128xf32, #tpu.memory_space<vmem>>, vector<1x1x128xf32>
    %86 = vector.shape_cast %85 : vector<1x1x128xf32> to vector<1x128xf32>
    %87 = vector.broadcast %86 : vector<1x128xf32> to vector<16x128xf32>
    %88 = arith.mulf %84, %87 : vector<16x128xf32>
    %89 = arith.addf %81, %88 : vector<16x128xf32>
    %c0_65 = arith.constant 0 : index
    %c0_66 = arith.constant 0 : index
    %90 = vector.load %arg7[%c0_65, %c0_66] : memref<1x128xf32, #tpu.memory_space<vmem>>, vector<1x128xf32>
    %91 = vector.broadcast %90 : vector<1x128xf32> to vector<16x128xf32>
    %92 = arith.mulf %89, %91 : vector<16x128xf32>
    %c0_67 = arith.constant 0 : index
    %c0_68 = arith.constant 0 : index
    %93 = vector.load %arg8[%c0_67, %c0_68] : memref<1x128xf32, #tpu.memory_space<vmem>>, vector<1x128xf32>
    %94 = vector.broadcast %93 : vector<1x128xf32> to vector<16x128xf32>
    %95 = arith.addf %92, %94 : vector<16x128xf32>
    %96 = arith.negf %95 : vector<16x128xf32>
    %97 = math.exp %96 : vector<16x128xf32>
    %cst_69 = arith.constant 1.000000e+00 : f32
    %98 = vector.broadcast %cst_69 : f32 to vector<16x128xf32>
    %99 = arith.addf %98, %97 : vector<16x128xf32>
    %100 = arith.divf %98, %99 : vector<16x128xf32>
    %101 = arith.mulf %95, %100 : vector<16x128xf32>
    %cst_70 = arith.constant dense<0.000000e+00> : vector<128xf32>
    %102 = vector.multi_reduction <add>, %101, %cst_70 [0] : vector<16x128xf32> to vector<128xf32>
    %103 = vector.shape_cast %102 : vector<128xf32> to vector<1x128xf32>
    %cst_71 = arith.constant 1.600000e+01 : f32
    %104 = vector.broadcast %cst_71 : f32 to vector<1x128xf32>
    %105 = arith.divf %103, %104 : vector<1x128xf32>
    %106 = arith.truncf %105 : vector<1x128xf32> to vector<1x128xbf16>
    %c0_72 = arith.constant 0 : index
    %c0_73 = arith.constant 0 : index
    %107 = vector.load %arg9[%c0_72, %c0_73] : memref<128x128xbf16, #tpu.memory_space<vmem>>, vector<128x128xbf16>
    %cst_74 = arith.constant dense<0.000000e+00> : vector<1x128xf32>
    %108 = tpu.matmul %106, %107, %cst_74 {dimension_numbers = #tpu.dot_dimension_numbers<[1], [0], [0], [1], [0, 0, 1, 1], [], []>} : vector<1x128xbf16>, vector<128x128xbf16>, vector<1x128xf32> -> vector<1x128xf32>
    %c0_75 = arith.constant 0 : index
    %c0_76 = arith.constant 0 : index
    %109 = vector.load %arg10[%c0_75, %c0_76] : memref<1x128xf32, #tpu.memory_space<vmem>>, vector<1x128xf32>
    %110 = arith.addf %108, %109 : vector<1x128xf32>
    %111 = arith.negf %110 : vector<1x128xf32>
    %112 = math.exp %111 : vector<1x128xf32>
    %cst_77 = arith.constant 1.000000e+00 : f32
    %113 = vector.broadcast %cst_77 : f32 to vector<1x128xf32>
    %114 = arith.addf %113, %112 : vector<1x128xf32>
    %115 = arith.divf %113, %114 : vector<1x128xf32>
    %116 = arith.mulf %110, %115 : vector<1x128xf32>
    %117 = arith.truncf %116 : vector<1x128xf32> to vector<1x128xbf16>
    %c0_78 = arith.constant 0 : index
    %c0_79 = arith.constant 0 : index
    %118 = vector.load %arg11[%c0_78, %c0_79] : memref<128x128xbf16, #tpu.memory_space<vmem>>, vector<128x128xbf16>
    %cst_80 = arith.constant dense<0.000000e+00> : vector<1x128xf32>
    %119 = tpu.matmul %117, %118, %cst_80 {dimension_numbers = #tpu.dot_dimension_numbers<[1], [0], [0], [1], [0, 0, 1, 1], [], []>} : vector<1x128xbf16>, vector<128x128xbf16>, vector<1x128xf32> -> vector<1x128xf32>
    %c0_81 = arith.constant 0 : index
    %c0_82 = arith.constant 0 : index
    %120 = vector.load %arg12[%c0_81, %c0_82] : memref<1x128xf32, #tpu.memory_space<vmem>>, vector<1x128xf32>
    %121 = arith.addf %119, %120 : vector<1x128xf32>
    %122 = arith.negf %121 : vector<1x128xf32>
    %123 = math.exp %122 : vector<1x128xf32>
    %cst_83 = arith.constant 1.000000e+00 : f32
    %124 = vector.broadcast %cst_83 : f32 to vector<1x128xf32>
    %125 = arith.addf %124, %123 : vector<1x128xf32>
    %126 = arith.divf %124, %125 : vector<1x128xf32>
    %127 = vector.broadcast %126 : vector<1x128xf32> to vector<16x128xf32>
    %128 = arith.mulf %101, %127 : vector<16x128xf32>
    %129 = arith.truncf %128 : vector<16x128xf32> to vector<16x128xbf16>
    %c0_84 = arith.constant 0 : index
    %c0_85 = arith.constant 0 : index
    %130 = vector.load %arg13[%c0_84, %c0_85] : memref<128x128xbf16, #tpu.memory_space<vmem>>, vector<128x128xbf16>
    %cst_86 = arith.constant dense<0.000000e+00> : vector<16x128xf32>
    %131 = tpu.matmul %129, %130, %cst_86 {dimension_numbers = #tpu.dot_dimension_numbers<[1], [0], [0], [1], [0, 0, 1, 1], [], []>} : vector<16x128xbf16>, vector<128x128xbf16>, vector<16x128xf32> -> vector<16x128xf32>
    %c0_87 = arith.constant 0 : index
    %c0_88 = arith.constant 0 : index
    %132 = vector.load %arg14[%c0_87, %c0_88] : memref<1x128xf32, #tpu.memory_space<vmem>>, vector<1x128xf32>
    %133 = vector.broadcast %132 : vector<1x128xf32> to vector<16x128xf32>
    %134 = arith.mulf %131, %133 : vector<16x128xf32>
    %c0_89 = arith.constant 0 : index
    %c0_90 = arith.constant 0 : index
    %135 = vector.load %arg15[%c0_89, %c0_90] : memref<1x128xf32, #tpu.memory_space<vmem>>, vector<1x128xf32>
    %136 = vector.broadcast %135 : vector<1x128xf32> to vector<16x128xf32>
    %137 = arith.addf %134, %136 : vector<16x128xf32>
    %138 = arith.truncf %137 : vector<16x128xf32> to vector<16x128xbf16>
    %c0_91 = arith.constant 0 : index
    %c0_92 = arith.constant 0 : index
    %c0_93 = arith.constant 0 : index
    %139 = vector.load %arg16[%c0_91, %c0_92, %c0_93] : memref<1x16x128xbf16, #tpu.memory_space<vmem>>, vector<1x16x128xbf16>
    %140 = vector.shape_cast %139 : vector<1x16x128xbf16> to vector<16x128xbf16>
    %141 = vector.shape_cast %138 : vector<16x128xbf16> to vector<1x16x128xbf16>
    tpu.vector_store %arg16[%c0_91, %c0_92, %c0_93], %141 {strides = array<i32>} : memref<1x16x128xbf16, #tpu.memory_space<vmem>>, vector<1x16x128xbf16>,
    return
  }
  func.func @transform_0(%arg0: i32) -> (i32, i32, i32) {
    %c0_i32 = arith.constant 0 : i32
    %c0_i32_0 = arith.constant 0 : i32
    %c0_i32_1 = arith.constant 0 : i32
    return %arg0, %c0_i32, %c0_i32_0 : i32, i32, i32
  }
  func.func @transform_1(%arg0: i32) -> (i32, i32, i32) {
    %c0_i32 = arith.constant 0 : i32
    %c0_i32_0 = arith.constant 0 : i32
    %c0_i32_1 = arith.constant 0 : i32
    %c0_i32_2 = arith.constant 0 : i32
    return %c0_i32, %c0_i32_0, %c0_i32_1 : i32, i32, i32
  }
  func.func @transform_2(%arg0: i32) -> (i32, i32) {
    %c0_i32 = arith.constant 0 : i32
    %c0_i32_0 = arith.constant 0 : i32
    %c0_i32_1 = arith.constant 0 : i32
    return %c0_i32, %c0_i32_0 : i32, i32
  }
  func.func @transform_3(%arg0: i32) -> (i32, i32) {
    %c0_i32 = arith.constant 0 : i32
    %c0_i32_0 = arith.constant 0 : i32
    %c0_i32_1 = arith.constant 0 : i32
    return %c0_i32, %c0_i32_0 : i32, i32
  }
  func.func @transform_4(%arg0: i32) -> (i32, i32) {
    %c0_i32 = arith.constant 0 : i32
    %c0_i32_0 = arith.constant 0 : i32
    %c0_i32_1 = arith.constant 0 : i32
    return %c0_i32, %c0_i32_0 : i32, i32
  }
  func.func @transform_5(%arg0: i32) -> (i32, i32, i32) {
    %c0_i32 = arith.constant 0 : i32
    %c0_i32_0 = arith.constant 0 : i32
    %c0_i32_1 = arith.constant 0 : i32
    %c0_i32_2 = arith.constant 0 : i32
    return %c0_i32, %c0_i32_0, %c0_i32_1 : i32, i32, i32
  }
  func.func @transform_6(%arg0: i32) -> (i32, i32) {
    %c0_i32 = arith.constant 0 : i32
    %c0_i32_0 = arith.constant 0 : i32
    %c0_i32_1 = arith.constant 0 : i32
    return %c0_i32, %c0_i32_0 : i32, i32
  }
  func.func @transform_7(%arg0: i32) -> (i32, i32) {
    %c0_i32 = arith.constant 0 : i32
    %c0_i32_0 = arith.constant 0 : i32
    %c0_i32_1 = arith.constant 0 : i32
    return %c0_i32, %c0_i32_0 : i32, i32
  }
  func.func @transform_8(%arg0: i32) -> (i32, i32) {
    %c0_i32 = arith.constant 0 : i32
    %c0_i32_0 = arith.constant 0 : i32
    %c0_i32_1 = arith.constant 0 : i32
    return %c0_i32, %c0_i32_0 : i32, i32
  }
  func.func @transform_9(%arg0: i32) -> (i32, i32) {
    %c0_i32 = arith.constant 0 : i32
    %c0_i32_0 = arith.constant 0 : i32
    %c0_i32_1 = arith.constant 0 : i32
    return %c0_i32, %c0_i32_0 : i32, i32
  }
  func.func @transform_10(%arg0: i32) -> (i32, i32) {
    %c0_i32 = arith.constant 0 : i32
    %c0_i32_0 = arith.constant 0 : i32
    %c0_i32_1 = arith.constant 0 : i32
    return %c0_i32, %c0_i32_0 : i32, i32
  }
  func.func @transform_11(%arg0: i32) -> (i32, i32) {
    %c0_i32 = arith.constant 0 : i32
    %c0_i32_0 = arith.constant 0 : i32
    %c0_i32_1 = arith.constant 0 : i32
    return %c0_i32, %c0_i32_0 : i32, i32
  }
  func.func @transform_12(%arg0: i32) -> (i32, i32) {
    %c0_i32 = arith.constant 0 : i32
    %c0_i32_0 = arith.constant 0 : i32
    %c0_i32_1 = arith.constant 0 : i32
    return %c0_i32, %c0_i32_0 : i32, i32
  }
  func.func @transform_13(%arg0: i32) -> (i32, i32) {
    %c0_i32 = arith.constant 0 : i32
    %c0_i32_0 = arith.constant 0 : i32
    %c0_i32_1 = arith.constant 0 : i32
    return %c0_i32, %c0_i32_0 : i32, i32
  }
  func.func @transform_14(%arg0: i32) -> (i32, i32) {
    %c0_i32 = arith.constant 0 : i32
    %c0_i32_0 = arith.constant 0 : i32
    %c0_i32_1 = arith.constant 0 : i32
    return %c0_i32, %c0_i32_0 : i32, i32
  }
  func.func @transform_15(%arg0: i32) -> (i32, i32, i32) {
    %c0_i32 = arith.constant 0 : i32
    %c0_i32_0 = arith.constant 0 : i32
    %c0_i32_1 = arith.constant 0 : i32
    return %arg0, %c0_i32, %c0_i32_0 : i32, i32, i32
  }
}

module attributes {stable_mosaic.version = 11 : i64} {
  func.func @_head_kernel(%arg0: i32, %arg1: memref<1x16x128xbf16, #tpu.memory_space<vmem>>, %arg2: memref<128x128xbf16, #tpu.memory_space<vmem>>, %arg3: memref<1x128xf32, #tpu.memory_space<vmem>>, %arg4: memref<1x128xf32, #tpu.memory_space<vmem>>, %arg5: memref<128x128xbf16, #tpu.memory_space<vmem>>, %arg6: memref<1x128xf32, #tpu.memory_space<vmem>>, %arg7: memref<1x8x128xf32, #tpu.memory_space<vmem>>) attributes {dimension_semantics = [#tpu.dimension_semantics<parallel>], iteration_bounds = array<i64: 2>, scalar_prefetch = 0 : i64, scratch_operands = 0 : i64, tpu.core_type = #tpu.core_type<tc>, window_params = [{transform_indices = @transform_0, window_bounds = array<i64: 1, 16, 128>}, {pipeline_mode = #tpu.pipeline_mode<synchronous>, transform_indices = @transform_1, window_bounds = array<i64: 128, 128>}, {pipeline_mode = #tpu.pipeline_mode<synchronous>, transform_indices = @transform_2, window_bounds = array<i64: 1, 128>}, {pipeline_mode = #tpu.pipeline_mode<synchronous>, transform_indices = @transform_3, window_bounds = array<i64: 1, 128>}, {pipeline_mode = #tpu.pipeline_mode<synchronous>, transform_indices = @transform_4, window_bounds = array<i64: 128, 128>}, {pipeline_mode = #tpu.pipeline_mode<synchronous>, transform_indices = @transform_5, window_bounds = array<i64: 1, 128>}, {transform_indices = @transform_6, window_bounds = array<i64: 1, 8, 128>}]} {
    %c0 = arith.constant 0 : index
    %c0_0 = arith.constant 0 : index
    %c0_1 = arith.constant 0 : index
    %0 = vector.load %arg1[%c0, %c0_0, %c0_1] : memref<1x16x128xbf16, #tpu.memory_space<vmem>>, vector<1x16x128xbf16>
    %1 = vector.shape_cast %0 : vector<1x16x128xbf16> to vector<16x128xbf16>
    %c0_2 = arith.constant 0 : index
    %c0_3 = arith.constant 0 : index
    %2 = vector.load %arg2[%c0_2, %c0_3] : memref<128x128xbf16, #tpu.memory_space<vmem>>, vector<128x128xbf16>
    %cst = arith.constant dense<0.000000e+00> : vector<16x128xf32>
    %3 = tpu.matmul %1, %2, %cst {dimension_numbers = #tpu.dot_dimension_numbers<[1], [0], [0], [1], [0, 0, 1, 1], [], []>} : vector<16x128xbf16>, vector<128x128xbf16>, vector<16x128xf32> -> vector<16x128xf32>
    %c0_4 = arith.constant 0 : index
    %c0_5 = arith.constant 0 : index
    %4 = vector.load %arg3[%c0_4, %c0_5] : memref<1x128xf32, #tpu.memory_space<vmem>>, vector<1x128xf32>
    %5 = vector.broadcast %4 : vector<1x128xf32> to vector<16x128xf32>
    %6 = arith.mulf %3, %5 : vector<16x128xf32>
    %c0_6 = arith.constant 0 : index
    %c0_7 = arith.constant 0 : index
    %7 = vector.load %arg4[%c0_6, %c0_7] : memref<1x128xf32, #tpu.memory_space<vmem>>, vector<1x128xf32>
    %8 = vector.broadcast %7 : vector<1x128xf32> to vector<16x128xf32>
    %9 = arith.addf %6, %8 : vector<16x128xf32>
    %10 = arith.negf %9 : vector<16x128xf32>
    %11 = math.exp %10 : vector<16x128xf32>
    %cst_8 = arith.constant 1.000000e+00 : f32
    %12 = vector.broadcast %cst_8 : f32 to vector<16x128xf32>
    %13 = arith.addf %12, %11 : vector<16x128xf32>
    %14 = arith.divf %12, %13 : vector<16x128xf32>
    %15 = arith.mulf %9, %14 : vector<16x128xf32>
    %cst_9 = arith.constant dense<0.000000e+00> : vector<128xf32>
    %16 = vector.multi_reduction <add>, %15, %cst_9 [0] : vector<16x128xf32> to vector<128xf32>
    %17 = vector.shape_cast %16 : vector<128xf32> to vector<1x128xf32>
    %cst_10 = arith.constant 1.600000e+01 : f32
    %18 = vector.broadcast %cst_10 : f32 to vector<1x128xf32>
    %19 = arith.divf %17, %18 : vector<1x128xf32>
    %20 = arith.truncf %19 : vector<1x128xf32> to vector<1x128xbf16>
    %c0_11 = arith.constant 0 : index
    %c0_12 = arith.constant 0 : index
    %21 = vector.load %arg5[%c0_11, %c0_12] : memref<128x128xbf16, #tpu.memory_space<vmem>>, vector<128x128xbf16>
    %cst_13 = arith.constant dense<0.000000e+00> : vector<1x128xf32>
    %22 = tpu.matmul %20, %21, %cst_13 {dimension_numbers = #tpu.dot_dimension_numbers<[1], [0], [0], [1], [0, 0, 1, 1], [], []>} : vector<1x128xbf16>, vector<128x128xbf16>, vector<1x128xf32> -> vector<1x128xf32>
    %c0_14 = arith.constant 0 : index
    %c0_15 = arith.constant 0 : index
    %23 = vector.load %arg6[%c0_14, %c0_15] : memref<1x128xf32, #tpu.memory_space<vmem>>, vector<1x128xf32>
    %24 = arith.addf %22, %23 : vector<1x128xf32>
    %25 = vector.shape_cast %24 : vector<1x128xf32> to vector<1x128xf32>
    %26 = vector.broadcast %25 : vector<1x128xf32> to vector<8x128xf32>
    %c0_16 = arith.constant 0 : index
    %c0_17 = arith.constant 0 : index
    %c0_18 = arith.constant 0 : index
    %27 = vector.load %arg7[%c0_16, %c0_17, %c0_18] : memref<1x8x128xf32, #tpu.memory_space<vmem>>, vector<1x8x128xf32>
    %28 = vector.shape_cast %27 : vector<1x8x128xf32> to vector<8x128xf32>
    %29 = vector.shape_cast %26 : vector<8x128xf32> to vector<1x8x128xf32>
    tpu.vector_store %arg7[%c0_16, %c0_17, %c0_18], %29 {strides = array<i32>} : memref<1x8x128xf32, #tpu.memory_space<vmem>>, vector<1x8x128xf32>,
    return
  }
  func.func @transform_0(%arg0: i32) -> (i32, i32, i32) {
    %c0_i32 = arith.constant 0 : i32
    %c0_i32_0 = arith.constant 0 : i32
    %c0_i32_1 = arith.constant 0 : i32
    return %arg0, %c0_i32, %c0_i32_0 : i32, i32, i32
  }
  func.func @transform_1(%arg0: i32) -> (i32, i32) {
    %c0_i32 = arith.constant 0 : i32
    %c0_i32_0 = arith.constant 0 : i32
    %c0_i32_1 = arith.constant 0 : i32
    return %c0_i32, %c0_i32_0 : i32, i32
  }
  func.func @transform_2(%arg0: i32) -> (i32, i32) {
    %c0_i32 = arith.constant 0 : i32
    %c0_i32_0 = arith.constant 0 : i32
    %c0_i32_1 = arith.constant 0 : i32
    return %c0_i32, %c0_i32_0 : i32, i32
  }
  func.func @transform_3(%arg0: i32) -> (i32, i32) {
    %c0_i32 = arith.constant 0 : i32
    %c0_i32_0 = arith.constant 0 : i32
    %c0_i32_1 = arith.constant 0 : i32
    return %c0_i32, %c0_i32_0 : i32, i32
  }
  func.func @transform_4(%arg0: i32) -> (i32, i32) {
    %c0_i32 = arith.constant 0 : i32
    %c0_i32_0 = arith.constant 0 : i32
    %c0_i32_1 = arith.constant 0 : i32
    return %c0_i32, %c0_i32_0 : i32, i32
  }
  func.func @transform_5(%arg0: i32) -> (i32, i32) {
    %c0_i32 = arith.constant 0 : i32
    %c0_i32_0 = arith.constant 0 : i32
    %c0_i32_1 = arith.constant 0 : i32
    return %c0_i32, %c0_i32_0 : i32, i32
  }
  func.func @transform_6(%arg0: i32) -> (i32, i32, i32) {
    %c0_i32 = arith.constant 0 : i32
    %c0_i32_0 = arith.constant 0 : i32
    %c0_i32_1 = arith.constant 0 : i32
    return %arg0, %c0_i32, %c0_i32_0 : i32, i32, i32
  }
}

</mosaic_0001>

<bundles_post_ra>
// kernel: mango_net_forward.7
= control target key start
LH: loop header
LB: loop body
LE: loop exit
PB: predicated region body
PF: predicated region fallthrough
CT: control target
= control target key end

     0   :  { %s739_s21 = smov 0   ;;  %s820_s0 = inlined_call_operand.vmem [shape: bf16[2,16,128], index: 0, kind: input, shape index: {}]   ;;  %s821_s1 = inlined_call_operand.vmem [shape: bf16[128,128], index: 1, kind: input, shape index: {}]   ;;  %s822_s2 = inlined_call_operand.vmem [shape: f32[1,128], index: 2, kind: input, shape index: {}]   ;;  %s823_s3 = inlined_call_operand.vmem [shape: f32[1,128], index: 3, kind: input, shape index: {}]   ;;  %s824_s4 = inlined_call_operand.vmem [shape: bf16[128,128], index: 4, kind: input, shape index: {}]   ;;  %s825_s5 = inlined_call_operand.vmem [shape: f32[1,128], index: 5, kind: input, shape index: {}]   ;;  %s826_s6 = inlined_call_operand.vmem [shape: f32[2,8,128], index: 6, kind: output, shape index: {}]  }
   0x1 LB: > { %s569_s22 = sadd.s32 4294967295, %s700_s21   ;;  %p573_p0 = scmp.ge.s32.totalorder %s700_s21, 1  ;;  %s700_s21 = sphi %s739_s21, %s16_s21  }
   0x2   : > { %p212_p1 = scmp.lt.s32.totalorder %s700_s21, 3 }
   0x4   : > { %p213_p2 = pnand %p573_p0, %p212_p1 }
   0x5   : > { %p241_p3 = scmp.lt.s32.totalorder (!%p213_p2), %s569_s22, 1 }
   0x6   : > { %216 = sbr.rel (%p213_p2) target bundleno = 496 (0x1f0), region = 44 }
   0xb   : > { %v669_v0 = vld [vmem:[%s821_s1 + $0x38] sm:$0xff]   ;;  %v702_v1 = vmov 0.0   ;;  %v670_v2 = vld [vmem:[%s821_s1 + $0x30] sm:$0xff]   ;;  %vm703_vm0 = vmmov 0   ;;  %s828_s22 = smov (!%p241_p3, %s569_s22), 1  ;;  %v671_v3 = vld [vmem:[%s821_s1 + $0x28] sm:$0xff]   ;;  %v511_v47 = vlaneseq }
   0xc   : > { %619 = vmatprep.subr.bf16.mxu0 %v702_v1  ;;  %639 = vmatprep.subr.bf16.mxu1 %v702_v1  ;;  %s600_s29 = sshll.u32 %s828_s22, 3  ;;  %v672_v4 = vld [vmem:[%s821_s1 + $0x20] sm:$0xff]   ;;  %v673_v5 = vld [vmem:[%s821_s1 + $0x18] sm:$0xff]   ;;  %v674_v6 = vld [vmem:[%s821_s1 + $0x10] sm:$0xff]  }
   0xd   : > { %620 = vmatpush3.bf16.msra.mxu0 %v669_v0  ;;  %635 = vmatprep.mubr.msk.bf16.mxu0 %vm703_vm0, %v702_v1  ;;  %s245_s8 = scalar_lea.vmem %s820_s0, %s600_s29  ;;  %v675_v7 = vld [vmem:[%s821_s1 + $0x8] sm:$0xff]   ;;  %v676_v8 = vld [vmem:[%s821_s1] sm:$0xff]   ;;  %v678_v10 = vld [vmem:[%s824_s4 + $0x38] sm:$0xff]   ;;  %v512_v48 = vshrl.u32 %v511_v47, 7  ;;  %s249_s24 = scalar_lea.vmem %s826_s6, %s600_s29 }
   0xe   : > { %621 = vmatprep.subr.bf16.mxu0 %v702_v1  ;;  %655 = vmatprep.mubr.msk.bf16.mxu1 %vm703_vm0, %v702_v1  ;;  %v677_v9 = vld [vmem:[%s245_s8] sm:$0xff]   ;;  %v679_v11 = vld [vmem:[%s824_s4 + $0x30] sm:$0xff]   ;;  %v680_v12 = vld [vmem:[%s824_s4 + $0x28] sm:$0xff]  }
   0xf   : > { %640 = vmatpush3.bf16.msra.mxu1 %v678_v10  ;;  %v681_v13 = vld [vmem:[%s824_s4 + $0x20] sm:$0xff]   ;;  %v682_v14 = vld [vmem:[%s824_s4 + $0x18] sm:$0xff]   ;;  %v683_v15 = vld [vmem:[%s824_s4 + $0x10] sm:$0xff]   ;;  %v513_v50 = vsub.s32 0, %v512_v48 }
  0x10   : > { %641 = vmatprep.subr.bf16.mxu1 %v702_v1  ;;  %v684_v16 = vld [vmem:[%s824_s4 + $0x8] sm:$0xff]   ;;  %v685_v17 = vld [vmem:[%s824_s4] sm:$0xff]  }
  0x11   : > { %622 = vmatpush3.bf16.msra.mxu0 %v670_v2  ;;  %v586_v18 = vld [vmem:[%s822_s2] ss:$0 sm:$0xff] }
  0x12   : > { %623 = vmatprep.subr.bf16.mxu0 %v702_v1  ;;  %v587_v20 = vld [vmem:[%s823_s3] ss:$0 sm:$0xff] }
  0x13   : > { %642 = vmatpush3.bf16.msra.mxu1 %v679_v11  ;;  %v422_v49 = vld [vmem:[%s825_s5] sm:$0x1] }
  0x14   : > { %643 = vmatprep.subr.bf16.mxu1 %v702_v1 }
  0x15   : > { %624 = vmatpush3.bf16.msra.mxu0 %v671_v3 }
  0x16   : > { %625 = vmatprep.subr.bf16.mxu0 %v702_v1 }
  0x17   : > { %644 = vmatpush3.bf16.msra.mxu1 %v680_v12 }
  0x18   : > { %645 = vmatprep.subr.bf16.mxu1 %v702_v1 }
  0x19   : > { %626 = vmatpush3.bf16.msra.mxu0 %v672_v4 }
  0x1a   : > { %627 = vmatprep.subr.bf16.mxu0 %v702_v1 }
  0x1b   : > { %646 = vmatpush3.bf16.msra.mxu1 %v681_v13 }
  0x1c   : > { %647 = vmatprep.subr.bf16.mxu1 %v702_v1 }
  0x1d   : > { %628 = vmatpush3.bf16.msra.mxu0 %v673_v5 }
  0x1e   : > { %629 = vmatprep.subr.bf16.mxu0 %v702_v1 }
  0x1f   : > { %648 = vmatpush3.bf16.msra.mxu1 %v682_v14 }
  0x20   : > { %649 = vmatprep.subr.bf16.mxu1 %v702_v1 }
  0x21   : > { %630 = vmatpush3.bf16.msra.mxu0 %v674_v6 }
  0x22   : > { %631 = vmatprep.subr.bf16.mxu0 %v702_v1 }
  0x23   : > { %650 = vmatpush3.bf16.msra.mxu1 %v683_v15 }
  0x24   : > { %651 = vmatprep.subr.bf16.mxu1 %v702_v1 }
  0x25   : > { %632 = vmatpush3.bf16.msra.mxu0 %v675_v7 }
  0x26   : > { %633 = vmatprep.subr.bf16.mxu0 %v702_v1 }
  0x27   : > { %652 = vmatpush3.bf16.msra.mxu1 %v684_v16 }
  0x28   : > { %653 = vmatprep.subr.bf16.mxu1 %v702_v1 }
  0x29   : > { %634 = vmatpush3.bf16.msra.mxu0 %v676_v8 }
  0x2b   : > { %654 = vmatpush3.bf16.msra.mxu1 %v685_v17 }
  0x2c   : > { %636 = vmatmul.mubr.bf16.vlgmr.msra.gmra.mxu0 %v677_v9 }
  0xec   : > { %v357_v19 = vpop.f32.mrf.mxu0 }
  0xed   : > { %v371_v21 = vmul.f32 %v586_v18, %v357_v19 }
  0xee   : > { %v637_v22 = vpop.f32.mrf.mxu0 }
  0xef   : > { %v380_v23 = vadd.f32 %v587_v20, %v371_v21 }
  0xf0   : > { %v360_v24 = vpop.f32.mrf.mxu0 }
  0xf1   : > { %v588_v25 = vmul.f32 -1.442695, %v380_v23  ;;  %v372_v26 = vmul.f32 %v586_v18, %v360_v24 }
  0xf2   : > { %v638_v27 = vpop.f32.mrf.mxu0 }
  0xf3   : > { %686 = vpow2.f32 %v588_v25  ;;  %v381_v28 = vadd.f32 %v587_v20, %v372_v26 }
  0xf5   : > { %v589_v29 = vmul.f32 -1.442695, %v381_v28 }
  0xf7   : > { %688 = vpow2.f32 %v589_v29 }
 0x100   : > { %v687_v30 = vpop.eup %686 }
 0x101   : > { %v388_v31 = vadd.f32 1.0, %v687_v30 }
 0x103   : > { %690 = vrcp.f32 %v388_v31 }
 0x104   : > { %v689_v32 = vpop.eup %688 }
 0x105   : > { %v389_v33 = vadd.f32 1.0, %v689_v32 }
 0x107   : > { %692 = vrcp.f32 %v389_v33 }
 0x110   : > { %v691_v34 = vpop.eup %690 }
 0x111   : > { %v394_v36 = vmul.f32 %v691_v34, %v380_v23 }
 0x114   : > { %v693_v35 = vpop.eup %692 }
 0x115   : > { %v395_v37 = vmul.f32 %v693_v35, %v381_v28 }
 0x117   : > { %v396_v38 = vadd.f32 %v395_v37, %v394_v36 }
 0x119   : > { %v397_v39 = vrot.slane %v396_v38, 4 }
 0x11b   : > { %v398_v40 = vadd.f32 %v397_v39, %v396_v38 }
 0x11d   : > { %v399_v41 = vrot.slane %v398_v40, 2 }
 0x11f   : > { %v400_v42 = vadd.f32 %v399_v41, %v398_v40 }
 0x121   : > { %v401_v43 = vrot.slane %v400_v42, 1 }
 0x123   : > { %v402_v44 = vadd.f32 %v401_v43, %v400_v42 }
 0x125   : > { %v404_v45 = vmul.f32 0.0625, %v402_v44 }
 0x127   : > { %v405_v46 = vpack.c.bf16 %v404_v45, %v404_v45 }
 0x129   : > { %656 = vmatmul.mubr.bf16.vlgmr.msra.gmra.mxu1 %v405_v46 }
 0x1e9   : > { %v505_v51 = vpop.f32.mrf.mxu1 }
 0x1ea   : > { %v506_v52 = vadd.f32 %v505_v51, %v422_v49 }
 0x1eb   : > { %v657_v53 = vpop.f32.mrf.mxu1 }
 0x1ec   : > { %v514_v54 = vrot.slane %v506_v52, %v513_v50 }
 0x1ed   : > { %v508_v55 = vpop.f32.mrf.mxu1 }
 0x1ee   : > { %515 = vst [vmem:[%s249_s24] sm:$0xff] %v514_v54 }
 0x1ef   : > { %v658_v56 = vpop.f32.mrf.mxu1 }
 0x1f0 PF: > { %s16_s21 = sadd.s32 1, %s700_s21  }
 0x1f1   : > { %p13_p4 = scmp.ge.s32.totalorder %s16_s21, 4  }
 0x1f3   :  { %15 = sbr.rel (!%p13_p4) target bundleno = 1 (0x1), region = 74 }

// kernel: mango_net_forward.6
= control target key start
LH: loop header
LB: loop body
LE: loop exit
PB: predicated region body
PF: predicated region fallthrough
CT: control target
= control target key end

     0   :  { %s2379_s18 = smov 0   ;;  %s2735_s0 = inlined_call_operand.vmem [shape: bf16[2,64,128], index: 0, kind: input, shape index: {}]   ;;  %s2736_s1 = inlined_call_operand.vmem [shape: bf16[9,16,64], index: 1, kind: input, shape index: {}]   ;;  %s2737_s2 = inlined_call_operand.vmem [shape: bf16[128,128], index: 2, kind: input, shape index: {}]   ;;  %s2738_s3 = inlined_call_operand.vmem [shape: f32[1,128], index: 3, kind: input, shape index: {}]   ;;  %s2739_s4 = inlined_call_operand.vmem [shape: f32[1,128], index: 4, kind: input, shape index: {}]   ;;  %s2740_s5 = inlined_call_operand.vmem [shape: f32[9,1,128], index: 5, kind: input, shape index: {}]   ;;  %s2741_s6 = inlined_call_operand.vmem [shape: f32[1,128], index: 6, kind: input, shape index: {}]   ;;  %s2742_s7 = inlined_call_operand.vmem [shape: f32[1,128], index: 7, kind: input, shape index: {}]   ;;  %s2743_s8 = inlined_call_operand.vmem [shape: bf16[128,128], index: 8, kind: input, shape index: {}]   ;;  %s2744_s9 = inlined_call_operand.vmem [shape: f32[1,128], index: 9, kind: input, shape index: {}]   ;;  %s2745_s10 = inlined_call_operand.vmem [shape: bf16[128,128], index: 10, kind: input, shape index: {}]   ;;  %s2746_s11 = inlined_call_operand.vmem [shape: f32[1,128], index: 11, kind: input, shape index: {}]   ;;  %s2747_s12 = inlined_call_operand.vmem [shape: bf16[128,128], index: 12, kind: input, shape index: {}]   ;;  %s2748_s13 = inlined_call_operand.vmem [shape: f32[1,128], index: 13, kind: input, shape index: {}]   ;;  %s2749_s14 = inlined_call_operand.vmem [shape: f32[1,128], index: 14, kind: input, shape index: {}]   ;;  %s2750_s15 = inlined_call_operand.vmem [shape: bf16[2,16,128], index: 15, kind: output, shape index: {}]  }
   0x1 LB: > { %s1783_s19 = sadd.s32 4294967295, %s2295_s18   ;;  %p1787_p0 = scmp.ge.s32.totalorder %s2295_s18, 1  ;;  %s2295_s18 = sphi %s2379_s18, %s25_s18  }
   0x2   : > { %p437_p1 = scmp.lt.s32.totalorder %s2295_s18, 3 }
   0x4   : > { %p438_p2 = pnand %p1787_p0, %p437_p1 }
   0x5   : > { %p485_p3 = scmp.lt.s32.totalorder (!%p438_p2), %s1783_s19, 1 }
   0x6   : > { %441 = sbr.rel (%p438_p2) target bundleno = 1295 (0x50f), region = 80 }
   0xb   : > { %v2196_v0 = vld [vmem:[%s2737_s2 + $0x38] sm:$0xff]   ;;  %v2197_v1 = vld [vmem:[%s2737_s2 + $0x30] sm:$0xff]   ;;  %s2752_s19 = smov (!%p485_p3, %s1783_s19), 1  ;;  %v2198_v2 = vld [vmem:[%s2737_s2 + $0x28] sm:$0xff]   ;;  %v2297_v12 = vmov 0.0   ;;  %vm2298_vm0 = vmmov 0  }
   0xc   : > { %1994 = vmatprep.subr.bf16.mxu0 %v2196_v0  ;;  %s1901_s26 = sshll.u32 %s2752_s19, 5  ;;  %v2199_v3 = vld [vmem:[%s2737_s2 + $0x20] sm:$0xff]   ;;  %v2200_v5 = vld [vmem:[%s2737_s2 + $0x18] sm:$0xff]   ;;  %v2201_v6 = vld [vmem:[%s2737_s2 + $0x10] sm:$0xff]   ;;  %2018 = vmatprep.subr.bf16.mxu1 %v2297_v12  ;;  %vm754_vm1 = vcmask 523264   ;;  %s1902_s23 = sshll.u32 %s2752_s19, 3 }
   0xd   : > { %1995 = vmatpush3.bf16.msra.mxu0 %v2196_v0  ;;  %s489_s29 = scalar_lea.vmem %s2735_s0, %s1901_s26  ;;  %v2202_v7 = vld [vmem:[%s2737_s2 + $0x8] sm:$0xff]   ;;  %v2203_v8 = vld [vmem:[%s2737_s2] sm:$0xff]   ;;  %2026 = vmatprep.mubr.msk.bf16.mxu1 %vm2298_vm0, %v2297_v12  ;;  %s494_s26 = scalar_lea.vmem %s2750_s15, %s1902_s23 }
   0xe   : > { %1996 = vmatprep.subr.bf16.mxu0 %v2197_v1  ;;  %v2204_v4 = vld [vmem:[%s489_s29] sm:$0xff]   ;;  %v2205_v9 = vld [vmem:[%s489_s29 + $0x8] sm:$0xff]   ;;  %v2206_v10 = vld [vmem:[%s489_s29 + $0x10] sm:$0xff]  }
   0xf   : > { %2010 = vmatprep.mubr.bf16.mxu0 %v2204_v4  ;;  %v2207_v11 = vld [vmem:[%s489_s29 + $0x18] sm:$0xff]   ;;  %v1804_v16 = vld [vmem:[%s2738_s3] ss:$0 sm:$0xff] }
  0x10   : > { %v1805_v21 = vld [vmem:[%s2739_s4] ss:$0 sm:$0xff] }
  0x11   : > { %1997 = vmatpush3.bf16.msra.mxu0 %v2197_v1 }
  0x12   : > { %1998 = vmatprep.subr.bf16.mxu0 %v2198_v2 }
  0x15   : > { %1999 = vmatpush3.bf16.msra.mxu0 %v2198_v2 }
  0x16   : > { %2000 = vmatprep.subr.bf16.mxu0 %v2199_v3 }
  0x19   : > { %2001 = vmatpush3.bf16.msra.mxu0 %v2199_v3 }
  0x1a   : > { %2002 = vmatprep.subr.bf16.mxu0 %v2200_v5 }
  0x1d   : > { %2003 = vmatpush3.bf16.msra.mxu0 %v2200_v5 }
  0x1e   : > { %2004 = vmatprep.subr.bf16.mxu0 %v2201_v6 }
  0x21   : > { %2005 = vmatpush3.bf16.msra.mxu0 %v2201_v6 }
  0x22   : > { %2006 = vmatprep.subr.bf16.mxu0 %v2202_v7 }
  0x25   : > { %2007 = vmatpush3.bf16.msra.mxu0 %v2202_v7 }
  0x26   : > { %2008 = vmatprep.subr.bf16.mxu0 %v2203_v8 }
  0x29   : > { %2009 = vmatpush3.bf16.msra.mxu0 %v2203_v8 }
  0x2a   : > { %2042 = vmatprep.subr.bf16.mxu0 %v2297_v12 }
  0x2c   : > { %2011 = vmatmul.mubr.bf16.vlgmr.msra.gmra.mxu0 %v2205_v9 }
  0x2d   : > { %2014 = vmatprep.mubr.bf16.mxu0 %v2206_v10 }
  0x34   : > { %2015 = vmatmul.mubr.bf16.gmra.mxu0 %v2207_v11 }
  0x35   : > { %2050 = vmatprep.mubr.msk.bf16.mxu0 %vm2298_vm0, %v2297_v12 }
  0xec   : > { %v2012_v13 = vpop.f32.mrf.mxu0 }
  0xed   : > { %v666_v19 = vmul.f32 %v2012_v13, %v1804_v16 }
  0xee   : > { %v626_v14 = vpop.f32.mrf.mxu0 }
  0xef   : > { %v2431_v28 = vadd.f32 %v1805_v21, %v666_v19  ;;  %v664_v30 = vmul.f32 %v1804_v16, %v626_v14 }
  0xf0   : > { %v2013_v15 = vpop.f32.mrf.mxu0 }
  0xf1   : > { %v667_v17 = vmul.f32 %v2013_v15, %v1804_v16  ;;  %v1808_v40 = vmul.f32 -1.442695, %v2431_v28  ;;  %v2437_v41 = vadd.f32 %v1805_v21, %v664_v30  ;;  %v2218_v30 = vld [vmem:[%s2743_s8 + $0x30] sm:$0xff]  }
  0xf2   : > { %v629_v18 = vpop.f32.mrf.mxu0 }
  0xf3   : > { %v2429_v23 = vadd.f32 %v1805_v21, %v667_v17  ;;  %v665_v24 = vmul.f32 %v1804_v16, %v629_v18  ;;  %v1806_v46 = vmul.f32 -1.442695, %v2437_v41 }
  0xf4   : > { %v2016_v20 = vpop.f32.mrf.mxu0 }
  0xf5   : > { %v670_v22 = vmul.f32 %v2016_v20, %v1804_v16  ;;  %v1809_v34 = vmul.f32 -1.442695, %v2429_v23  ;;  %v2434_v35 = vadd.f32 %v1805_v21, %v665_v24  ;;  %v2208_v20 = vld [vmem:[%s2736_s1] sm:$0xff]   ;;  %v2212_v24 = vld [vmem:[%s2736_s1 + $0x18] sm:$0xff]  }
  0xf6   : > { %v642_v25 = vpop.f32.mrf.mxu0 }
  0xf7   : > { %v685_v26 = vadd.f32 %v1805_v21, %v670_v22  ;;  %v668_v27 = vmul.f32 %v1804_v16, %v642_v25  ;;  %v1807_v44 = vmul.f32 -1.442695, %v2434_v35  ;;  %v2210_v22 = vld [vmem:[%s2736_s1 + $0x8] sm:$0xff]   ;;  %v2213_v25 = vld [vmem:[%s2736_s1 + $0x30] sm:$0xff]  }
  0xf8   : > { %v2017_v29 = vpop.f32.mrf.mxu0 }
  0xf9   : > { %v1812_v31 = vmul.f32 -1.442695, %v685_v26  ;;  %v683_v32 = vadd.f32 %v1805_v21, %v668_v27  ;;  %v671_v33 = vmul.f32 %v2017_v29, %v1804_v16  ;;  %v2215_v27 = vld [vmem:[%s2736_s1 + $0x40] sm:$0xff]   ;;  %v2217_v29 = vld [vmem:[%s2743_s8 + $0x38] sm:$0xff]  }
  0xfa   : > { %v645_v36 = vpop.f32.mrf.mxu0 }
  0xfb   : > { %2241 = vpow2.f32 %v1812_v31  ;;  %v1810_v37 = vmul.f32 -1.442695, %v683_v32  ;;  %v686_v38 = vadd.f32 %v1805_v21, %v671_v33  ;;  %v669_v39 = vmul.f32 %v1804_v16, %v645_v36  ;;  %v2219_v31 = vld [vmem:[%s2743_s8 + $0x28] sm:$0xff]   ;;  %v2221_v33 = vld [vmem:[%s2743_s8 + $0x18] sm:$0xff]   ;;  %v2224_v36 = vld [vmem:[%s2743_s8] sm:$0xff]  }
  0xfd   : > { %2243 = vpow2.f32 %v1810_v37  ;;  %v1813_v42 = vmul.f32 -1.442695, %v686_v38  ;;  %v684_v43 = vadd.f32 %v1805_v21, %v669_v39  ;;  %v2209_v21 = vld [vmem:[%s2736_s1 + $0x10] sm:$0xff]  }
  0xfe   : > { %2245 = vpow2.f32 %v1809_v34  ;;  %v2222_v34 = vld [vmem:[%s2743_s8 + $0x10] sm:$0xff]  }
  0xff   : > { %2247 = vpow2.f32 %v1813_v42  ;;  %v1811_v45 = vmul.f32 -1.442695, %v684_v43 }
 0x100   : > { %2249 = vpow2.f32 %v1808_v40 }
 0x101   : > { %2251 = vpow2.f32 %v1811_v45 }
 0x102   : > { %2253 = vpow2.f32 %v1807_v44 }
 0x103   : > { %2255 = vpow2.f32 %v1806_v46 }
 0x108   : > { %v2242_v47 = vpop.eup %2241 }
 0x109   : > { %v717_v48 = vadd.f32 1.0, %v2242_v47 }
 0x10a   : > { %v2244_v49 = vpop.eup %2243 }
 0x10b   : > { %v2246_v50 = vpop.eup %2245  ;;  %v715_v52 = vadd.f32 1.0, %v2244_v49  ;;  %2257 = vrcp.f32 %v717_v48 }
 0x10c   : > { %v2248_v51 = vpop.eup %2247  ;;  %v714_v56 = vadd.f32 1.0, %v2246_v50 }
 0x10d   : > { %v2250_v53 = vpop.eup %2249  ;;  %v718_v54 = vadd.f32 1.0, %v2248_v51 }
 0x10e   : > { %v2252_v55 = vpop.eup %2251  ;;  %v713_v59 = vadd.f32 1.0, %v2250_v53 }
 0x10f   : > { %2259 = vrcp.f32 %v718_v54  ;;  %v716_v57 = vadd.f32 1.0, %v2252_v55  ;;  %v2254_v58 = vpop.eup %2253 }
 0x110   : > { %2261 = vrcp.f32 %v715_v52  ;;  %v2256_v60 = vpop.eup %2255  ;;  %v712_v61 = vadd.f32 1.0, %v2254_v58 }
 0x111   : > { %2263 = vrcp.f32 %v716_v57  ;;  %v711_v62 = vadd.f32 1.0, %v2256_v60 }
 0x112   : > { %2265 = vrcp.f32 %v714_v56 }
 0x113   : > { %2267 = vrcp.f32 %v713_v59 }
 0x114   : > { %2269 = vrcp.f32 %v712_v61  ;;  %v1822_v61 = vld [vmem:[%s2740_s5 + $0x1] ss:$0 sm:$0xff] }
 0x115   : > { %2271 = vrcp.f32 %v711_v62  ;;  %v1816_v62 = vld [vmem:[%s2740_s5] ss:$0 sm:$0xff] }
 0x118   : > { %v2258_v63 = vpop.eup %2257 }
 0x119   : > { %v741_v2 = vmul.f32 %v2258_v63, %v685_v26  ;;  %v2214_v26 = vld [vmem:[%s2736_s1 + $0x28] sm:$0xff]  }
 0x11c   : > { %v2260_v0 = vpop.eup %2259 }
 0x11d   : > { %v2262_v1 = vpop.eup %2261  ;;  %v742_v3 = vmul.f32 %v2260_v0, %v686_v38  ;;  %v1828_v0 = vld [vmem:[%s2740_s5 + $0x2] ss:$0 sm:$0xff] }
 0x11e   : > { %v2264_v4 = vpop.eup %2263  ;;  %v739_v8 = vmul.f32 %v2262_v1, %v683_v32  ;;  %v2220_v32 = vld [vmem:[%s2743_s8 + $0x20] sm:$0xff]  }
 0x11f   : > { %v2441_v5 = vpack.c.bf16 %v742_v3, %v741_v2  ;;  %v740_v6 = vmul.f32 %v2264_v4, %v684_v43  ;;  %v2266_v7 = vpop.eup %2265  ;;  %v1834_v2 = vld [vmem:[%s2740_s5 + $0x3] ss:$0 sm:$0xff] }
 0x120   : > { %v2268_v9 = vpop.eup %2267  ;;  %v738_v10 = vmul.f32 %v2266_v7, %v2429_v23  ;;  %v2211_v23 = vld [vmem:[%s2736_s1 + $0x20] sm:$0xff]  }
 0x121   : > { %2019 = vmatpush3.bf16.msra.mxu1 %v2441_v5  ;;  %2043 = vmatpush3.bf16.msra.mxu0 %v2441_v5  ;;  %v2448_v11 = vpack.c.bf16 %v740_v6, %v739_v8  ;;  %v2270_v13 = vpop.eup %2269  ;;  %v737_v14 = vmul.f32 %v2268_v9, %v2431_v28  ;;  %v2216_v28 = vld [vmem:[%s2736_s1 + $0x38] sm:$0xff]  }
 0x122   : > { %2020 = vmatprep.subr.bf16.mxu1 %v2297_v12  ;;  %2044 = vmatprep.subr.bf16.mxu0 %v2297_v12  ;;  %v2272_v15 = vpop.eup %2271  ;;  %v736_v17 = vmul.f32 %v2270_v13, %v2434_v35  ;;  %v2223_v35 = vld [vmem:[%s2743_s8 + $0x8] sm:$0xff]   ;;  %v1840_v13 = vld [vmem:[%s2740_s5 + $0x4] ss:$0 sm:$0xff] }
 0x123   : > { %v2455_v16 = vpack.c.bf16 %v738_v10, %v737_v14  ;;  %v735_v18 = vmul.f32 %v2272_v15, %v2437_v41 }
 0x125   : > { %2021 = vmatpush3.bf16.msra.mxu1 %v2448_v11  ;;  %2045 = vmatpush3.bf16.msra.mxu0 %v2448_v11  ;;  %v2463_v19 = vpack.c.bf16 %v736_v17, %v735_v18  ;;  %v1846_v18 = vld [vmem:[%s2740_s5 + $0x5] ss:$0 sm:$0xff] }
 0x126   : > { %2022 = vmatprep.subr.bf16.mxu1 %v2297_v12  ;;  %2046 = vmatprep.subr.bf16.mxu0 %v2297_v12 }
 0x129   : > { %2023 = vmatpush3.bf16.msra.mxu1 %v2455_v16  ;;  %2047 = vmatpush3.bf16.msra.mxu0 %v2455_v16 }
 0x12a   : > { %2024 = vmatprep.subr.bf16.mxu1 %v2297_v12  ;;  %2048 = vmatprep.subr.bf16.mxu0 %v2297_v12 }
 0x12d   : > { %2025 = vmatpush3.bf16.msra.mxu1 %v2463_v19  ;;  %2049 = vmatpush3.bf16.msra.mxu0 %v2463_v19 }
 0x12e   : > { %2030 = vmatprep.subr.bf16.mxu1 %v2297_v12  ;;  %2066 = vmatprep.subr.bf16.mxu0 %v2297_v12 }
 0x130   : > { %2027 = vmatmul.mubr.msk.bf16.vlgmr.msra.gmra.mxu1 %vm754_vm1, %v2208_v20  ;;  %2051 = vmatmul.mubr.msk.bf16.vlgmr.msra.gmra.mxu0 %vm754_vm1, %v2209_v21 }
 0x131   : > { %2031 = vmatpush3.bf16.msra.mxu1 %v2441_v5  ;;  %2067 = vmatpush3.bf16.msra.mxu0 %v2441_v5 }
 0x132   : > { %2032 = vmatprep.subr.bf16.mxu1 %v2297_v12  ;;  %2068 = vmatprep.subr.bf16.mxu0 %v2297_v12 }
 0x133   : > { %2038 = vmatprep.mubr.msk.bf16.mxu1 %vm2298_vm0, %v2297_v12  ;;  %2074 = vmatprep.mubr.msk.bf16.mxu0 %vm2298_vm0, %v2297_v12 }
 0x135   : > { %2033 = vmatpush3.bf16.msra.mxu1 %v2448_v11  ;;  %2069 = vmatpush3.bf16.msra.mxu0 %v2448_v11 }
 0x136   : > { %2034 = vmatprep.subr.bf16.mxu1 %v2297_v12  ;;  %2070 = vmatprep.subr.bf16.mxu0 %v2297_v12 }
 0x139   : > { %2035 = vmatpush3.bf16.msra.mxu1 %v2455_v16  ;;  %2071 = vmatpush3.bf16.msra.mxu0 %v2455_v16 }
 0x13a   : > { %2036 = vmatprep.subr.bf16.mxu1 %v2297_v12  ;;  %2072 = vmatprep.subr.bf16.mxu0 %v2297_v12 }
 0x13d   : > { %2037 = vmatpush3.bf16.msra.mxu1 %v2463_v19  ;;  %2073 = vmatpush3.bf16.msra.mxu0 %v2463_v19 }
 0x13e   : > { %2054 = vmatprep.subr.bf16.mxu1 %v2297_v12  ;;  %2090 = vmatprep.subr.bf16.mxu0 %v2297_v12 }
 0x140   : > { %2039 = vmatmul.mubr.msk.bf16.vlgmr.msra.gmra.mxu1 %vm754_vm1, %v2210_v22  ;;  %2075 = vmatmul.mubr.msk.bf16.vlgmr.msra.gmra.mxu0 %vm754_vm1, %v2211_v23 }
 0x141   : > { %2055 = vmatpush3.bf16.msra.mxu1 %v2441_v5  ;;  %2091 = vmatpush3.bf16.msra.mxu0 %v2441_v5 }
 0x142   : > { %2056 = vmatprep.subr.bf16.mxu1 %v2297_v12  ;;  %2092 = vmatprep.subr.bf16.mxu0 %v2297_v12 }
 0x143   : > { %2062 = vmatprep.mubr.msk.bf16.mxu1 %vm2298_vm0, %v2297_v12  ;;  %2098 = vmatprep.mubr.msk.bf16.mxu0 %vm2298_vm0, %v2297_v12 }
 0x145   : > { %2057 = vmatpush3.bf16.msra.mxu1 %v2448_v11  ;;  %2093 = vmatpush3.bf16.msra.mxu0 %v2448_v11 }
 0x146   : > { %2058 = vmatprep.subr.bf16.mxu1 %v2297_v12  ;;  %2094 = vmatprep.subr.bf16.mxu0 %v2297_v12 }
 0x149   : > { %2059 = vmatpush3.bf16.msra.mxu1 %v2455_v16  ;;  %2095 = vmatpush3.bf16.msra.mxu0 %v2455_v16 }
 0x14a   : > { %2060 = vmatprep.subr.bf16.mxu1 %v2297_v12  ;;  %2096 = vmatprep.subr.bf16.mxu0 %v2297_v12 }
 0x14d   : > { %2061 = vmatpush3.bf16.msra.mxu1 %v2463_v19  ;;  %2097 = vmatpush3.bf16.msra.mxu0 %v2463_v19 }
 0x14e   : > { %2078 = vmatprep.subr.bf16.mxu1 %v2297_v12  ;;  %2114 = vmatprep.subr.bf16.mxu0 %v2297_v12 }
 0x150   : > { %2063 = vmatmul.mubr.msk.bf16.vlgmr.msra.gmra.mxu1 %vm754_vm1, %v2212_v24  ;;  %2099 = vmatmul.mubr.msk.bf16.vlgmr.msra.gmra.mxu0 %vm754_vm1, %v2213_v25 }
 0x151   : > { %2079 = vmatpush3.bf16.msra.mxu1 %v2441_v5  ;;  %2115 = vmatpush3.bf16.msra.mxu0 %v2441_v5 }
 0x152   : > { %2080 = vmatprep.subr.bf16.mxu1 %v2297_v12  ;;  %2116 = vmatprep.subr.bf16.mxu0 %v2297_v12 }
 0x153   : > { %2086 = vmatprep.mubr.msk.bf16.mxu1 %vm2298_vm0, %v2297_v12  ;;  %2122 = vmatprep.mubr.msk.bf16.mxu0 %vm2298_vm0, %v2297_v12 }
 0x155   : > { %2081 = vmatpush3.bf16.msra.mxu1 %v2448_v11  ;;  %2117 = vmatpush3.bf16.msra.mxu0 %v2448_v11 }
 0x156   : > { %2082 = vmatprep.subr.bf16.mxu1 %v2297_v12  ;;  %2118 = vmatprep.subr.bf16.mxu0 %v2297_v12 }
 0x159   : > { %2083 = vmatpush3.bf16.msra.mxu1 %v2455_v16  ;;  %2119 = vmatpush3.bf16.msra.mxu0 %v2455_v16 }
 0x15a   : > { %2084 = vmatprep.subr.bf16.mxu1 %v2297_v12  ;;  %2120 = vmatprep.subr.bf16.mxu0 %v2297_v12 }
 0x15d   : > { %2085 = vmatpush3.bf16.msra.mxu1 %v2463_v19  ;;  %2121 = vmatpush3.bf16.msra.mxu0 %v2463_v19 }
 0x15e   : > { %2102 = vmatprep.subr.bf16.mxu1 %v2297_v12  ;;  %2146 = vmatprep.subr.bf16.mxu0 %v2297_v12 }
 0x160   : > { %2087 = vmatmul.mubr.msk.bf16.vlgmr.msra.gmra.mxu1 %vm754_vm1, %v2214_v26  ;;  %2123 = vmatmul.mubr.msk.bf16.vlgmr.msra.gmra.mxu0 %vm754_vm1, %v2215_v27  ;;  %v1852_v27 = vld [vmem:[%s2740_s5 + $0x6] ss:$0 sm:$0xff] }
 0x161   : > { %2103 = vmatpush3.bf16.msra.mxu1 %v2441_v5  ;;  %2110 = vmatprep.mubr.msk.bf16.mxu1 %vm2298_vm0, %v2297_v12 }
 0x162   : > { %2104 = vmatprep.subr.bf16.mxu1 %v2297_v12  ;;  %2162 = vmatprep.mubr.msk.bf16.mxu0 %vm2298_vm0, %v2297_v12 }
 0x165   : > { %2105 = vmatpush3.bf16.msra.mxu1 %v2448_v11 }
 0x166   : > { %2106 = vmatprep.subr.bf16.mxu1 %v2297_v12 }
 0x169   : > { %2107 = vmatpush3.bf16.msra.mxu1 %v2455_v16 }
 0x16a   : > { %2108 = vmatprep.subr.bf16.mxu1 %v2297_v12 }
 0x16d   : > { %2109 = vmatpush3.bf16.msra.mxu1 %v2463_v19 }
 0x16e   : > { %2126 = vmatprep.subr.bf16.mxu1 %v2297_v12 }
 0x170   : > { %2111 = vmatmul.mubr.msk.bf16.vlgmr.msra.gmra.mxu1 %vm754_vm1, %v2216_v28 }
 0x171   : > { %2142 = vmatprep.mubr.msk.bf16.mxu1 %vm2298_vm0, %v2297_v12  ;;  %2127 = vmatpush3.bf16.msra.mxu1 %v2217_v29 }
 0x172   : > { %2128 = vmatprep.subr.bf16.mxu1 %v2297_v12 }
 0x175   : > { %2129 = vmatpush3.bf16.msra.mxu1 %v2218_v30 }
 0x176   : > { %2130 = vmatprep.subr.bf16.mxu1 %v2297_v12 }
 0x179   : > { %2131 = vmatpush3.bf16.msra.mxu1 %v2219_v31 }
 0x17a   : > { %2132 = vmatprep.subr.bf16.mxu1 %v2297_v12 }
 0x17d   : > { %2133 = vmatpush3.bf16.msra.mxu1 %v2220_v32 }
 0x17e   : > { %2134 = vmatprep.subr.bf16.mxu1 %v2297_v12 }
 0x181   : > { %2135 = vmatpush3.bf16.msra.mxu1 %v2221_v33 }
 0x182   : > { %2136 = vmatprep.subr.bf16.mxu1 %v2297_v12 }
 0x185   : > { %2137 = vmatpush3.bf16.msra.mxu1 %v2222_v34  ;;  %v1864_v34 = vld [vmem:[%s2740_s5 + $0x8] ss:$0 sm:$0xff] }
 0x186   : > { %2138 = vmatprep.subr.bf16.mxu1 %v2297_v12 }
 0x189   : > { %2139 = vmatpush3.bf16.msra.mxu1 %v2223_v35  ;;  %v1858_v35 = vld [vmem:[%s2740_s5 + $0x7] ss:$0 sm:$0xff] }
 0x18a   : > { %2140 = vmatprep.subr.bf16.mxu1 %v2297_v12 }
 0x18d   : > { %2141 = vmatpush3.bf16.msra.mxu1 %v2224_v36 }
 0x18e   : > { %2166 = vmatprep.subr.bf16.mxu1 %v2297_v12 }
 0x1f0   : > { %v792_v37 = vpop.f32.mrf.mxu1  ;;  %v919_v38 = vpop.f32.mrf.mxu0 }
 0x1f1   : > { %v806_v1 = vmul.f32 %v1816_v62, %v792_v37  ;;  %v934_v5 = vmul.f32 %v1828_v0, %v919_v38 }
 0x1f2   : > { %v2028_v39 = vpop.f32.mrf.mxu1  ;;  %v2052_v40 = vpop.f32.mrf.mxu0 }
 0x1f4   : > { %v795_v41 = vpop.f32.mrf.mxu1  ;;  %v922_v42 = vpop.f32.mrf.mxu0 }
 0x1f5   : > { %v807_v10 = vmul.f32 %v1816_v62, %v795_v41  ;;  %v935_v21 = vmul.f32 %v1828_v0, %v922_v42 }
 0x1f6   : > { %v2029_v43 = vpop.f32.mrf.mxu1  ;;  %v2053_v44 = vpop.f32.mrf.mxu0 }
 0x200   : > { %v855_v45 = vpop.f32.mrf.mxu1  ;;  %v1047_v46 = vpop.f32.mrf.mxu0 }
 0x201   : > { %v870_v63 = vmul.f32 %v1822_v61, %v855_v45  ;;  %v1062_v22 = vmul.f32 %v1840_v13, %v1047_v46  ;;  %v1865_v45 = vld [vmem:[%s2741_s6] ss:$0 sm:$0xff] }
 0x202   : > { %v2040_v47 = vpop.f32.mrf.mxu1  ;;  %v2076_v48 = vpop.f32.mrf.mxu0 }
 0x203   : > { %v872_v6 = vadd.f32 %v870_v63, %v806_v1 }
 0x204   : > { %v858_v49 = vpop.f32.mrf.mxu1  ;;  %v1050_v50 = vpop.f32.mrf.mxu0 }
 0x205   : > { %v871_v7 = vmul.f32 %v1822_v61, %v858_v49  ;;  %v936_v17 = vadd.f32 %v934_v5, %v872_v6  ;;  %v1063_v30 = vmul.f32 %v1840_v13, %v1050_v50  ;;  %v1866_v50 = vld [vmem:[%s2742_s7] ss:$0 sm:$0xff] }
 0x206   : > { %v2041_v51 = vpop.f32.mrf.mxu1  ;;  %v2077_v52 = vpop.f32.mrf.mxu0 }
 0x207   : > { %v873_v16 = vadd.f32 %v871_v7, %v807_v10 }
 0x209   : > { %v937_v25 = vadd.f32 %v935_v21, %v873_v16  ;;  %v2226_v16 = vld [vmem:[%s2745_s10 + $0x30] sm:$0xff]   ;;  %v2231_v21 = vld [vmem:[%s2745_s10 + $0x8] sm:$0xff]  }
 0x210   : > { %v983_v53 = vpop.f32.mrf.mxu1  ;;  %v1175_v54 = vpop.f32.mrf.mxu0 }
 0x211   : > { %v998_v11 = vmul.f32 %v1834_v2, %v983_v53  ;;  %v1190_v31 = vmul.f32 %v1852_v27, %v1175_v54 }
 0x212   : > { %v2064_v55 = vpop.f32.mrf.mxu1  ;;  %v2100_v56 = vpop.f32.mrf.mxu0 }
 0x213   : > { %v1000_v23 = vadd.f32 %v998_v11, %v936_v17  ;;  %v2227_v17 = vld [vmem:[%s2745_s10 + $0x28] sm:$0xff]  }
 0x214   : > { %v986_v57 = vpop.f32.mrf.mxu1  ;;  %v1178_v58 = vpop.f32.mrf.mxu0 }
 0x215   : > { %v999_v24 = vmul.f32 %v1834_v2, %v986_v57  ;;  %v1064_v29 = vadd.f32 %v1062_v22, %v1000_v23  ;;  %v1191_v43 = vmul.f32 %v1852_v27, %v1178_v58  ;;  %v2232_v22 = vld [vmem:[%s2745_s10] sm:$0xff]  }
 0x216   : > { %v2065_v59 = vpop.f32.mrf.mxu1  ;;  %v2101_v60 = vpop.f32.mrf.mxu0  ;;  %v1380_v23 = vld [vmem:[%s2744_s9] sm:$0x1] }
 0x217   : > { %v1001_v28 = vadd.f32 %v999_v24, %v937_v25 }
 0x219   : > { %v1065_v36 = vadd.f32 %v1063_v30, %v1001_v28 }
 0x220   : > { %v1111_v3 = vpop.f32.mrf.mxu1  ;;  %v1303_v4 = vpop.f32.mrf.mxu0 }
 0x221   : > { %v1126_v26 = vmul.f32 %v1846_v18, %v1111_v3  ;;  %v1318_v39 = vmul.f32 %v1864_v34, %v1303_v4 }
 0x222   : > { %v2088_v8 = vpop.f32.mrf.mxu1  ;;  %v2124_v9 = vpop.f32.mrf.mxu0 }
 0x223   : > { %v1128_v32 = vadd.f32 %v1126_v26, %v1064_v29 }
 0x224   : > { %v1114_v14 = vpop.f32.mrf.mxu1  ;;  %v1306_v15 = vpop.f32.mrf.mxu0 }
 0x225   : > { %v1127_v33 = vmul.f32 %v1846_v18, %v1114_v14  ;;  %v1192_v40 = vadd.f32 %v1190_v31, %v1128_v32  ;;  %v1319_v53 = vmul.f32 %v1864_v34, %v1306_v15  ;;  %v2225_v15 = vld [vmem:[%s2745_s10 + $0x38] sm:$0xff]   ;;  %v2228_v18 = vld [vmem:[%s2745_s10 + $0x20] sm:$0xff]  }
 0x226   : > { %v2089_v19 = vpop.f32.mrf.mxu1  ;;  %v2125_v20 = vpop.f32.mrf.mxu0  ;;  %2147 = vmatpush3.bf16.msra.mxu0 %v2225_v15 }
 0x227   : > { %v1129_v38 = vadd.f32 %v1127_v33, %v1065_v36  ;;  %2148 = vmatprep.subr.bf16.mxu0 %v2297_v12  ;;  %v2229_v19 = vld [vmem:[%s2745_s10 + $0x18] sm:$0xff]   ;;  %v2230_v20 = vld [vmem:[%s2745_s10 + $0x10] sm:$0xff]  }
 0x228   : > { %v2234_v36 = vld [vmem:[%s2747_s12 + $0x30] sm:$0xff]  }
 0x229   : > { %v1193_v48 = vadd.f32 %v1191_v43, %v1129_v38  ;;  %v2236_v38 = vld [vmem:[%s2747_s12 + $0x20] sm:$0xff]  }
 0x22a   : > { %2149 = vmatpush3.bf16.msra.mxu0 %v2226_v16  ;;  %v1493_v43 = vld [vmem:[%s2746_s11] sm:$0x1] }
 0x22b   : > { %2150 = vmatprep.subr.bf16.mxu0 %v2297_v12 }
 0x22e   : > { %2151 = vmatpush3.bf16.msra.mxu0 %v2227_v17 }
 0x22f   : > { %2152 = vmatprep.subr.bf16.mxu0 %v2297_v12 }
 0x230   : > { %v1239_v37 = vpop.f32.mrf.mxu1 }
 0x231   : > { %v1254_v41 = vmul.f32 %v1858_v35, %v1239_v37  ;;  %v2235_v37 = vld [vmem:[%s2747_s12 + $0x28] sm:$0xff]  }
 0x232   : > { %v2112_v42 = vpop.f32.mrf.mxu1  ;;  %2153 = vmatpush3.bf16.msra.mxu0 %v2228_v18 }
 0x233   : > { %v1256_v44 = vadd.f32 %v1254_v41, %v1192_v40  ;;  %2154 = vmatprep.subr.bf16.mxu0 %v2297_v12  ;;  %v2238_v40 = vld [vmem:[%s2747_s12 + $0x10] sm:$0xff]   ;;  %v2239_v41 = vld [vmem:[%s2747_s12 + $0x8] sm:$0xff]   ;;  %v2240_v42 = vld [vmem:[%s2747_s12] sm:$0xff]  }
 0x234   : > { %v1242_v46 = vpop.f32.mrf.mxu1 }
 0x235   : > { %v1320_v47 = vadd.f32 %v1318_v39, %v1256_v44  ;;  %v1255_v49 = vmul.f32 %v1858_v35, %v1242_v46  ;;  %v2233_v35 = vld [vmem:[%s2747_s12 + $0x38] sm:$0xff]  }
 0x236   : > { %v2113_v51 = vpop.f32.mrf.mxu1  ;;  %2155 = vmatpush3.bf16.msra.mxu0 %v2229_v19  ;;  %v2237_v39 = vld [vmem:[%s2747_s12 + $0x18] sm:$0xff]  }
 0x237   : > { %v1329_v52 = vmul.f32 %v1865_v45, %v1320_v47  ;;  %v1257_v54 = vadd.f32 %v1255_v49, %v1193_v48  ;;  %2156 = vmatprep.subr.bf16.mxu0 %v2297_v12 }
 0x239   : > { %v1338_v55 = vadd.f32 %v1866_v50, %v1329_v52  ;;  %v1321_v56 = vadd.f32 %v1319_v53, %v1257_v54  ;;  %v1588_v52 = vlaneseq }
 0x23a   : > { %2157 = vmatpush3.bf16.msra.mxu0 %v2230_v20 }
 0x23b   : > { %v1867_v57 = vmul.f32 -1.442695, %v1338_v55  ;;  %v1330_v58 = vmul.f32 %v1865_v45, %v1321_v56  ;;  %2158 = vmatprep.subr.bf16.mxu0 %v2297_v12  ;;  %v1589_v53 = vshrl.u32 %v1588_v52, 7 }
 0x23d   : > { %2273 = vpow2.f32 %v1867_v57  ;;  %v1339_v59 = vadd.f32 %v1866_v50, %v1330_v58  ;;  %v1590_v54 = vsub.s32 0, %v1589_v53 }
 0x23e   : > { %2159 = vmatpush3.bf16.msra.mxu0 %v2231_v21 }
 0x23f   : > { %v1868_v60 = vmul.f32 -1.442695, %v1339_v59  ;;  %2160 = vmatprep.subr.bf16.mxu0 %v2297_v12 }
 0x241   : > { %2275 = vpow2.f32 %v1868_v60  ;;  %v1895_v60 = vld [vmem:[%s2748_s13] ss:$0 sm:$0xff] }
 0x242   : > { %2161 = vmatpush3.bf16.msra.mxu0 %v2232_v22 }
 0x24a   : > { %v2274_v61 = vpop.eup %2273 }
 0x24b   : > { %v1346_v62 = vadd.f32 1.0, %v2274_v61 }
 0x24d   : > { %2277 = vrcp.f32 %v1346_v62 }
 0x24e   : > { %v2276_v63 = vpop.eup %2275 }
 0x24f   : > { %v1347_v0 = vadd.f32 1.0, %v2276_v63  ;;  %v1896_v63 = vld [vmem:[%s2749_s14] ss:$0 sm:$0xff] }
 0x251   : > { %2279 = vrcp.f32 %v1347_v0 }
 0x25a   : > { %v2278_v1 = vpop.eup %2277 }
 0x25b   : > { %v2644_v3 = vmul.f32 %v2278_v1, %v1338_v55 }
 0x25e   : > { %v2280_v2 = vpop.eup %2279 }
 0x25f   : > { %v2646_v4 = vmul.f32 %v2280_v2, %v1339_v59 }
 0x261   : > { %v1354_v5 = vadd.f32 %v2646_v4, %v2644_v3 }
 0x263   : > { %v1355_v6 = vrot.slane %v1354_v5, 4 }
 0x265   : > { %v1356_v7 = vadd.f32 %v1355_v6, %v1354_v5 }
 0x267   : > { %v1357_v8 = vrot.slane %v1356_v7, 2 }
 0x269   : > { %v1358_v9 = vadd.f32 %v1357_v8, %v1356_v7 }
 0x26b   : > { %v1359_v10 = vrot.slane %v1358_v9, 1 }
 0x26d   : > { %v1360_v11 = vadd.f32 %v1359_v10, %v1358_v9 }
 0x26f   : > { %v1362_v13 = vmul.f32 0.0625, %v1360_v11 }
 0x271   : > { %v1363_v14 = vpack.c.bf16 %v1362_v13, %v1362_v13 }
 0x273   : > { %2143 = vmatmul.mubr.bf16.vlgmr.msra.gmra.mxu1 %v1363_v14 }
 0x274   : > { %2182 = vmatprep.mubr.msk.bf16.mxu1 %vm2298_vm0, %v2297_v12  ;;  %2167 = vmatpush3.bf16.msra.mxu1 %v2233_v35 }
 0x275   : > { %2168 = vmatprep.subr.bf16.mxu1 %v2297_v12 }
 0x278   : > { %2169 = vmatpush3.bf16.msra.mxu1 %v2234_v36 }
 0x279   : > { %2170 = vmatprep.subr.bf16.mxu1 %v2297_v12 }
 0x27c   : > { %2171 = vmatpush3.bf16.msra.mxu1 %v2235_v37 }
 0x27d   : > { %2172 = vmatprep.subr.bf16.mxu1 %v2297_v12 }
 0x280   : > { %2173 = vmatpush3.bf16.msra.mxu1 %v2236_v38 }
 0x281   : > { %2174 = vmatprep.subr.bf16.mxu1 %v2297_v12 }
 0x284   : > { %2175 = vmatpush3.bf16.msra.mxu1 %v2237_v39 }
 0x285   : > { %2176 = vmatprep.subr.bf16.mxu1 %v2297_v12 }
 0x288   : > { %2177 = vmatpush3.bf16.msra.mxu1 %v2238_v40 }
 0x289   : > { %2178 = vmatprep.subr.bf16.mxu1 %v2297_v12 }
 0x28c   : > { %2179 = vmatpush3.bf16.msra.mxu1 %v2239_v41 }
 0x28d   : > { %2180 = vmatprep.subr.bf16.mxu1 %v2297_v12 }
 0x290   : > { %2181 = vmatpush3.bf16.msra.mxu1 %v2240_v42 }
 0x333   : > { %v1463_v24 = vpop.f32.mrf.mxu1 }
 0x334   : > { %v1464_v25 = vadd.f32 %v1463_v24, %v1380_v23 }
 0x335   : > { %v2144_v26 = vpop.f32.mrf.mxu1 }
 0x336   : > { %v1877_v27 = vmul.f32 -1.442695, %v1464_v25 }
 0x337   : > { %v1466_v28 = vpop.f32.mrf.mxu1 }
 0x338   : > { %2281 = vpow2.f32 %v1877_v27 }
 0x339   : > { %v2145_v29 = vpop.f32.mrf.mxu1 }
 0x345   : > { %v2282_v30 = vpop.eup %2281 }
 0x346   : > { %v1472_v31 = vadd.f32 1.0, %v2282_v30 }
 0x348   : > { %2283 = vrcp.f32 %v1472_v31 }
 0x355   : > { %v2284_v32 = vpop.eup %2283 }
 0x356   : > { %v1475_v33 = vmul.f32 %v2284_v32, %v1464_v25 }
 0x358   : > { %v1476_v34 = vpack.c.bf16 %v1475_v33, %v1475_v33 }
 0x35a   : > { %2163 = vmatmul.mubr.bf16.vlgmr.msra.gmra.mxu0 %v1476_v34 }
 0x41a   : > { %v1576_v44 = vpop.f32.mrf.mxu0 }
 0x41b   : > { %v1577_v45 = vadd.f32 %v1576_v44, %v1493_v43 }
 0x41c   : > { %v2164_v46 = vpop.f32.mrf.mxu0 }
 0x41d   : > { %v1886_v47 = vmul.f32 -1.442695, %v1577_v45 }
 0x41e   : > { %v1579_v48 = vpop.f32.mrf.mxu0 }
 0x41f   : > { %2285 = vpow2.f32 %v1886_v47 }
 0x420   : > { %v2165_v49 = vpop.f32.mrf.mxu0 }
 0x42c   : > { %v2286_v50 = vpop.eup %2285 }
 0x42d   : > { %v1585_v51 = vadd.f32 1.0, %v2286_v50 }
 0x42f   : > { %2287 = vrcp.f32 %v1585_v51 }
 0x43c   : > { %v2288_v12 = vpop.eup %2287 }
 0x43d   : > { %v1591_v55 = vrot.slane %v2288_v12, %v1590_v54 }
 0x43f   : > { %v1592_v56 = vmul.f32 %v1591_v55, %v2644_v3  ;;  %v1593_v57 = vmul.f32 %v1591_v55, %v2646_v4 }
 0x441   : > { %v1594_v58 = vpack.c.bf16 %v1593_v57, %v1592_v56 }
 0x443   : > { %2183 = vmatmul.mubr.bf16.vlgmr.msra.gmra.mxu1 %v1594_v58 }
 0x503   : > { %v1693_v59 = vpop.f32.mrf.mxu1 }
 0x504   : > { %v1707_v62 = vmul.f32 %v1895_v60, %v1693_v59 }
 0x505   : > { %v2184_v61 = vpop.f32.mrf.mxu1 }
 0x506   : > { %v1716_v3 = vadd.f32 %v1896_v63, %v1707_v62 }
 0x507   : > { %v1696_v0 = vpop.f32.mrf.mxu1 }
 0x508   : > { %v1708_v1 = vmul.f32 %v1895_v60, %v1696_v0 }
 0x509   : > { %v2185_v2 = vpop.f32.mrf.mxu1 }
 0x50a   : > { %v1717_v5 = vadd.f32 %v1896_v63, %v1708_v1 }
 0x50c   : > { %v1908_v4 = vpack.c.bf16 %v1717_v5, %v1716_v3 }
 0x50e   : > { %1909 = vst [vmem:[%s494_s26] sm:$0xff] %v1908_v4  }
 0x50f PF: > { %s25_s18 = sadd.s32 1, %s2295_s18  }
 0x510   : > { %p22_p4 = scmp.ge.s32.totalorder %s25_s18, 4  }
 0x512   :  { %24 = sbr.rel (!%p22_p4) target bundleno = 1 (0x1), region = 126 }

// kernel: mango_net_forward.5
= control target key start
LH: loop header
LB: loop body
LE: loop exit
PB: predicated region body
PF: predicated region fallthrough
CT: control target
= control target key end

     0   :  { %s3391_s18 = smov 0   ;;  %s4024_s0 = inlined_call_operand.vmem [shape: bf16[2,64,128], index: 0, kind: input, shape index: {}]   ;;  %s4025_s1 = inlined_call_operand.vmem [shape: bf16[9,64,64], index: 1, kind: input, shape index: {}]   ;;  %s4026_s2 = inlined_call_operand.vmem [shape: bf16[128,128], index: 2, kind: input, shape index: {}]   ;;  %s4027_s3 = inlined_call_operand.vmem [shape: f32[1,128], index: 3, kind: input, shape index: {}]   ;;  %s4028_s4 = inlined_call_operand.vmem [shape: f32[1,128], index: 4, kind: input, shape index: {}]   ;;  %s4029_s5 = inlined_call_operand.vmem [shape: f32[9,1,128], index: 5, kind: input, shape index: {}]   ;;  %s4030_s6 = inlined_call_operand.vmem [shape: f32[1,128], index: 6, kind: input, shape index: {}]   ;;  %s4031_s7 = inlined_call_operand.vmem [shape: f32[1,128], index: 7, kind: input, shape index: {}]   ;;  %s4032_s8 = inlined_call_operand.vmem [shape: bf16[128,128], index: 8, kind: input, shape index: {}]   ;;  %s4033_s9 = inlined_call_operand.vmem [shape: f32[1,128], index: 9, kind: input, shape index: {}]   ;;  %s4034_s10 = inlined_call_operand.vmem [shape: bf16[128,128], index: 10, kind: input, shape index: {}]   ;;  %s4035_s11 = inlined_call_operand.vmem [shape: f32[1,128], index: 11, kind: input, shape index: {}]   ;;  %s4036_s12 = inlined_call_operand.vmem [shape: bf16[128,128], index: 12, kind: input, shape index: {}]   ;;  %s4037_s13 = inlined_call_operand.vmem [shape: f32[1,128], index: 13, kind: input, shape index: {}]   ;;  %s4038_s14 = inlined_call_operand.vmem [shape: f32[1,128], index: 14, kind: input, shape index: {}]   ;;  %s4039_s15 = inlined_call_operand.vmem [shape: bf16[2,64,128], index: 15, kind: output, shape index: {}]  }
   0x1 LB: > { %s2528_s19 = sadd.s32 4294967295, %s3307_s18   ;;  %p2532_p0 = scmp.ge.s32.totalorder %s3307_s18, 1  ;;  %s3307_s18 = sphi %s3391_s18, %s25_s18  }
   0x2   : > { %p437_p1 = scmp.lt.s32.totalorder %s3307_s18, 3 }
   0x4   : > { %p438_p2 = pnand %p2532_p0, %p437_p1 }
   0x5   : > { %p485_p3 = scmp.lt.s32.totalorder (!%p438_p2), %s2528_s19, 1 }
   0x6   : > { %441 = sbr.rel (%p438_p2) target bundleno = 1321 (0x529), region = 80 }
   0xb   : > { %v3149_v0 = vld [vmem:[%s4026_s2 + $0x38] sm:$0xff]   ;;  %v3150_v1 = vld [vmem:[%s4026_s2 + $0x30] sm:$0xff]   ;;  %s4041_s19 = smov (!%p485_p3, %s2528_s19), 1  ;;  %v3151_v2 = vld [vmem:[%s4026_s2 + $0x28] sm:$0xff]   ;;  %vm775_vm0 = vcmask 523264   ;;  %vm3310_vm1 = vmmov 0  }
   0xc   : > { %2907 = vmatprep.subr.bf16.mxu0 %v3149_v0  ;;  %s2760_s26 = sshll.u32 %s4041_s19, 5  ;;  %v3152_v3 = vld [vmem:[%s4026_s2 + $0x20] sm:$0xff]   ;;  %v3153_v5 = vld [vmem:[%s4026_s2 + $0x18] sm:$0xff]   ;;  %v3154_v6 = vld [vmem:[%s4026_s2 + $0x10] sm:$0xff]  }
   0xd   : > { %2908 = vmatpush3.bf16.msra.mxu0 %v3149_v0  ;;  %s3416_s29 = scalar_lea.vmem %s4024_s0, %s2760_s26  ;;  %v3155_v7 = vld [vmem:[%s4026_s2 + $0x8] sm:$0xff]   ;;  %v3156_v8 = vld [vmem:[%s4026_s2] sm:$0xff]   ;;  %s494_s16 = scalar_lea.vmem %s4039_s15, %s2760_s26 }
   0xe   : > { %2909 = vmatprep.subr.bf16.mxu0 %v3150_v1  ;;  %v496_v4 = vld [vmem:[%s3416_s29] sm:$0xff]   ;;  %v498_v9 = vld [vmem:[%s3416_s29 + $0x8] sm:$0xff]   ;;  %v500_v10 = vld [vmem:[%s3416_s29 + $0x10] sm:$0xff]  }
   0xf   : > { %2923 = vmatprep.mubr.bf16.mxu0 %v496_v4  ;;  %v502_v11 = vld [vmem:[%s3416_s29 + $0x18] sm:$0xff]   ;;  %v3161_v12 = vld [vmem:[%s4025_s1] sm:$0xff]  }
  0x10   : > { %v3162_v13 = vld [vmem:[%s4025_s1 + $0x20] sm:$0xff]  }
  0x11   : > { %2910 = vmatpush3.bf16.msra.mxu0 %v3150_v1  ;;  %2955 = vmatprep.mubr.msk.bf16.mxu1 %vm775_vm0, %v3162_v13  ;;  %v2549_v16 = vld [vmem:[%s4027_s3] ss:$0 sm:$0xff] }
  0x12   : > { %2911 = vmatprep.subr.bf16.mxu0 %v3151_v2  ;;  %v2550_v21 = vld [vmem:[%s4028_s4] ss:$0 sm:$0xff] }
  0x15   : > { %2912 = vmatpush3.bf16.msra.mxu0 %v3151_v2 }
  0x16   : > { %2913 = vmatprep.subr.bf16.mxu0 %v3152_v3 }
  0x19   : > { %2914 = vmatpush3.bf16.msra.mxu0 %v3152_v3 }
  0x1a   : > { %2915 = vmatprep.subr.bf16.mxu0 %v3153_v5 }
  0x1d   : > { %2916 = vmatpush3.bf16.msra.mxu0 %v3153_v5 }
  0x1e   : > { %2917 = vmatprep.subr.bf16.mxu0 %v3154_v6 }
  0x21   : > { %2918 = vmatpush3.bf16.msra.mxu0 %v3154_v6 }
  0x22   : > { %2919 = vmatprep.subr.bf16.mxu0 %v3155_v7 }
  0x25   : > { %2920 = vmatpush3.bf16.msra.mxu0 %v3155_v7 }
  0x26   : > { %2921 = vmatprep.subr.bf16.mxu0 %v3156_v8 }
  0x29   : > { %2922 = vmatpush3.bf16.msra.mxu0 %v3156_v8 }
  0x2c   : > { %2924 = vmatmul.mubr.bf16.vlgmr.msra.gmra.mxu0 %v498_v9 }
  0x2d   : > { %2927 = vmatprep.mubr.bf16.mxu0 %v500_v10 }
  0x34   : > { %2928 = vmatmul.mubr.bf16.gmra.mxu0 %v502_v11 }
  0x35   : > { %2939 = vmatprep.mubr.msk.bf16.mxu0 %vm775_vm0, %v3161_v12 }
  0xec   : > { %v2925_v14 = vpop.f32.mrf.mxu0 }
  0xed   : > { %v666_v19 = vmul.f32 %v2925_v14, %v2549_v16 }
  0xee   : > { %v626_v15 = vpop.f32.mrf.mxu0 }
  0xef   : > { %v3453_v26 = vadd.f32 %v2550_v21, %v666_v19  ;;  %v664_v27 = vmul.f32 %v2549_v16, %v626_v15 }
  0xf0   : > { %v2926_v17 = vpop.f32.mrf.mxu0 }
  0xf1   : > { %v667_v18 = vmul.f32 %v2926_v17, %v2549_v16  ;;  %v2553_v37 = vmul.f32 -1.442695, %v3453_v26  ;;  %v3459_v38 = vadd.f32 %v2550_v21, %v664_v27  ;;  %v3171_v27 = vld [vmem:[%s4025_s1 + $0x60] sm:$0xff]  }
  0xf2   : > { %v629_v20 = vpop.f32.mrf.mxu0 }
  0xf3   : > { %v3451_v22 = vadd.f32 %v2550_v21, %v667_v18  ;;  %v665_v23 = vmul.f32 %v2549_v16, %v629_v20  ;;  %v2551_v46 = vmul.f32 -1.442695, %v3459_v38  ;;  %v3163_v20 = vld [vmem:[%s4025_s1 + $0x8] sm:$0xff]  }
  0xf4   : > { %v2929_v24 = vpop.f32.mrf.mxu0 }
  0xf5   : > { %v670_v25 = vmul.f32 %v2929_v24, %v2549_v16  ;;  %v2554_v31 = vmul.f32 -1.442695, %v3451_v22  ;;  %v3456_v32 = vadd.f32 %v2550_v21, %v665_v23  ;;  %v3166_v23 = vld [vmem:[%s4025_s1 + $0x30] sm:$0xff]   ;;  %v3167_v24 = vld [vmem:[%s4025_s1 + $0x18] sm:$0xff]  }
  0xf6   : > { %v642_v28 = vpop.f32.mrf.mxu0 }
  0xf7   : > { %v685_v29 = vadd.f32 %v2550_v21, %v670_v25  ;;  %v668_v30 = vmul.f32 %v2549_v16, %v642_v28  ;;  %v2552_v43 = vmul.f32 -1.442695, %v3456_v32  ;;  %v3168_v25 = vld [vmem:[%s4025_s1 + $0x38] sm:$0xff]   ;;  %v3170_v28 = vld [vmem:[%s4025_s1 + $0x48] sm:$0xff]  }
  0xf8   : > { %v2930_v33 = vpop.f32.mrf.mxu0 }
  0xf9   : > { %v2557_v34 = vmul.f32 -1.442695, %v685_v29  ;;  %v683_v35 = vadd.f32 %v2550_v21, %v668_v30  ;;  %v671_v36 = vmul.f32 %v2930_v33, %v2549_v16  ;;  %v3173_v30 = vld [vmem:[%s4025_s1 + $0x50] sm:$0xff]   ;;  %v3176_v33 = vld [vmem:[%s4025_s1 + $0x78] sm:$0xff]  }
  0xfa   : > { %v645_v39 = vpop.f32.mrf.mxu0 }
  0xfb   : > { %3225 = vpow2.f32 %v2557_v34  ;;  %v2555_v40 = vmul.f32 -1.442695, %v683_v35  ;;  %v686_v41 = vadd.f32 %v2550_v21, %v671_v36  ;;  %v669_v42 = vmul.f32 %v2549_v16, %v645_v39  ;;  %v3177_v34 = vld [vmem:[%s4025_s1 + $0x80] sm:$0xff]   ;;  %v3178_v36 = vld [vmem:[%s4025_s1 + $0x88] sm:$0xff]   ;;  %v3183_v39 = vld [vmem:[%s4025_s1 + $0xb0] sm:$0xff]  }
  0xfc   : > { %3227 = vpow2.f32 %v2554_v31  ;;  %v3175_v31 = vld [vmem:[%s4025_s1 + $0x70] sm:$0xff]  }
  0xfd   : > { %3229 = vpow2.f32 %v2555_v40  ;;  %v2558_v44 = vmul.f32 -1.442695, %v686_v41  ;;  %v684_v45 = vadd.f32 %v2550_v21, %v669_v42  ;;  %v3164_v21 = vld [vmem:[%s4025_s1 + $0x28] sm:$0xff]   ;;  %v3182_v40 = vld [vmem:[%s4025_s1 + $0x98] sm:$0xff]   ;;  %v3185_v42 = vld [vmem:[%s4025_s1 + $0xc0] sm:$0xff]  }
  0xfe   : > { %3231 = vpow2.f32 %v2553_v37  ;;  %v3180_v37 = vld [vmem:[%s4025_s1 + $0xa8] sm:$0xff]  }
  0xff   : > { %3233 = vpow2.f32 %v2558_v44  ;;  %v2556_v47 = vmul.f32 -1.442695, %v684_v45  ;;  %v3186_v44 = vld [vmem:[%s4025_s1 + $0xc8] sm:$0xff]  }
 0x100   : > { %3235 = vpow2.f32 %v2552_v43  ;;  %v3187_v43 = vld [vmem:[%s4025_s1 + $0xe0] sm:$0xff]  }
 0x101   : > { %3237 = vpow2.f32 %v2556_v47  ;;  %v3191_v47 = vld [vmem:[%s4025_s1 + $0xf0] sm:$0xff]  }
 0x102   : > { %3239 = vpow2.f32 %v2551_v46  ;;  %v3189_v46 = vld [vmem:[%s4025_s1 + $0xd0] sm:$0xff]  }
 0x108   : > { %v3226_v48 = vpop.eup %3225 }
 0x109   : > { %v3228_v49 = vpop.eup %3227  ;;  %v717_v50 = vadd.f32 1.0, %v3226_v48  ;;  %v3190_v48 = vld [vmem:[%s4025_s1 + $0xd8] sm:$0xff]  }
 0x10a   : > { %v3230_v51 = vpop.eup %3229  ;;  %v714_v55 = vadd.f32 1.0, %v3228_v49  ;;  %v3192_v49 = vld [vmem:[%s4025_s1 + $0xf8] sm:$0xff]  }
 0x10b   : > { %v3232_v52 = vpop.eup %3231  ;;  %v715_v53 = vadd.f32 1.0, %v3230_v51  ;;  %3241 = vrcp.f32 %v717_v50  ;;  %v3193_v50 = vld [vmem:[%s4025_s1 + $0x100] sm:$0xff]   ;;  %v3194_v51 = vld [vmem:[%s4025_s1 + $0x108] sm:$0xff]  }
 0x10c   : > { %v3234_v54 = vpop.eup %3233  ;;  %v713_v59 = vadd.f32 1.0, %v3232_v52  ;;  %v3195_v52 = vld [vmem:[%s4025_s1 + $0x110] sm:$0xff]  }
 0x10d   : > { %v3236_v56 = vpop.eup %3235  ;;  %v718_v57 = vadd.f32 1.0, %v3234_v54  ;;  %3243 = vrcp.f32 %v715_v53  ;;  %v3196_v53 = vld [vmem:[%s4025_s1 + $0x118] sm:$0xff]  }
 0x10e   : > { %v3238_v58 = vpop.eup %3237  ;;  %v712_v62 = vadd.f32 1.0, %v3236_v56  ;;  %v3197_v54 = vld [vmem:[%s4032_s8 + $0x38] sm:$0xff]   ;;  %v3198_v56 = vld [vmem:[%s4032_s8 + $0x30] sm:$0xff]  }
 0x10f   : > { %3245 = vrcp.f32 %v718_v57  ;;  %v716_v60 = vadd.f32 1.0, %v3238_v58  ;;  %v3240_v61 = vpop.eup %3239  ;;  %v3199_v57 = vld [vmem:[%s4032_s8 + $0x28] sm:$0xff]   ;;  %v3200_v58 = vld [vmem:[%s4032_s8 + $0x20] sm:$0xff]  }
 0x110   : > { %3247 = vrcp.f32 %v714_v55  ;;  %v711_v63 = vadd.f32 1.0, %v3240_v61  ;;  %v3309_v55 = vmov 0.0  }
 0x111   : > { %3249 = vrcp.f32 %v716_v60 }
 0x112   : > { %3251 = vrcp.f32 %v713_v59  ;;  %v3201_v59 = vld [vmem:[%s4032_s8 + $0x18] sm:$0xff]  }
 0x113   : > { %3253 = vrcp.f32 %v712_v62  ;;  %v3202_v62 = vld [vmem:[%s4032_s8 + $0x10] sm:$0xff]  }
 0x114   : > { %3255 = vrcp.f32 %v711_v63 }
 0x118   : > { %v3242_v0 = vpop.eup %3241 }
 0x119   : > { %v741_v4 = vmul.f32 %v3242_v0, %v685_v29  ;;  %v3172_v29 = vld [vmem:[%s4025_s1 + $0x68] sm:$0xff]  }
 0x11a   : > { %v3244_v1 = vpop.eup %3243 }
 0x11b   : > { %v739_v7 = vmul.f32 %v3244_v1, %v683_v35  ;;  %v3179_v35 = vld [vmem:[%s4025_s1 + $0xa0] sm:$0xff]  }
 0x11c   : > { %v3246_v2 = vpop.eup %3245 }
 0x11d   : > { %v3248_v3 = vpop.eup %3247  ;;  %v742_v5 = vmul.f32 %v3246_v2, %v686_v41  ;;  %v3184_v41 = vld [vmem:[%s4025_s1 + $0xb8] sm:$0xff]  }
 0x11e   : > { %v3250_v6 = vpop.eup %3249  ;;  %v738_v11 = vmul.f32 %v3248_v3, %v3451_v22  ;;  %v3165_v22 = vld [vmem:[%s4025_s1 + $0x10] sm:$0xff]   ;;  %v3203_v3 = vld [vmem:[%s4032_s8 + $0x8] sm:$0xff]  }
 0x11f   : > { %v3463_v8 = vpack.c.bf16 %v742_v5, %v741_v4  ;;  %v740_v9 = vmul.f32 %v3250_v6, %v684_v45  ;;  %v3252_v10 = vpop.eup %3251  ;;  %v3188_v45 = vld [vmem:[%s4025_s1 + $0xe8] sm:$0xff]  }
 0x120   : > { %v3254_v13 = vpop.eup %3253  ;;  %v737_v14 = vmul.f32 %v3252_v10, %v3453_v26  ;;  %v3169_v26 = vld [vmem:[%s4025_s1 + $0x40] sm:$0xff]  }
 0x121   : > { %v3466_v12 = vpack.c.bf16 %v740_v9, %v739_v7  ;;  %2931 = vmatprep.subr.bf16.mxu0 %v3463_v8  ;;  %2947 = vmatprep.subr.bf16.mxu1 %v3463_v8  ;;  %v3256_v15 = vpop.eup %3255  ;;  %v736_v17 = vmul.f32 %v3254_v13, %v3456_v32  ;;  %v3174_v32 = vld [vmem:[%s4025_s1 + $0x58] sm:$0xff]  }
 0x122   : > { %2932 = vmatpush3.bf16.msra.mxu0 %v3463_v8  ;;  %2948 = vmatpush3.bf16.msra.mxu1 %v3463_v8  ;;  %v3475_v16 = vpack.c.bf16 %v738_v11, %v737_v14  ;;  %v735_v18 = vmul.f32 %v3256_v15, %v3459_v38  ;;  %v3181_v38 = vld [vmem:[%s4025_s1 + $0x90] sm:$0xff]  }
 0x123   : > { %2933 = vmatprep.subr.bf16.mxu0 %v3466_v12  ;;  %2949 = vmatprep.subr.bf16.mxu1 %v3466_v12 }
 0x124   : > { %v3483_v19 = vpack.c.bf16 %v736_v17, %v735_v18 }
 0x126   : > { %2934 = vmatpush3.bf16.msra.mxu0 %v3466_v12  ;;  %2950 = vmatpush3.bf16.msra.mxu1 %v3466_v12 }
 0x127   : > { %2935 = vmatprep.subr.bf16.mxu0 %v3475_v16  ;;  %2951 = vmatprep.subr.bf16.mxu1 %v3475_v16 }
 0x12a   : > { %2936 = vmatpush3.bf16.msra.mxu0 %v3475_v16  ;;  %2952 = vmatpush3.bf16.msra.mxu1 %v3475_v16 }
 0x12b   : > { %2937 = vmatprep.subr.bf16.mxu0 %v3483_v19  ;;  %2953 = vmatprep.subr.bf16.mxu1 %v3483_v19 }
 0x12e   : > { %2938 = vmatpush3.bf16.msra.mxu0 %v3483_v19  ;;  %2954 = vmatpush3.bf16.msra.mxu1 %v3483_v19 }
 0x12f   : > { %2963 = vmatprep.subr.bf16.mxu0 %v3463_v8  ;;  %2979 = vmatprep.subr.bf16.mxu1 %v3463_v8 }
 0x131   : > { %2940 = vmatmul.mubr.msk.bf16.vlgmr.msra.gmra.mxu0 %vm775_vm0, %v3163_v20  ;;  %2956 = vmatmul.mubr.msk.bf16.vlgmr.msra.gmra.mxu1 %vm775_vm0, %v3164_v21 }
 0x132   : > { %2964 = vmatpush3.bf16.msra.mxu0 %v3463_v8  ;;  %2980 = vmatpush3.bf16.msra.mxu1 %v3463_v8 }
 0x133   : > { %2965 = vmatprep.subr.bf16.mxu0 %v3466_v12  ;;  %2981 = vmatprep.subr.bf16.mxu1 %v3466_v12 }
 0x134   : > { %2943 = vmatprep.mubr.msk.bf16.mxu0 %vm775_vm0, %v3165_v22  ;;  %2959 = vmatprep.mubr.msk.bf16.mxu1 %vm775_vm0, %v3166_v23 }
 0x136   : > { %2966 = vmatpush3.bf16.msra.mxu0 %v3466_v12  ;;  %2982 = vmatpush3.bf16.msra.mxu1 %v3466_v12 }
 0x137   : > { %2967 = vmatprep.subr.bf16.mxu0 %v3475_v16  ;;  %2983 = vmatprep.subr.bf16.mxu1 %v3475_v16 }
 0x139   : > { %2944 = vmatmul.mubr.msk.bf16.gmra.mxu0 %vm775_vm0, %v3167_v24  ;;  %2960 = vmatmul.mubr.msk.bf16.gmra.mxu1 %vm775_vm0, %v3168_v25 }
 0x13a   : > { %2968 = vmatpush3.bf16.msra.mxu0 %v3475_v16  ;;  %2984 = vmatpush3.bf16.msra.mxu1 %v3475_v16 }
 0x13b   : > { %2969 = vmatprep.subr.bf16.mxu0 %v3483_v19  ;;  %2985 = vmatprep.subr.bf16.mxu1 %v3483_v19 }
 0x13c   : > { %2971 = vmatprep.mubr.msk.bf16.mxu0 %vm775_vm0, %v3169_v26  ;;  %2987 = vmatprep.mubr.msk.bf16.mxu1 %vm775_vm0, %v3171_v27 }
 0x13e   : > { %2970 = vmatpush3.bf16.msra.mxu0 %v3483_v19  ;;  %2986 = vmatpush3.bf16.msra.mxu1 %v3483_v19 }
 0x13f   : > { %2995 = vmatprep.subr.bf16.mxu0 %v3463_v8  ;;  %3011 = vmatprep.subr.bf16.mxu1 %v3463_v8 }
 0x141   : > { %2972 = vmatmul.mubr.msk.bf16.vlgmr.msra.gmra.mxu0 %vm775_vm0, %v3170_v28  ;;  %2988 = vmatmul.mubr.msk.bf16.vlgmr.msra.gmra.mxu1 %vm775_vm0, %v3172_v29 }
 0x142   : > { %2996 = vmatpush3.bf16.msra.mxu0 %v3463_v8  ;;  %3012 = vmatpush3.bf16.msra.mxu1 %v3463_v8 }
 0x143   : > { %2997 = vmatprep.subr.bf16.mxu0 %v3466_v12  ;;  %3013 = vmatprep.subr.bf16.mxu1 %v3466_v12 }
 0x144   : > { %2975 = vmatprep.mubr.msk.bf16.mxu0 %vm775_vm0, %v3173_v30  ;;  %2991 = vmatprep.mubr.msk.bf16.mxu1 %vm775_vm0, %v3175_v31 }
 0x146   : > { %2998 = vmatpush3.bf16.msra.mxu0 %v3466_v12  ;;  %3014 = vmatpush3.bf16.msra.mxu1 %v3466_v12 }
 0x147   : > { %2999 = vmatprep.subr.bf16.mxu0 %v3475_v16  ;;  %3015 = vmatprep.subr.bf16.mxu1 %v3475_v16 }
 0x149   : > { %2976 = vmatmul.mubr.msk.bf16.gmra.mxu0 %vm775_vm0, %v3174_v32  ;;  %2992 = vmatmul.mubr.msk.bf16.gmra.mxu1 %vm775_vm0, %v3176_v33 }
 0x14a   : > { %3000 = vmatpush3.bf16.msra.mxu0 %v3475_v16  ;;  %3016 = vmatpush3.bf16.msra.mxu1 %v3475_v16 }
 0x14b   : > { %3001 = vmatprep.subr.bf16.mxu0 %v3483_v19  ;;  %3017 = vmatprep.subr.bf16.mxu1 %v3483_v19 }
 0x14c   : > { %3003 = vmatprep.mubr.msk.bf16.mxu0 %vm775_vm0, %v3177_v34  ;;  %3019 = vmatprep.mubr.msk.bf16.mxu1 %vm775_vm0, %v3179_v35 }
 0x14e   : > { %3002 = vmatpush3.bf16.msra.mxu0 %v3483_v19  ;;  %3018 = vmatpush3.bf16.msra.mxu1 %v3483_v19 }
 0x14f   : > { %3027 = vmatprep.subr.bf16.mxu0 %v3463_v8  ;;  %3043 = vmatprep.subr.bf16.mxu1 %v3463_v8 }
 0x151   : > { %3004 = vmatmul.mubr.msk.bf16.vlgmr.msra.gmra.mxu0 %vm775_vm0, %v3178_v36  ;;  %3020 = vmatmul.mubr.msk.bf16.vlgmr.msra.gmra.mxu1 %vm775_vm0, %v3180_v37  ;;  %v2567_v37 = vld [vmem:[%s4029_s5] ss:$0 sm:$0xff] }
 0x152   : > { %3028 = vmatpush3.bf16.msra.mxu0 %v3463_v8  ;;  %3044 = vmatpush3.bf16.msra.mxu1 %v3463_v8 }
 0x153   : > { %3029 = vmatprep.subr.bf16.mxu0 %v3466_v12  ;;  %3045 = vmatprep.subr.bf16.mxu1 %v3466_v12 }
 0x154   : > { %3007 = vmatprep.mubr.msk.bf16.mxu0 %vm775_vm0, %v3181_v38  ;;  %3023 = vmatprep.mubr.msk.bf16.mxu1 %vm775_vm0, %v3183_v39  ;;  %v2585_v38 = vld [vmem:[%s4029_s5 + $0x1] ss:$0 sm:$0xff] }
 0x156   : > { %3030 = vmatpush3.bf16.msra.mxu0 %v3466_v12  ;;  %3046 = vmatpush3.bf16.msra.mxu1 %v3466_v12 }
 0x157   : > { %3031 = vmatprep.subr.bf16.mxu0 %v3475_v16  ;;  %3047 = vmatprep.subr.bf16.mxu1 %v3475_v16 }
 0x159   : > { %3008 = vmatmul.mubr.msk.bf16.gmra.mxu0 %vm775_vm0, %v3182_v40  ;;  %3024 = vmatmul.mubr.msk.bf16.gmra.mxu1 %vm775_vm0, %v3184_v41 }
 0x15a   : > { %3032 = vmatpush3.bf16.msra.mxu0 %v3475_v16  ;;  %3048 = vmatpush3.bf16.msra.mxu1 %v3475_v16 }
 0x15b   : > { %3033 = vmatprep.subr.bf16.mxu0 %v3483_v19  ;;  %3049 = vmatprep.subr.bf16.mxu1 %v3483_v19 }
 0x15c   : > { %3035 = vmatprep.mubr.msk.bf16.mxu0 %vm775_vm0, %v3185_v42  ;;  %3051 = vmatprep.mubr.msk.bf16.mxu1 %vm775_vm0, %v3187_v43 }
 0x15e   : > { %3034 = vmatpush3.bf16.msra.mxu0 %v3483_v19  ;;  %3050 = vmatpush3.bf16.msra.mxu1 %v3483_v19 }
 0x15f   : > { %3059 = vmatprep.subr.bf16.mxu0 %v3463_v8  ;;  %3075 = vmatprep.subr.bf16.mxu1 %v3309_v55 }
 0x161   : > { %3036 = vmatmul.mubr.msk.bf16.vlgmr.msra.gmra.mxu0 %vm775_vm0, %v3186_v44  ;;  %3052 = vmatmul.mubr.msk.bf16.vlgmr.msra.gmra.mxu1 %vm775_vm0, %v3188_v45 }
 0x162   : > { %3060 = vmatpush3.bf16.msra.mxu0 %v3463_v8  ;;  %3039 = vmatprep.mubr.msk.bf16.mxu0 %vm775_vm0, %v3189_v46  ;;  %v3204_v8 = vld [vmem:[%s4032_s8] sm:$0xff]  }
 0x163   : > { %3061 = vmatprep.subr.bf16.mxu0 %v3466_v12  ;;  %3055 = vmatprep.mubr.msk.bf16.mxu1 %vm775_vm0, %v3191_v47 }
 0x164   : > { %3076 = vmatpush3.bf16.msra.mxu1 %v3197_v54 }
 0x165   : > { %3077 = vmatprep.subr.bf16.mxu1 %v3309_v55 }
 0x166   : > { %3062 = vmatpush3.bf16.msra.mxu0 %v3466_v12 }
 0x167   : > { %3063 = vmatprep.subr.bf16.mxu0 %v3475_v16 }
 0x168   : > { %3078 = vmatpush3.bf16.msra.mxu1 %v3198_v56 }
 0x169   : > { %3040 = vmatmul.mubr.msk.bf16.gmra.mxu0 %vm775_vm0, %v3190_v48  ;;  %3056 = vmatmul.mubr.msk.bf16.gmra.mxu1 %vm775_vm0, %v3192_v49  ;;  %v2603_v49 = vld [vmem:[%s4029_s5 + $0x2] ss:$0 sm:$0xff] }
 0x16a   : > { %3064 = vmatpush3.bf16.msra.mxu0 %v3475_v16  ;;  %3067 = vmatprep.mubr.msk.bf16.mxu0 %vm775_vm0, %v3193_v50 }
 0x16b   : > { %3065 = vmatprep.subr.bf16.mxu0 %v3483_v19  ;;  %3079 = vmatprep.subr.bf16.mxu1 %v3309_v55 }
 0x16c   : > { %3080 = vmatpush3.bf16.msra.mxu1 %v3199_v57  ;;  %3091 = vmatprep.mubr.msk.bf16.mxu1 %vm3310_vm1, %v3309_v55 }
 0x16d   : > { %3081 = vmatprep.subr.bf16.mxu1 %v3309_v55 }
 0x16e   : > { %3066 = vmatpush3.bf16.msra.mxu0 %v3483_v19 }
 0x16f   : > { %3095 = vmatprep.subr.bf16.mxu0 %v3309_v55 }
 0x170   : > { %3082 = vmatpush3.bf16.msra.mxu1 %v3200_v58 }
 0x171   : > { %3068 = vmatmul.mubr.msk.bf16.vlgmr.msra.gmra.mxu0 %vm775_vm0, %v3194_v51  ;;  %3083 = vmatprep.subr.bf16.mxu1 %v3309_v55 }
 0x172   : > { %3071 = vmatprep.mubr.msk.bf16.mxu0 %vm775_vm0, %v3195_v52 }
 0x174   : > { %3084 = vmatpush3.bf16.msra.mxu1 %v3201_v59 }
 0x175   : > { %3085 = vmatprep.subr.bf16.mxu1 %v3309_v55 }
 0x178   : > { %3086 = vmatpush3.bf16.msra.mxu1 %v3202_v62 }
 0x179   : > { %3072 = vmatmul.mubr.msk.bf16.gmra.mxu0 %vm775_vm0, %v3196_v53  ;;  %3087 = vmatprep.subr.bf16.mxu1 %v3309_v55 }
 0x17a   : > { %3111 = vmatprep.mubr.msk.bf16.mxu0 %vm3310_vm1, %v3309_v55 }
 0x17c   : > { %3088 = vmatpush3.bf16.msra.mxu1 %v3203_v3 }
 0x17d   : > { %3089 = vmatprep.subr.bf16.mxu1 %v3309_v55 }
 0x180   : > { %3090 = vmatpush3.bf16.msra.mxu1 %v3204_v8 }
 0x1f1   : > { %v2941_v60 = vpop.f32.mrf.mxu0  ;;  %v2957_v61 = vpop.f32.mrf.mxu1 }
 0x1f2   : > { %v862_v41 = vmul.f32 %v2941_v60, %v2567_v37  ;;  %v992_v42 = vmul.f32 %v2957_v61, %v2585_v38 }
 0x1f3   : > { %v822_v63 = vpop.f32.mrf.mxu0  ;;  %v951_v0 = vpop.f32.mrf.mxu1 }
 0x1f4   : > { %v860_v45 = vmul.f32 %v2567_v37, %v822_v63  ;;  %v990_v46 = vmul.f32 %v2585_v38, %v951_v0  ;;  %v1000_v57 = vadd.f32 %v992_v42, %v862_v41 }
 0x1f5   : > { %v2942_v1 = vpop.f32.mrf.mxu0  ;;  %v2958_v2 = vpop.f32.mrf.mxu1 }
 0x1f6   : > { %v863_v47 = vmul.f32 %v2942_v1, %v2567_v37  ;;  %v993_v48 = vmul.f32 %v2958_v2, %v2585_v38  ;;  %v998_v63 = vadd.f32 %v990_v46, %v860_v45  ;;  %v2621_v2 = vld [vmem:[%s4029_s5 + $0x3] ss:$0 sm:$0xff] }
 0x1f7   : > { %v825_v4 = vpop.f32.mrf.mxu0  ;;  %v954_v5 = vpop.f32.mrf.mxu1 }
 0x1f8   : > { %v861_v50 = vmul.f32 %v2567_v37, %v825_v4  ;;  %v991_v51 = vmul.f32 %v2585_v38, %v954_v5  ;;  %v1001_v0 = vadd.f32 %v993_v48, %v863_v47 }
 0x1f9   : > { %v2945_v6 = vpop.f32.mrf.mxu0  ;;  %v2961_v7 = vpop.f32.mrf.mxu1 }
 0x1fa   : > { %v866_v52 = vmul.f32 %v2945_v6, %v2567_v37  ;;  %v996_v53 = vmul.f32 %v2961_v7, %v2585_v38  ;;  %v999_v4 = vadd.f32 %v991_v51, %v861_v50 }
 0x1fb   : > { %v838_v9 = vpop.f32.mrf.mxu0  ;;  %v967_v10 = vpop.f32.mrf.mxu1 }
 0x1fc   : > { %v864_v58 = vmul.f32 %v2567_v37, %v838_v9  ;;  %v994_v59 = vmul.f32 %v2585_v38, %v967_v10  ;;  %v1004_v5 = vadd.f32 %v996_v53, %v866_v52 }
 0x1fd   : > { %v3718_v11 = vpop.f32.mrf.mxu0  ;;  %v3720_v12 = vpop.f32.mrf.mxu1 }
 0x1fe   : > { %v867_v10 = vmul.f32 %v3718_v11, %v2567_v37 }
 0x1ff   : > { %v841_v13 = vpop.f32.mrf.mxu0  ;;  %v970_v14 = vpop.f32.mrf.mxu1 }
 0x200   : > { %v865_v41 = vmul.f32 %v2567_v37, %v841_v13  ;;  %v995_v42 = vmul.f32 %v2585_v38, %v970_v14 }
 0x201   : > { %v2973_v15 = vpop.f32.mrf.mxu0  ;;  %v3722_v16 = vpop.f32.mrf.mxu1 }
 0x202   : > { %v1122_v60 = vmul.f32 %v2973_v15, %v2603_v49  ;;  %v997_v15 = vmul.f32 %v3720_v12, %v2585_v38  ;;  %v1252_v46 = vmul.f32 %v3722_v16, %v2621_v2  ;;  %v1003_v52 = vadd.f32 %v995_v42, %v865_v41 }
 0x203   : > { %v1081_v17 = vpop.f32.mrf.mxu0  ;;  %v3724_v18 = vpop.f32.mrf.mxu1 }
 0x204   : > { %v1120_v1 = vmul.f32 %v2603_v49, %v1081_v17  ;;  %v1002_v17 = vadd.f32 %v994_v59, %v864_v58  ;;  %v1130_v45 = vadd.f32 %v1122_v60, %v1000_v57  ;;  %v1250_v11 = vmul.f32 %v2621_v2, %v3724_v18 }
 0x205   : > { %v2974_v19 = vpop.f32.mrf.mxu0  ;;  %v3726_v20 = vpop.f32.mrf.mxu1  ;;  %v1005_v51 = vadd.f32 %v997_v15, %v867_v10 }
 0x206   : > { %v1123_v3 = vmul.f32 %v2974_v19, %v2603_v49  ;;  %v3792_v19 = vld [vmem:[%s4029_s5 + $0x4] ss:$0 sm:$0xff]  ;;  %v1128_v48 = vadd.f32 %v1120_v1, %v998_v63  ;;  %v1253_v12 = vmul.f32 %v3726_v20, %v2621_v2  ;;  %v1260_v60 = vadd.f32 %v1252_v46, %v1130_v45 }
 0x207   : > { %v1084_v21 = vpop.f32.mrf.mxu0  ;;  %v3728_v22 = vpop.f32.mrf.mxu1 }
 0x208   : > { %v1121_v6 = vmul.f32 %v2603_v49, %v1084_v21  ;;  %v1131_v50 = vadd.f32 %v1123_v3, %v1001_v0  ;;  %v1251_v37 = vmul.f32 %v2621_v2, %v3728_v22  ;;  %v3811_v22 = vld [vmem:[%s4029_s5 + $0x5] ss:$0 sm:$0xff]  ;;  %v1258_v63 = vadd.f32 %v1250_v11, %v1128_v48 }
 0x209   : > { %v2977_v23 = vpop.f32.mrf.mxu0  ;;  %v3730_v24 = vpop.f32.mrf.mxu1 }
 0x20a   : > { %v1126_v7 = vmul.f32 %v2977_v23, %v2603_v49  ;;  %v1129_v13 = vadd.f32 %v1121_v6, %v999_v4  ;;  %v1256_v16 = vmul.f32 %v3730_v24, %v2621_v2  ;;  %v1261_v0 = vadd.f32 %v1253_v12, %v1131_v50 }
 0x20b   : > { %v1097_v25 = vpop.f32.mrf.mxu0  ;;  %v3732_v26 = vpop.f32.mrf.mxu1 }
 0x20c   : > { %v1124_v47 = vmul.f32 %v2603_v49, %v1097_v25  ;;  %v1134_v14 = vadd.f32 %v1126_v7, %v1004_v5  ;;  %v1254_v18 = vmul.f32 %v2621_v2, %v3732_v26  ;;  %v1259_v1 = vadd.f32 %v1251_v37, %v1129_v13 }
 0x20d   : > { %v3734_v27 = vpop.f32.mrf.mxu0  ;;  %v3736_v28 = vpop.f32.mrf.mxu1 }
 0x20e   : > { %v1132_v57 = vadd.f32 %v1124_v47, %v1002_v17  ;;  %v1127_v58 = vmul.f32 %v3734_v27, %v2603_v49  ;;  %v1264_v3 = vadd.f32 %v1256_v16, %v1134_v14  ;;  %v1257_v5 = vmul.f32 %v3736_v28, %v2621_v2 }
 0x20f   : > { %v3738_v29 = vpop.f32.mrf.mxu0  ;;  %v3740_v30 = vpop.f32.mrf.mxu1 }
 0x210   : > { %v1262_v10 = vadd.f32 %v1254_v18, %v1132_v57  ;;  %v1255_v17 = vmul.f32 %v2621_v2, %v3740_v30 }
 0x211   : > { %v3742_v31 = vpop.f32.mrf.mxu0  ;;  %v3744_v32 = vpop.f32.mrf.mxu1 }
 0x212   : > { %v1382_v53 = vmul.f32 %v3742_v31, %v3792_v19  ;;  %v1125_v31 = vmul.f32 %v2603_v49, %v3738_v29  ;;  %v1512_v29 = vmul.f32 %v3744_v32, %v3811_v22 }
 0x213   : > { %v3746_v33 = vpop.f32.mrf.mxu0  ;;  %v3748_v34 = vpop.f32.mrf.mxu1 }
 0x214   : > { %v1380_v20 = vmul.f32 %v3792_v19, %v3746_v33  ;;  %v3821_v33 = vld [vmem:[%s4029_s5 + $0x6] ss:$0 sm:$0xff]  ;;  %v1390_v6 = vadd.f32 %v1382_v53, %v1260_v60  ;;  %v1133_v42 = vadd.f32 %v1125_v31, %v1003_v52 }
 0x215   : > { %v3750_v35 = vpop.f32.mrf.mxu0  ;;  %v3752_v36 = vpop.f32.mrf.mxu1 }
 0x216   : > { %v1383_v26 = vmul.f32 %v3750_v35, %v3792_v19  ;;  %v1135_v35 = vadd.f32 %v1127_v58, %v1005_v51  ;;  %v1388_v15 = vadd.f32 %v1380_v20, %v1258_v63  ;;  %v1520_v30 = vadd.f32 %v1512_v29, %v1390_v6 }
 0x217   : > { %v3760_v39 = vpop.f32.mrf.mxu0  ;;  %v3762_v40 = vpop.f32.mrf.mxu1 }
 0x218   : > { %v1381_v27 = vmul.f32 %v3792_v19, %v3760_v39  ;;  %v1510_v39 = vmul.f32 %v3811_v22, %v3748_v34  ;;  %v1391_v32 = vadd.f32 %v1383_v26, %v1261_v0  ;;  %v1511_v47 = vmul.f32 %v3811_v22, %v3762_v40  ;;  %v3841_v34 = vld [vmem:[%s4029_s5 + $0x7] ss:$0 sm:$0xff] }
 0x219   : > { %v3764_v43 = vpop.f32.mrf.mxu0  ;;  %v3766_v44 = vpop.f32.mrf.mxu1  ;;  %v1265_v11 = vadd.f32 %v1257_v5, %v1135_v35 }
 0x21a   : > { %v1386_v49 = vmul.f32 %v3764_v43, %v3792_v19  ;;  %v1389_v46 = vadd.f32 %v1381_v27, %v1259_v1  ;;  %v1513_v43 = vmul.f32 %v3752_v36, %v3811_v22  ;;  %v1518_v12 = vadd.f32 %v1510_v39, %v1388_v15 }
 0x21b   : > { %v3771_v54 = vpop.f32.mrf.mxu0  ;;  %v3773_v56 = vpop.f32.mrf.mxu1 }
 0x21c   : > { %v1384_v28 = vmul.f32 %v3792_v19, %v3771_v54  ;;  %v1394_v2 = vadd.f32 %v1386_v49, %v1264_v3  ;;  %v1516_v54 = vmul.f32 %v3766_v44, %v3811_v22  ;;  %v1514_v37 = vmul.f32 %v3811_v22, %v3773_v56 }
 0x21d   : > { %v3775_v61 = vpop.f32.mrf.mxu0  ;;  %v3777_v62 = vpop.f32.mrf.mxu1  ;;  %v1263_v44 = vadd.f32 %v1255_v17, %v1133_v42  ;;  %v1521_v52 = vadd.f32 %v1513_v43, %v1391_v32 }
 0x21e   : > { %v1387_v36 = vmul.f32 %v3775_v61, %v3792_v19  ;;  %v1392_v14 = vadd.f32 %v1384_v28, %v1262_v10  ;;  %v3857_v61 = vld [vmem:[%s4029_s5 + $0x8] ss:$0 sm:$0xff]  ;;  %v1524_v58 = vadd.f32 %v1516_v54, %v1394_v2  ;;  %v1517_v60 = vmul.f32 %v3777_v62, %v3811_v22  ;;  %v3875_v62 = vld [vmem:[%s4030_s6] ss:$0 sm:$0xff] }
 0x21f   : > { %v3782_v8 = vpop.f32.mrf.mxu0  ;;  %v3784_v9 = vpop.f32.mrf.mxu1 }
 0x220   : > { %v1385_v18 = vmul.f32 %v3792_v19, %v3782_v8  ;;  %v1522_v1 = vadd.f32 %v1514_v37, %v1392_v14  ;;  %v1515_v8 = vmul.f32 %v3811_v22, %v3784_v9 }
 0x221   : > { %v3037_v21 = vpop.f32.mrf.mxu0  ;;  %v3794_v23 = vpop.f32.mrf.mxu1 }
 0x222   : > { %v1642_v45 = vmul.f32 %v3037_v21, %v3821_v33  ;;  %v1772_v51 = vmul.f32 %v3794_v23, %v3841_v34  ;;  %v1393_v5 = vadd.f32 %v1385_v18, %v1263_v44 }
 0x223   : > { %v1601_v25 = vpop.f32.mrf.mxu0  ;;  %v3800_v38 = vpop.f32.mrf.mxu1 }
 0x224   : > { %v1640_v21 = vmul.f32 %v3821_v33, %v1601_v25  ;;  %v1650_v16 = vadd.f32 %v1642_v45, %v1520_v30  ;;  %v1519_v25 = vadd.f32 %v1511_v47, %v1389_v46  ;;  %v1770_v20 = vmul.f32 %v3841_v34, %v3800_v38 }
 0x225   : > { %v3038_v24 = vpop.f32.mrf.mxu0  ;;  %v3054_v59 = vpop.f32.mrf.mxu1 }
 0x226   : > { %v1643_v40 = vmul.f32 %v3038_v24, %v3821_v33  ;;  %v1648_v56 = vadd.f32 %v1640_v21, %v1518_v12  ;;  %v1395_v24 = vadd.f32 %v1387_v36, %v1265_v11  ;;  %v1773_v0 = vmul.f32 %v3054_v59, %v3841_v34 }
 0x227   : > { %v1604_v4 = vpop.f32.mrf.mxu0  ;;  %v1734_v7 = vpop.f32.mrf.mxu1  ;;  %v1780_v3 = vadd.f32 %v1772_v51, %v1650_v16 }
 0x228   : > { %v1641_v53 = vmul.f32 %v3821_v33, %v1604_v4  ;;  %v1651_v63 = vadd.f32 %v1643_v40, %v1521_v52  ;;  %v1771_v38 = vmul.f32 %v3841_v34, %v1734_v7  ;;  %v1778_v6 = vadd.f32 %v1770_v20, %v1648_v56  ;;  %v2713_v7 = vld [vmem:[%s4031_s7] ss:$0 sm:$0xff] }
 0x229   : > { %v3041_v41 = vpop.f32.mrf.mxu0  ;;  %v3057_v50 = vpop.f32.mrf.mxu1  ;;  %v1525_v10 = vadd.f32 %v1517_v60, %v1395_v24 }
 0x22a   : > { %v1646_v26 = vmul.f32 %v3041_v41, %v3821_v33  ;;  %v1649_v19 = vadd.f32 %v1641_v53, %v1519_v25  ;;  %v1781_v15 = vadd.f32 %v1773_v0, %v1651_v63  ;;  %v1776_v9 = vmul.f32 %v3057_v50, %v3841_v34 }
 0x22b   : > { %v1617_v48 = vpop.f32.mrf.mxu0  ;;  %v1747_v23 = vpop.f32.mrf.mxu1  ;;  %v1523_v50 = vadd.f32 %v1515_v8, %v1393_v5 }
 0x22c   : > { %v1644_v4 = vmul.f32 %v3821_v33, %v1617_v48  ;;  %v1654_v41 = vadd.f32 %v1646_v26, %v1524_v58  ;;  %v1779_v45 = vadd.f32 %v1771_v38, %v1649_v19  ;;  %v1774_v46 = vmul.f32 %v3841_v34, %v1747_v23 }
 0x22d   : > { %v3042_v13 = vpop.f32.mrf.mxu0  ;;  %v3058_v29 = vpop.f32.mrf.mxu1 }
 0x22e   : > { %v1647_v22 = vmul.f32 %v3042_v13, %v3821_v33  ;;  %v1652_v32 = vadd.f32 %v1644_v4, %v1522_v1  ;;  %v1777_v12 = vmul.f32 %v3058_v29, %v3841_v34  ;;  %v1784_v37 = vadd.f32 %v1776_v9, %v1654_v41 }
 0x22f   : > { %v1620_v57 = vpop.f32.mrf.mxu0  ;;  %v1750_v48 = vpop.f32.mrf.mxu1 }
 0x230   : > { %v1645_v43 = vmul.f32 %v3821_v33, %v1620_v57  ;;  %v1655_v11 = vadd.f32 %v1647_v22, %v1525_v10  ;;  %v1775_v51 = vmul.f32 %v3841_v34, %v1750_v48  ;;  %v1782_v25 = vadd.f32 %v1774_v46, %v1652_v32 }
 0x231   : > { %v3069_v31 = vpop.f32.mrf.mxu0 }
 0x232   : > { %v1902_v27 = vmul.f32 %v3069_v31, %v3857_v61  ;;  %v1653_v16 = vadd.f32 %v1645_v43, %v1523_v50  ;;  %v1785_v18 = vadd.f32 %v1777_v12, %v1655_v11 }
 0x233   : > { %v1861_v59 = vpop.f32.mrf.mxu0 }
 0x234   : > { %v1910_v49 = vadd.f32 %v1902_v27, %v1780_v3  ;;  %v1900_v35 = vmul.f32 %v3857_v61, %v1861_v59  ;;  %v1783_v63 = vadd.f32 %v1775_v51, %v1653_v16 }
 0x235   : > { %v3070_v39 = vpop.f32.mrf.mxu0 }
 0x236   : > { %v1925_v42 = vmul.f32 %v3875_v62, %v1910_v49  ;;  %v1908_v17 = vadd.f32 %v1900_v35, %v1778_v6  ;;  %v1903_v28 = vmul.f32 %v3070_v39, %v3857_v61 }
 0x237   : > { %v1864_v47 = vpop.f32.mrf.mxu0 }
 0x238   : > { %v3887_v30 = vadd.f32 %v2713_v7, %v1925_v42  ;;  %v1923_v2 = vmul.f32 %v3875_v62, %v1908_v17  ;;  %v1911_v54 = vadd.f32 %v1903_v28, %v1781_v15  ;;  %v1901_v21 = vmul.f32 %v3857_v61, %v1864_v47 }
 0x239   : > { %v3073_v36 = vpop.f32.mrf.mxu0 }
 0x23a   : > { %v2716_v40 = vmul.f32 -1.442695, %v3887_v30  ;;  %v3893_v13 = vadd.f32 %v2713_v7, %v1923_v2  ;;  %v1926_v33 = vmul.f32 %v3875_v62, %v1911_v54  ;;  %v1909_v14 = vadd.f32 %v1901_v21, %v1779_v45 }
 0x23b   : > { %v1906_v44 = vmul.f32 %v3073_v36, %v3857_v61  ;;  %v1877_v52 = vpop.f32.mrf.mxu0 }
 0x23c   : > { %v2714_v53 = vmul.f32 -1.442695, %v3893_v13  ;;  %v3899_v57 = vadd.f32 %v2713_v7, %v1926_v33  ;;  %v1924_v58 = vmul.f32 %v3875_v62, %v1909_v14  ;;  %3257 = vpow2.f32 %v2716_v40 }
 0x23d   : > { %v1914_v56 = vadd.f32 %v1906_v44, %v1784_v37  ;;  %v1904_v20 = vmul.f32 %v3857_v61, %v1877_v52  ;;  %v3074_v23 = vpop.f32.mrf.mxu0 }
 0x23e   : > { %3259 = vpow2.f32 %v2714_v53  ;;  %v2717_v24 = vmul.f32 -1.442695, %v3899_v57  ;;  %v1939_v34 = vadd.f32 %v2713_v7, %v1924_v58  ;;  %v1907_v60 = vmul.f32 %v3074_v23, %v3857_v61 }
 0x23f   : > { %v1929_v0 = vmul.f32 %v3875_v62, %v1914_v56  ;;  %v1912_v31 = vadd.f32 %v1904_v20, %v1782_v25  ;;  %v1880_v1 = vpop.f32.mrf.mxu0 }
 0x240   : > { %3261 = vpow2.f32 %v2717_v24  ;;  %v2715_v3 = vmul.f32 -1.442695, %v1939_v34  ;;  %v1915_v26 = vadd.f32 %v1907_v60, %v1785_v18  ;;  %v1905_v27 = vmul.f32 %v3857_v61, %v1880_v1  ;;  %v3205_v1 = vld [vmem:[%s4034_s10 + $0x38] sm:$0xff]  }
 0x241   : > { %v1944_v8 = vadd.f32 %v2713_v7, %v1929_v0  ;;  %v1927_v19 = vmul.f32 %v3875_v62, %v1912_v31  ;;  %3096 = vmatpush3.bf16.msra.mxu0 %v3205_v1 }
 0x242   : > { %3263 = vpow2.f32 %v2715_v3  ;;  %v1930_v38 = vmul.f32 %v3875_v62, %v1915_v26  ;;  %v1913_v4 = vadd.f32 %v1905_v27, %v1783_v63  ;;  %3097 = vmatprep.subr.bf16.mxu0 %v3309_v55  ;;  %v3206_v3 = vld [vmem:[%s4034_s10 + $0x30] sm:$0xff]   ;;  %v3207_v26 = vld [vmem:[%s4034_s10 + $0x28] sm:$0xff]   ;;  %v3208_v27 = vld [vmem:[%s4034_s10 + $0x20] sm:$0xff]  }
 0x243   : > { %v2720_v59 = vmul.f32 -1.442695, %v1944_v8  ;;  %v1942_v5 = vadd.f32 %v2713_v7, %v1927_v19  ;;  %v3210_v19 = vld [vmem:[%s4034_s10 + $0x10] sm:$0xff]  }
 0x244   : > { %v1945_v6 = vadd.f32 %v2713_v7, %v1930_v38  ;;  %v1928_v29 = vmul.f32 %v3875_v62, %v1913_v4  ;;  %v3211_v38 = vld [vmem:[%s4034_s10 + $0x8] sm:$0xff]   ;;  %v3212_v4 = vld [vmem:[%s4034_s10] sm:$0xff]  }
 0x245   : > { %3265 = vpow2.f32 %v2720_v59  ;;  %v2718_v49 = vmul.f32 -1.442695, %v1942_v5  ;;  %3098 = vmatpush3.bf16.msra.mxu0 %v3206_v3  ;;  %v2034_v59 = vld [vmem:[%s4033_s9] sm:$0x1] }
 0x246   : > { %v2721_v35 = vmul.f32 -1.442695, %v1945_v6  ;;  %v1943_v10 = vadd.f32 %v2713_v7, %v1928_v29  ;;  %3099 = vmatprep.subr.bf16.mxu0 %v3309_v55 }
 0x247   : > { %3267 = vpow2.f32 %v2718_v49 }
 0x248   : > { %3269 = vpow2.f32 %v2721_v35  ;;  %v2719_v15 = vmul.f32 -1.442695, %v1943_v10 }
 0x249   : > { %v3258_v61 = vpop.eup %3257  ;;  %3100 = vmatpush3.bf16.msra.mxu0 %v3207_v26  ;;  %v3298_v26 = vld [vmem:[%s3416_s29] sm:$0xff]  }
 0x24a   : > { %3271 = vpow2.f32 %v2719_v15  ;;  %v1972_v41 = vadd.f32 1.0, %v3258_v61  ;;  %3101 = vmatprep.subr.bf16.mxu0 %v3309_v55 }
 0x24b   : > { %v3260_v9 = vpop.eup %3259 }
 0x24c   : > { %v1970_v22 = vadd.f32 1.0, %v3260_v9 }
 0x24d   : > { %v3262_v39 = vpop.eup %3261  ;;  %3102 = vmatpush3.bf16.msra.mxu0 %v3208_v27  ;;  %v2417_v27 = vunpack.c.l.bf16 %v3298_v26 }
 0x24e   : > { %3273 = vrcp.f32 %v1970_v22  ;;  %v1973_v17 = vadd.f32 1.0, %v3262_v39  ;;  %3103 = vmatprep.subr.bf16.mxu0 %v3309_v55  ;;  %v3213_v39 = vld [vmem:[%s4036_s12 + $0x38] sm:$0xff]  }
 0x24f   : > { %v3264_v42 = vpop.eup %3263  ;;  %3275 = vrcp.f32 %v1972_v41  ;;  %3115 = vmatprep.subr.bf16.mxu1 %v3213_v39  ;;  %v3214_v41 = vld [vmem:[%s4036_s12 + $0x30] sm:$0xff]  }
 0x250   : > { %v1971_v28 = vadd.f32 1.0, %v3264_v42  ;;  %v3215_v42 = vld [vmem:[%s4036_s12 + $0x28] sm:$0xff]  }
 0x252   : > { %v3266_v45 = vpop.eup %3265  ;;  %3277 = vrcp.f32 %v1971_v28  ;;  %v3217_v28 = vld [vmem:[%s4036_s12 + $0x18] sm:$0xff]  }
 0x253   : > { %3279 = vrcp.f32 %v1973_v17  ;;  %v1976_v7 = vadd.f32 1.0, %v3266_v45  ;;  %v3216_v17 = vld [vmem:[%s4036_s12 + $0x20] sm:$0xff]   ;;  %v3218_v45 = vld [vmem:[%s4036_s12 + $0x10] sm:$0xff]  }
 0x254   : > { %v3268_v62 = vpop.eup %3267 }
 0x255   : > { %v3270_v32 = vpop.eup %3269  ;;  %v1974_v46 = vadd.f32 1.0, %v3268_v62  ;;  %v3219_v62 = vld [vmem:[%s4036_s12 + $0x8] sm:$0xff]  }
 0x256   : > { %v1977_v47 = vadd.f32 1.0, %v3270_v32  ;;  %v3220_v32 = vld [vmem:[%s4036_s12] sm:$0xff]  }
 0x257   : > { %v3272_v43 = vpop.eup %3271  ;;  %3281 = vrcp.f32 %v1974_v46 }
 0x258   : > { %v1975_v48 = vadd.f32 1.0, %v3272_v43  ;;  %3283 = vrcp.f32 %v1976_v7  ;;  %v2147_v7 = vld [vmem:[%s4035_s11] sm:$0x1] }
 0x25a   : > { %3285 = vrcp.f32 %v1975_v48 }
 0x25b   : > { %3287 = vrcp.f32 %v1977_v47  ;;  %v3274_v2 = vpop.eup %3273 }
 0x25c   : > { %v3276_v54 = vpop.eup %3275  ;;  %v3911_v50 = vmul.f32 %v3274_v2, %v3893_v13 }
 0x25d   : > { %v3916_v36 = vmul.f32 %v3276_v54, %v3887_v30 }
 0x25f   : > { %v3278_v21 = vpop.eup %3277 }
 0x260   : > { %v3913_v11 = vmul.f32 %v3278_v21, %v1939_v34  ;;  %v3280_v12 = vpop.eup %3279 }
 0x261   : > { %v3921_v14 = vmul.f32 %v3280_v12, %v3899_v57 }
 0x262   : > { %v2002_v40 = vadd.f32 %v3913_v11, %v3911_v50 }
 0x264   : > { %v3282_v33 = vpop.eup %3281  ;;  %v2003_v37 = vadd.f32 %v2002_v40, %v3916_v36  ;;  %v2242_v40 = vlaneseq }
 0x265   : > { %v3284_v16 = vpop.eup %3283  ;;  %v3924_v51 = vmul.f32 %v3282_v33, %v1942_v5 }
 0x266   : > { %v2004_v13 = vadd.f32 %v2003_v37, %v3921_v14  ;;  %v3930_v53 = vmul.f32 %v3284_v16, %v1944_v8  ;;  %v3209_v8 = vld [vmem:[%s4034_s10 + $0x18] sm:$0xff]   ;;  %v2243_v33 = vshrl.u32 %v2242_v40, 7 }
 0x267   : > { %v3286_v44 = vpop.eup %3285  ;;  %3104 = vmatpush3.bf16.msra.mxu0 %v3209_v8 }
 0x268   : > { %v2005_v52 = vadd.f32 %v2004_v13, %v3924_v51  ;;  %v3928_v25 = vmul.f32 %v3286_v44, %v1943_v10  ;;  %v3288_v30 = vpop.eup %3287  ;;  %3105 = vmatprep.subr.bf16.mxu0 %v3309_v55  ;;  %v2244_v37 = vsub.s32 0, %v2243_v33 }
 0x269   : > { %v3933_v18 = vmul.f32 %v3288_v30, %v1945_v6 }
 0x26a   : > { %v2006_v58 = vadd.f32 %v2005_v52, %v3928_v25 }
 0x26b   : > { %3106 = vmatpush3.bf16.msra.mxu0 %v3210_v19  ;;  %v2418_v19 = vunpack.c.h.bf16 %v3298_v26 }
 0x26c   : > { %v2007_v57 = vadd.f32 %v2006_v58, %v3930_v53  ;;  %3107 = vmatprep.subr.bf16.mxu0 %v3309_v55 }
 0x26e   : > { %v2008_v56 = vadd.f32 %v2007_v57, %v3933_v18 }
 0x26f   : > { %3108 = vmatpush3.bf16.msra.mxu0 %v3211_v38 }
 0x270   : > { %v2009_v20 = vrot.slane %v2008_v56, 4  ;;  %3109 = vmatprep.subr.bf16.mxu0 %v3309_v55 }
 0x272   : > { %v2010_v23 = vadd.f32 %v2009_v20, %v2008_v56 }
 0x273   : > { %3110 = vmatpush3.bf16.msra.mxu0 %v3212_v4 }
 0x274   : > { %v2011_v24 = vrot.slane %v2010_v23, 2 }
 0x276   : > { %v2012_v34 = vadd.f32 %v2011_v24, %v2010_v23 }
 0x278   : > { %v2013_v60 = vrot.slane %v2012_v34, 1 }
 0x27a   : > { %v2014_v63 = vadd.f32 %v2013_v60, %v2012_v34 }
 0x27c   : > { %v2016_v0 = vmul.f32 0.015625, %v2014_v63 }
 0x27e   : > { %v2017_v31 = vpack.c.bf16 %v2016_v0, %v2016_v0 }
 0x280   : > { %3092 = vmatmul.mubr.bf16.vlgmr.msra.gmra.mxu1 %v2017_v31  ;;  %v3297_v31 = vld [vmem:[%s3416_s29 + $0x8] sm:$0xff]  }
 0x281   : > { %3116 = vmatpush3.bf16.msra.mxu1 %v3213_v39  ;;  %v2420_v1 = vunpack.c.h.bf16 %v3297_v31 }
 0x282   : > { %3117 = vmatprep.subr.bf16.mxu1 %v3214_v41 }
 0x285   : > { %3118 = vmatpush3.bf16.msra.mxu1 %v3214_v41 }
 0x286   : > { %3119 = vmatprep.subr.bf16.mxu1 %v3215_v42 }
 0x289   : > { %3120 = vmatpush3.bf16.msra.mxu1 %v3215_v42 }
 0x28a   : > { %3121 = vmatprep.subr.bf16.mxu1 %v3216_v17 }
 0x28d   : > { %3122 = vmatpush3.bf16.msra.mxu1 %v3216_v17 }
 0x28e   : > { %3123 = vmatprep.subr.bf16.mxu1 %v3217_v28 }
 0x291   : > { %3124 = vmatpush3.bf16.msra.mxu1 %v3217_v28 }
 0x292   : > { %3125 = vmatprep.subr.bf16.mxu1 %v3218_v45 }
 0x295   : > { %3126 = vmatpush3.bf16.msra.mxu1 %v3218_v45 }
 0x296   : > { %3127 = vmatprep.subr.bf16.mxu1 %v3219_v62 }
 0x299   : > { %3128 = vmatpush3.bf16.msra.mxu1 %v3219_v62  ;;  %v3300_v62 = vld [vmem:[%s3416_s29 + $0x10] sm:$0xff]  }
 0x29a   : > { %3129 = vmatprep.subr.bf16.mxu1 %v3220_v32 }
 0x29d   : > { %3130 = vmatpush3.bf16.msra.mxu1 %v3220_v32  ;;  %v2421_v32 = vunpack.c.l.bf16 %v3300_v62 }
 0x340   : > { %v2117_v5 = vpop.f32.mrf.mxu1 }
 0x341   : > { %v2118_v6 = vadd.f32 %v2117_v5, %v2034_v59 }
 0x342   : > { %v3093_v29 = vpop.f32.mrf.mxu1 }
 0x343   : > { %v2730_v49 = vmul.f32 -1.442695, %v2118_v6 }
 0x344   : > { %v2120_v35 = vpop.f32.mrf.mxu1 }
 0x345   : > { %3289 = vpow2.f32 %v2730_v49 }
 0x346   : > { %v3094_v10 = vpop.f32.mrf.mxu1 }
 0x352   : > { %v3290_v15 = vpop.eup %3289 }
 0x353   : > { %v2126_v61 = vadd.f32 1.0, %v3290_v15 }
 0x355   : > { %3291 = vrcp.f32 %v2126_v61 }
 0x362   : > { %v3292_v55 = vpop.eup %3291 }
 0x363   : > { %v2129_v9 = vmul.f32 %v3292_v55, %v2118_v6 }
 0x365   : > { %v2130_v22 = vpack.c.bf16 %v2129_v9, %v2129_v9 }
 0x367   : > { %3112 = vmatmul.mubr.bf16.vlgmr.msra.gmra.mxu0 %v2130_v22  ;;  %v3299_v22 = vld [vmem:[%s3416_s29 + $0x18] sm:$0xff]  }
 0x368   : > { %v2423_v39 = vunpack.c.l.bf16 %v3299_v22  ;;  %v2424_v42 = vunpack.c.h.bf16 %v3299_v22 }
 0x427   : > { %v2230_v46 = vpop.f32.mrf.mxu0 }
 0x428   : > { %v2231_v43 = vadd.f32 %v2230_v46, %v2147_v7  ;;  %v2422_v46 = vunpack.c.h.bf16 %v3300_v62 }
 0x429   : > { %v3113_v47 = vpop.f32.mrf.mxu0 }
 0x42a   : > { %v2739_v48 = vmul.f32 -1.442695, %v2231_v43 }
 0x42b   : > { %v2233_v2 = vpop.f32.mrf.mxu0 }
 0x42c   : > { %3293 = vpow2.f32 %v2739_v48 }
 0x42d   : > { %v3114_v54 = vpop.f32.mrf.mxu0 }
 0x439   : > { %v3294_v21 = vpop.eup %3293 }
 0x43a   : > { %v2239_v12 = vadd.f32 1.0, %v3294_v21 }
 0x43c   : > { %3295 = vrcp.f32 %v2239_v12 }
 0x449   : > { %v3296_v16 = vpop.eup %3295 }
 0x44a   : > { %v2245_v13 = vrot.slane %v3296_v16, %v2244_v37 }
 0x44c   : > { %v2246_v44 = vmul.f32 %v2245_v13, %v3911_v50  ;;  %v2247_v52 = vmul.f32 %v2245_v13, %v3913_v11  ;;  %v2248_v30 = vmul.f32 %v2245_v13, %v3916_v36  ;;  %v2249_v58 = vmul.f32 %v2245_v13, %v3921_v14  ;;  %v2748_v36 = vld [vmem:[%s4037_s13] ss:$0 sm:$0xff] }
 0x44d   : > { %v2250_v57 = vmul.f32 %v2245_v13, %v3924_v51  ;;  %v2251_v56 = vmul.f32 %v2245_v13, %v3928_v25  ;;  %v2252_v34 = vmul.f32 %v2245_v13, %v3930_v53  ;;  %v2253_v50 = vmul.f32 %v2245_v13, %v3933_v18  ;;  %v2749_v25 = vld [vmem:[%s4038_s14] ss:$0 sm:$0xff] }
 0x44e   : > { %v2254_v20 = vpack.c.bf16 %v2247_v52, %v2246_v44  ;;  %v2255_v23 = vpack.c.bf16 %v2249_v58, %v2248_v30  ;;  %v2419_v53 = vunpack.c.l.bf16 %v3297_v31 }
 0x44f   : > { %v2256_v24 = vpack.c.bf16 %v2251_v56, %v2250_v57  ;;  %v2257_v11 = vpack.c.bf16 %v2253_v50, %v2252_v34 }
 0x450   : > { %3131 = vmatprep.mubr.bf16.mxu1 %v2254_v20 }
 0x451   : > { %3132 = vmatmul.mubr.bf16.vlgmr.msra.gmra.mxu1 %v2255_v23 }
 0x452   : > { %3135 = vmatprep.mubr.bf16.mxu1 %v2256_v24 }
 0x459   : > { %3136 = vmatmul.mubr.bf16.gmra.mxu1 %v2257_v11 }
 0x511   : > { %v3133_v14 = vpop.f32.mrf.mxu1 }
 0x512   : > { %v2396_v51 = vmul.f32 %v3133_v14, %v2748_v36 }
 0x513   : > { %v2356_v60 = vpop.f32.mrf.mxu1 }
 0x514   : > { %v2394_v63 = vmul.f32 %v2748_v36, %v2356_v60  ;;  %v2411_v18 = vadd.f32 %v2749_v25, %v2396_v51 }
 0x515   : > { %v3134_v0 = vpop.f32.mrf.mxu1 }
 0x516   : > { %v2397_v3 = vmul.f32 %v3134_v0, %v2748_v36  ;;  %v2409_v38 = vadd.f32 %v2749_v25, %v2394_v63  ;;  %v2427_v6 = vadd.f32 %v2419_v53, %v2411_v18 }
 0x517   : > { %v2359_v8 = vpop.f32.mrf.mxu1 }
 0x518   : > { %v2412_v4 = vadd.f32 %v2749_v25, %v2397_v3  ;;  %v2395_v59 = vmul.f32 %v2748_v36, %v2359_v8  ;;  %v2425_v15 = vadd.f32 %v2417_v27, %v2409_v38 }
 0x519   : > { %v3137_v5 = vpop.f32.mrf.mxu1 }
 0x51a   : > { %v2428_v29 = vadd.f32 %v2420_v1, %v2412_v4  ;;  %v2410_v49 = vadd.f32 %v2749_v25, %v2395_v59  ;;  %v2400_v35 = vmul.f32 %v3137_v5, %v2748_v36 }
 0x51b   : > { %v2372_v10 = vpop.f32.mrf.mxu1 }
 0x51c   : > { %v2778_v61 = vpack.c.bf16 %v2428_v29, %v2427_v6  ;;  %v2426_v55 = vadd.f32 %v2418_v19, %v2410_v49  ;;  %v2398_v9 = vmul.f32 %v2748_v36, %v2372_v10  ;;  %v2415_v28 = vadd.f32 %v2749_v25, %v2400_v35 }
 0x51d   : > { %v3138_v41 = vpop.f32.mrf.mxu1 }
 0x51e   : > { %2790 = vst [vmem:[%s494_s16 + $0x8] sm:$0xff] %v2778_v61   ;;  %v2773_v17 = vpack.c.bf16 %v2426_v55, %v2425_v15  ;;  %v2401_v45 = vmul.f32 %v3138_v41, %v2748_v36  ;;  %v2413_v43 = vadd.f32 %v2749_v25, %v2398_v9  ;;  %v2431_v2 = vadd.f32 %v2423_v39, %v2415_v28 }
 0x51f   : > { %v2375_v7 = vpop.f32.mrf.mxu1 }
 0x520   : > { %2774 = vst [vmem:[%s494_s16] sm:$0xff] %v2773_v17   ;;  %v2416_v47 = vadd.f32 %v2749_v25, %v2401_v45  ;;  %v2399_v48 = vmul.f32 %v2748_v36, %v2375_v7  ;;  %v2429_v12 = vadd.f32 %v2421_v32, %v2413_v43 }
 0x522   : > { %v2432_v54 = vadd.f32 %v2424_v42, %v2416_v47  ;;  %v2414_v21 = vadd.f32 %v2749_v25, %v2399_v48 }
 0x524   : > { %v2788_v40 = vpack.c.bf16 %v2432_v54, %v2431_v2  ;;  %v2430_v33 = vadd.f32 %v2422_v46, %v2414_v21 }
 0x526   : > { %2792 = vst [vmem:[%s494_s16 + $0x18] sm:$0xff] %v2788_v40   ;;  %v2783_v37 = vpack.c.bf16 %v2430_v33, %v2429_v12 }
 0x528   : > { %2791 = vst [vmem:[%s494_s16 + $0x10] sm:$0xff] %v2783_v37  }
 0x529 PF: > { %s25_s18 = sadd.s32 1, %s3307_s18  }
 0x52a   : > { %p22_p4 = scmp.ge.s32.totalorder %s25_s18, 4  }
 0x52c   :  { %24 = sbr.rel (!%p22_p4) target bundleno = 1 (0x1), region = 126 }

// kernel: mango_net_forward.4
= control target key start
LH: loop header
LB: loop body
LE: loop exit
PB: predicated region body
PF: predicated region fallthrough
CT: control target
= control target key end

     0   :  { %10 = vsyncpa [#allocation3], 0  ;;  %s4220_s18 = smov 0   ;;  %s4801_s0 = inlined_call_operand.vmem [shape: bf16[2,256,128], index: 0, kind: input, shape index: {}]   ;;  %s4802_s1 = inlined_call_operand.hbm [shape: bf16[9,64,256], index: 1, kind: input, shape index: {}]   ;;  %s4803_s2 = inlined_call_operand.vmem [shape: bf16[9,128,128], index: 2, kind: input, shape index: {}]   ;;  %s4804_s3 = inlined_call_operand.vmem [shape: f32[1,128], index: 3, kind: input, shape index: {}]   ;;  %s4805_s4 = inlined_call_operand.vmem [shape: f32[1,128], index: 4, kind: input, shape index: {}]   ;;  %s4806_s5 = inlined_call_operand.vmem [shape: bf16[2,64,128], index: 5, kind: output, shape index: {}]  }
   0x1 LB: > { %s2848_s19 = sadd.s32 4294967295, %s4185_s18   ;;  %p2850_p0 = scmp.ge.s32.totalorder %s4185_s18, 1  ;;  %s4185_s18 = sphi %s4220_s18, %s16_s18  }
   0x2   : > { %p157_p1 = scmp.lt.s32.totalorder %s4185_s18, 3  ;;  %s4187_s20 = smov [#allocation2]  }
   0x3   : > { %s169_s21 = sshll.u32 %s4187_s20, 4  ;;  %p3892_p3 = scmp.eq.s32.totalorder %s2848_s19, 0  ;;  %s170_s21 = int_to_ptr.vmem [resolvable:$true] %s169_s21 }
   0x4   : > { %p4228_p2 = pnand %p2850_p0, %p157_p1  ;;  %s4160_s23 = scalar_lea.vmem %s170_s21, 9216 }
   0x5   : > { %p4161_p7 = scmp.ne.s32.totalorder %s170_s21, %s4160_s23  ;;  %p4168_p10 = scmp.lt.s32.totalorder %s170_s21, %s170_s21 }
   0x6   : > { %p3888_p4 = pneg %p4228_p2  ;;  %p4169_p11 = scmp.lt.s32.totalorder %s4160_s23, %s4160_s23 }
   0x8   : > { %p3889_p5 = pnand %p3892_p3, %p3888_p4  ;;  %p4170_p12 = por %p4169_p11, %p4168_p10 }
   0xa   : > { %p4151_p6 = pneg %p3889_p5 }
   0xc   : > { %p4163_p8 = pnand %p4161_p7, %p4151_p6 }
   0xe   : > { %p4164_p9 = pneg %p4163_p8 }
  0x10   : > { %p4171_p13 = pnand %p4170_p12, %p4164_p9 }
  0x12   : > { %4174 = shalt.err (!%p4171_p13)
}
  0x13   : > { %s4188_s24 = smov 128   ;;  %s4189_s25 = smov 8  }
  0x14   : > { %3891 = dma.hbm_to_vmem [thread:$0]  (!%p3889_p5), %s4802_s1, 9216, %s170_s21, [#allocation3], %s4188_s24, %s4188_s24, %s4189_s25  }
  0x15   : > { %202 = sbr.rel (%p4228_p2) target bundleno = 970 (0x3ca), region = 40 }
  0x1a   : > { %4180 = dma.done.wait (%p3892_p3), [#allocation3], 9216  }
  0x1b   : > { %4182 = vsyncadd (%p3892_p3), [#allocation3], 4294958080  ;;  %p230_p0 = scmp.lt.s32.totalorder %s2848_s19, 1  ;;  %v3923_v11 = vld [vmem:[#allocation2 + $0x4] ss:$8 sps:$4 sm:$0xff]   ;;  %v3945_v18 = vld [vmem:[%s4803_s2 + $0x78] sm:$0xff]  }
  0x1c   : > { %v3926_v12 = vld [vmem:[#allocation2 + $0x44] ss:$8 sps:$4 sm:$0xff]   ;;  %449 = vmatprep.mubr.bf16.mxu0 %v3923_v11  ;;  %v3921_v19 = vld [vmem:[#allocation2] ss:$8 sps:$4 sm:$0xff]   ;;  %v3946_v20 = vld [vmem:[%s4803_s2 + $0x38] sm:$0xff]  }
  0x1d   : > { %s4809_s19 = smov (!%p230_p0, %s2848_s19), 1  ;;  %583 = vmatprep.mubr.bf16.mxu1 %v3926_v12  ;;  %v3924_v21 = vld [vmem:[#allocation2 + $0x40] ss:$8 sps:$4 sm:$0xff]   ;;  %v3927_v22 = vld [vmem:[#allocation2 + $0x14] ss:$8 sps:$4 sm:$0xff]  }
  0x1e   : > { %s3167_s28 = sshll.u32 %s4809_s19, 7  ;;  %v3929_v23 = vld [vmem:[#allocation2 + $0x54] ss:$8 sps:$4 sm:$0xff]   ;;  %v3949_v26 = vld [vmem:[%s4803_s2 + $0x68] sm:$0xff]   ;;  %v3931_v28 = vld [vmem:[#allocation2 + $0x10] ss:$8 sps:$4 sm:$0xff]  }
  0x1f   : > { %s4248_s6 = scalar_lea.vmem %s4801_s0, %s3167_s28  ;;  %v3947_v24 = vld [vmem:[%s4803_s2 + $0x70] sm:$0xff]   ;;  %v3950_v27 = vld [vmem:[%s4803_s2 + $0x28] sm:$0xff]   ;;  %v3951_v32 = vld [vmem:[%s4803_s2 + $0x60] sm:$0xff]   ;;  %s3168_s20 = sshll.u32 %s4809_s19, 5 }
  0x20   : > { %v4251_v0 = vld [vmem:[%s4248_s6 + $0x78] sm:$0xff]   ;;  %v4259_v2 = vld [vmem:[%s4248_s6 + $0x70] sm:$0xff]   ;;  %v4269_v4 = vld [vmem:[%s4248_s6 + $0x68] sm:$0xff]   ;;  %s239_s23 = scalar_lea.vmem %s4806_s5, %s3168_s20 }
  0x21   : > { %v4254_v1 = vld [vmem:[%s4248_s6 + $0x38] sm:$0xff]   ;;  %3200 = vmatprep.subr.bf16.mxu0 %v4251_v0  ;;  %3240 = vmatprep.subr.bf16.mxu1 %v4251_v0  ;;  %v4264_v3 = vld [vmem:[%s4248_s6 + $0x30] sm:$0xff]   ;;  %v4274_v5 = vld [vmem:[%s4248_s6 + $0x28] sm:$0xff]  }
  0x22   : > { %3201 = vmatpush3.bf16.msra.mxu0 %v4254_v1  ;;  %3241 = vmatpush3.bf16.msra.mxu1 %v4254_v1  ;;  %v4279_v6 = vld [vmem:[%s4248_s6 + $0x60] sm:$0xff]   ;;  %v4289_v8 = vld [vmem:[%s4248_s6 + $0x58] sm:$0xff]   ;;  %v4299_v10 = vld [vmem:[%s4248_s6 + $0x50] sm:$0xff]  }
  0x23   : > { %3202 = vmatprep.subr.bf16.mxu0 %v4259_v2  ;;  %3242 = vmatprep.subr.bf16.mxu1 %v4259_v2  ;;  %v4284_v7 = vld [vmem:[%s4248_s6 + $0x20] sm:$0xff]   ;;  %v4294_v9 = vld [vmem:[%s4248_s6 + $0x18] sm:$0xff]   ;;  %v4304_v13 = vld [vmem:[%s4248_s6 + $0x10] sm:$0xff]  }
  0x24   : > { %v4309_v14 = vld [vmem:[%s4248_s6 + $0x48] sm:$0xff]   ;;  %v4319_v16 = vld [vmem:[%s4248_s6 + $0x40] sm:$0xff]   ;;  %v3948_v25 = vld [vmem:[%s4803_s2 + $0x30] sm:$0xff]  }
  0x25   : > { %v4314_v15 = vld [vmem:[%s4248_s6 + $0x8] sm:$0xff]   ;;  %v4322_v17 = vld [vmem:[%s4248_s6] sm:$0xff]   ;;  %v3932_v29 = vld [vmem:[#allocation2 + $0x50] ss:$8 sps:$4 sm:$0xff]  }
  0x26   : > { %3203 = vmatpush3.bf16.msra.mxu0 %v4264_v3  ;;  %3243 = vmatpush3.bf16.msra.mxu1 %v4264_v3  ;;  %v3933_v30 = vld [vmem:[#allocation2 + $0x24] ss:$8 sps:$4 sm:$0xff]   ;;  %v3937_v34 = vld [vmem:[#allocation2 + $0x20] ss:$8 sps:$4 sm:$0xff]   ;;  %v3939_v36 = vld [vmem:[#allocation2 + $0x34] ss:$8 sps:$4 sm:$0xff]  }
  0x27   : > { %3204 = vmatprep.subr.bf16.mxu0 %v4269_v4  ;;  %3244 = vmatprep.subr.bf16.mxu1 %v4269_v4  ;;  %v3935_v31 = vld [vmem:[#allocation2 + $0x64] ss:$8 sps:$4 sm:$0xff]   ;;  %v3938_v35 = vld [vmem:[#allocation2 + $0x60] ss:$8 sps:$4 sm:$0xff]   ;;  %v3941_v37 = vld [vmem:[#allocation2 + $0x74] ss:$8 sps:$4 sm:$0xff]  }
  0x28   : > { %v3952_v33 = vld [vmem:[%s4803_s2 + $0x20] sm:$0xff]   ;;  %v3943_v38 = vld [vmem:[#allocation2 + $0x30] ss:$8 sps:$4 sm:$0xff]   ;;  %v3957_v44 = vld [vmem:[%s4803_s2 + $0x48] sm:$0xff]  }
  0x29   : > { %v3944_v39 = vld [vmem:[#allocation2 + $0x70] ss:$8 sps:$4 sm:$0xff]   ;;  %v3958_v45 = vld [vmem:[%s4803_s2 + $0x8] sm:$0xff]   ;;  %v3959_v46 = vld [vmem:[%s4803_s2 + $0x40] sm:$0xff]  }
  0x2a   : > { %3205 = vmatpush3.bf16.msra.mxu0 %v4274_v5  ;;  %3245 = vmatpush3.bf16.msra.mxu1 %v4274_v5  ;;  %v3953_v40 = vld [vmem:[%s4803_s2 + $0x58] sm:$0xff]   ;;  %v3955_v42 = vld [vmem:[%s4803_s2 + $0x50] sm:$0xff]   ;;  %v3960_v47 = vld [vmem:[%s4803_s2] sm:$0xff]  }
  0x2b   : > { %3206 = vmatprep.subr.bf16.mxu0 %v4279_v6  ;;  %3246 = vmatprep.subr.bf16.mxu1 %v4279_v6  ;;  %v3954_v41 = vld [vmem:[%s4803_s2 + $0x18] sm:$0xff]   ;;  %v3956_v43 = vld [vmem:[%s4803_s2 + $0x10] sm:$0xff]  }
  0x2e   : > { %3207 = vmatpush3.bf16.msra.mxu0 %v4284_v7  ;;  %3247 = vmatpush3.bf16.msra.mxu1 %v4284_v7 }
  0x2f   : > { %3208 = vmatprep.subr.bf16.mxu0 %v4289_v8  ;;  %3248 = vmatprep.subr.bf16.mxu1 %v4289_v8 }
  0x32   : > { %3209 = vmatpush3.bf16.msra.mxu0 %v4294_v9  ;;  %3249 = vmatpush3.bf16.msra.mxu1 %v4294_v9 }
  0x33   : > { %3210 = vmatprep.subr.bf16.mxu0 %v4299_v10  ;;  %3250 = vmatprep.subr.bf16.mxu1 %v4299_v10 }
  0x36   : > { %3211 = vmatpush3.bf16.msra.mxu0 %v4304_v13  ;;  %3251 = vmatpush3.bf16.msra.mxu1 %v4304_v13 }
  0x37   : > { %3212 = vmatprep.subr.bf16.mxu0 %v4309_v14  ;;  %3252 = vmatprep.subr.bf16.mxu1 %v4309_v14 }
  0x3a   : > { %3213 = vmatpush3.bf16.msra.mxu0 %v4314_v15  ;;  %3253 = vmatpush3.bf16.msra.mxu1 %v4314_v15 }
  0x3b   : > { %3214 = vmatprep.subr.bf16.mxu0 %v4319_v16  ;;  %3254 = vmatprep.subr.bf16.mxu1 %v4319_v16 }
  0x3e   : > { %3215 = vmatpush3.bf16.msra.mxu0 %v4322_v17  ;;  %3255 = vmatpush3.bf16.msra.mxu1 %v4322_v17 }
  0x3f   : > { %3668 = vmatprep.subr.bf16.mxu0 %v3945_v18  ;;  %3692 = vmatprep.subr.bf16.mxu1 %v3946_v20 }
  0x41   : > { %450 = vmatmul.mubr.bf16.vlgmr.msra.gmra.mxu0 %v3921_v19  ;;  %584 = vmatmul.mubr.bf16.vlgmr.msra.gmra.mxu1 %v3924_v21 }
  0x42   : > { %457 = vmatprep.mubr.bf16.mxu0 %v3927_v22  ;;  %591 = vmatprep.mubr.bf16.mxu1 %v3929_v23 }
  0x43   : > { %3669 = vmatpush3.bf16.msra.mxu0 %v3945_v18  ;;  %3693 = vmatpush3.bf16.msra.mxu1 %v3946_v20 }
  0x44   : > { %3670 = vmatprep.subr.bf16.mxu0 %v3947_v24  ;;  %3694 = vmatprep.subr.bf16.mxu1 %v3948_v25 }
  0x47   : > { %3671 = vmatpush3.bf16.msra.mxu0 %v3947_v24  ;;  %3695 = vmatpush3.bf16.msra.mxu1 %v3948_v25 }
  0x48   : > { %3672 = vmatprep.subr.bf16.mxu0 %v3949_v26  ;;  %3696 = vmatprep.subr.bf16.mxu1 %v3950_v27 }
  0x49   : > { %458 = vmatmul.mubr.bf16.gmra.mxu0 %v3931_v28  ;;  %592 = vmatmul.mubr.bf16.gmra.mxu1 %v3932_v29 }
  0x4a   : > { %465 = vmatprep.mubr.bf16.mxu0 %v3933_v30  ;;  %599 = vmatprep.mubr.bf16.mxu1 %v3935_v31 }
  0x4b   : > { %3673 = vmatpush3.bf16.msra.mxu0 %v3949_v26  ;;  %3697 = vmatpush3.bf16.msra.mxu1 %v3950_v27 }
  0x4c   : > { %3674 = vmatprep.subr.bf16.mxu0 %v3951_v32  ;;  %3698 = vmatprep.subr.bf16.mxu1 %v3952_v33 }
  0x4f   : > { %3675 = vmatpush3.bf16.msra.mxu0 %v3951_v32  ;;  %3699 = vmatpush3.bf16.msra.mxu1 %v3952_v33 }
  0x50   : > { %3676 = vmatprep.subr.bf16.mxu0 %v3953_v40  ;;  %3700 = vmatprep.subr.bf16.mxu1 %v3954_v41 }
  0x51   : > { %466 = vmatmul.mubr.bf16.gmra.mxu0 %v3937_v34  ;;  %600 = vmatmul.mubr.bf16.gmra.mxu1 %v3938_v35 }
  0x52   : > { %473 = vmatprep.mubr.bf16.mxu0 %v3939_v36  ;;  %607 = vmatprep.mubr.bf16.mxu1 %v3941_v37 }
  0x53   : > { %3677 = vmatpush3.bf16.msra.mxu0 %v3953_v40  ;;  %3701 = vmatpush3.bf16.msra.mxu1 %v3954_v41 }
  0x54   : > { %3678 = vmatprep.subr.bf16.mxu0 %v3955_v42  ;;  %3702 = vmatprep.subr.bf16.mxu1 %v3956_v43 }
  0x57   : > { %3679 = vmatpush3.bf16.msra.mxu0 %v3955_v42  ;;  %3703 = vmatpush3.bf16.msra.mxu1 %v3956_v43 }
  0x58   : > { %3680 = vmatprep.subr.bf16.mxu0 %v3957_v44  ;;  %3704 = vmatprep.subr.bf16.mxu1 %v3958_v45 }
  0x59   : > { %474 = vmatmul.mubr.bf16.gmra.mxu0 %v3943_v38  ;;  %608 = vmatmul.mubr.bf16.gmra.mxu1 %v3944_v39 }
  0x5b   : > { %3681 = vmatpush3.bf16.msra.mxu0 %v3957_v44  ;;  %3705 = vmatpush3.bf16.msra.mxu1 %v3958_v45 }
  0x5c   : > { %3682 = vmatprep.subr.bf16.mxu0 %v3959_v46  ;;  %3706 = vmatprep.subr.bf16.mxu1 %v3960_v47 }
  0x5f   : > { %3683 = vmatpush3.bf16.msra.mxu0 %v3959_v46  ;;  %3707 = vmatpush3.bf16.msra.mxu1 %v3960_v47 }
  0x60   : > { %3304 = vmatprep.subr.bf16.mxu0 %v4251_v0 }
 0x101   : > { %v3216_v48 = vpop.f32.mrf.mxu0  ;;  %v3256_v49 = vpop.f32.mrf.mxu1 }
 0x103   : > { %v3217_v50 = vpop.f32.mrf.mxu0  ;;  %v3257_v51 = vpop.f32.mrf.mxu1 }
 0x104   : > { %v3218_v54 = vadd.f32 %v3217_v50, %v3216_v48  ;;  %v3258_v57 = vadd.f32 %v3257_v51, %v3256_v49 }
 0x105   : > { %v3219_v52 = vpop.f32.mrf.mxu0  ;;  %v3259_v53 = vpop.f32.mrf.mxu1 }
 0x107   : > { %v3220_v55 = vpop.f32.mrf.mxu0  ;;  %v3260_v56 = vpop.f32.mrf.mxu1 }
 0x108   : > { %v3221_v58 = vadd.f32 %v3220_v55, %v3219_v52  ;;  %v3261_v59 = vadd.f32 %v3260_v56, %v3259_v53 }
 0x109   : > { %v3222_v60 = vpop.f32.mrf.mxu0  ;;  %v3262_v61 = vpop.f32.mrf.mxu1 }
 0x10a   : > { %v482_v62 = vpack.c.bf16 %v3221_v58, %v3218_v54  ;;  %v616_v63 = vpack.c.bf16 %v3261_v59, %v3258_v57  ;;  %v3963_v54 = vld [vmem:[#allocation2 + $0x84] ss:$8 sps:$4 sm:$0xff]   ;;  %v3961_v57 = vld [vmem:[#allocation2 + $0x80] ss:$8 sps:$4 sm:$0xff]   ;;  %v3964_v58 = vld [vmem:[#allocation2 + $0x94] ss:$8 sps:$4 sm:$0xff]  }
 0x10b   : > { %v3223_v11 = vpop.f32.mrf.mxu0  ;;  %v3263_v12 = vpop.f32.mrf.mxu1  ;;  %v3966_v59 = vld [vmem:[#allocation2 + $0x90] ss:$8 sps:$4 sm:$0xff]  }
 0x10c   : > { %3684 = vmatprep.mubr.bf16.mxu0 %v616_v63  ;;  %3708 = vmatprep.mubr.bf16.mxu1 %v482_v62  ;;  %v3224_v20 = vadd.f32 %v3223_v11, %v3222_v60  ;;  %v3264_v23 = vadd.f32 %v3263_v12, %v3262_v61  ;;  %v3967_v60 = vld [vmem:[#allocation2 + $0xa4] ss:$8 sps:$4 sm:$0xff]   ;;  %v3969_v61 = vld [vmem:[#allocation2 + $0xa0] ss:$8 sps:$4 sm:$0xff]   ;;  %v3970_v62 = vld [vmem:[#allocation2 + $0xb4] ss:$8 sps:$4 sm:$0xff]  }
 0x10d   : > { %v3225_v18 = vpop.f32.mrf.mxu0  ;;  %v3265_v19 = vpop.f32.mrf.mxu1  ;;  %v3972_v63 = vld [vmem:[#allocation2 + $0xb0] ss:$8 sps:$4 sm:$0xff]   ;;  %v3975_v11 = vld [vmem:[#allocation2 + $0xc4] ss:$8 sps:$4 sm:$0xff]   ;;  %v3973_v12 = vld [vmem:[#allocation2 + $0xc0] ss:$8 sps:$4 sm:$0xff]  }
 0x10f   : > { %v3226_v21 = vpop.f32.mrf.mxu0  ;;  %v3266_v22 = vpop.f32.mrf.mxu1 }
 0x110   : > { %v3227_v24 = vadd.f32 %v3226_v21, %v3225_v18  ;;  %v3267_v25 = vadd.f32 %v3266_v22, %v3265_v19  ;;  %v3976_v18 = vld [vmem:[#allocation2 + $0xd4] ss:$8 sps:$4 sm:$0xff]   ;;  %v3978_v19 = vld [vmem:[#allocation2 + $0xd0] ss:$8 sps:$4 sm:$0xff]   ;;  %v3981_v21 = vld [vmem:[#allocation2 + $0xe0] ss:$8 sps:$4 sm:$0xff]  }
 0x111   : > { %v3228_v26 = vpop.f32.mrf.mxu0  ;;  %v3268_v27 = vpop.f32.mrf.mxu1  ;;  %v4439_v22 = vld [vmem:[%s4248_s6 + $0x78] sm:$0xff]  }
 0x112   : > { %v483_v28 = vpack.c.bf16 %v3227_v24, %v3224_v20  ;;  %v617_v29 = vpack.c.bf16 %v3267_v25, %v3264_v23  ;;  %v3979_v20 = vld [vmem:[#allocation2 + $0xe4] ss:$8 sps:$4 sm:$0xff]   ;;  %v4443_v23 = vld [vmem:[%s4248_s6 + $0x38] sm:$0xff]   ;;  %v4450_v25 = vld [vmem:[%s4248_s6 + $0x70] sm:$0xff]  }
 0x113   : > { %v3229_v30 = vpop.f32.mrf.mxu0  ;;  %v3269_v31 = vpop.f32.mrf.mxu1  ;;  %v4040_v24 = vld [vmem:[%s4803_s2 + $0x98] sm:$0xff]  }
 0x114   : > { %3685 = vmatmul.mubr.bf16.vlgmr.msra.gmra.mxu0 %v617_v29  ;;  %3709 = vmatmul.mubr.bf16.vlgmr.msra.gmra.mxu1 %v483_v28  ;;  %v3230_v34 = vadd.f32 %v3229_v30, %v3228_v26  ;;  %v3270_v35 = vadd.f32 %v3269_v31, %v3268_v27  ;;  %v3990_v26 = vld [vmem:[#allocation2 + $0x110] ss:$8 sps:$4 sm:$0xff]   ;;  %v3991_v28 = vld [vmem:[#allocation2 + $0x124] ss:$8 sps:$4 sm:$0xff]  }
 0x115   : > { %3305 = vmatpush3.bf16.msra.mxu0 %v4254_v1  ;;  %v3231_v32 = vpop.f32.mrf.mxu0  ;;  %v3271_v33 = vpop.f32.mrf.mxu1  ;;  %v4454_v27 = vld [vmem:[%s4248_s6 + $0x30] sm:$0xff]   ;;  %v4461_v30 = vld [vmem:[%s4248_s6 + $0x68] sm:$0xff]  }
 0x116   : > { %3306 = vmatprep.subr.bf16.mxu0 %v4259_v2  ;;  %v4041_v29 = vld [vmem:[%s4803_s2 + $0x90] sm:$0xff]   ;;  %v4465_v31 = vld [vmem:[%s4248_s6 + $0x28] sm:$0xff]  }
 0x117   : > { %v3232_v36 = vpop.f32.mrf.mxu0  ;;  %v3272_v37 = vpop.f32.mrf.mxu1 }
 0x118   : > { %v3233_v38 = vadd.f32 %v3232_v36, %v3231_v32  ;;  %v3273_v39 = vadd.f32 %v3272_v37, %v3271_v33  ;;  %v4045_v32 = vld [vmem:[%s4803_s2 + $0x88] sm:$0xff]   ;;  %v4472_v33 = vld [vmem:[%s4248_s6 + $0x60] sm:$0xff]   ;;  %v3994_v36 = vld [vmem:[#allocation2 + $0x134] ss:$8 sps:$4 sm:$0xff]  }
 0x119   : > { %3307 = vmatpush3.bf16.msra.mxu0 %v4264_v3  ;;  %v3234_v40 = vpop.f32.mrf.mxu0  ;;  %v3274_v41 = vpop.f32.mrf.mxu1  ;;  %v4046_v37 = vld [vmem:[%s4803_s2 + $0x80] sm:$0xff]  }
 0x11a   : > { %v484_v42 = vpack.c.bf16 %v3233_v38, %v3230_v34  ;;  %v618_v43 = vpack.c.bf16 %v3273_v39, %v3270_v35  ;;  %3308 = vmatprep.subr.bf16.mxu0 %v4269_v4  ;;  %v3993_v34 = vld [vmem:[#allocation2 + $0x120] ss:$8 sps:$4 sm:$0xff]   ;;  %v4483_v38 = vld [vmem:[%s4248_s6 + $0x58] sm:$0xff]  }
 0x11b   : > { %v3235_v44 = vpop.f32.mrf.mxu0  ;;  %v3275_v45 = vpop.f32.mrf.mxu1  ;;  %v4476_v35 = vld [vmem:[%s4248_s6 + $0x20] sm:$0xff]   ;;  %v4490_v39 = vld [vmem:[%s4803_s2 + $0xf8] sm:$0xff]  }
 0x11c   : > { %3688 = vmatprep.mubr.bf16.mxu0 %v618_v43  ;;  %3712 = vmatprep.mubr.bf16.mxu1 %v484_v42  ;;  %v3236_v48 = vadd.f32 %v3235_v44, %v3234_v40  ;;  %v3276_v49 = vadd.f32 %v3275_v45, %v3274_v41  ;;  %v3996_v40 = vld [vmem:[#allocation2 + $0x130] ss:$8 sps:$4 sm:$0xff]   ;;  %v3999_v41 = vld [vmem:[#allocation2 + $0x144] ss:$8 sps:$4 sm:$0xff]   ;;  %v4000_v42 = vld [vmem:[#allocation2 + $0x154] ss:$8 sps:$4 sm:$0xff]  }
 0x11d   : > { %3309 = vmatpush3.bf16.msra.mxu0 %v4274_v5  ;;  %v3237_v46 = vpop.f32.mrf.mxu0  ;;  %v3277_v47 = vpop.f32.mrf.mxu1  ;;  %v4008_v43 = vld [vmem:[#allocation2 + $0x170] ss:$8 sps:$4 sm:$0xff]   ;;  %v4011_v45 = vld [vmem:[#allocation2 + $0x184] ss:$8 sps:$4 sm:$0xff]  }
 0x11e   : > { %3310 = vmatprep.subr.bf16.mxu0 %v4279_v6  ;;  %v4517_v44 = vld [vmem:[%s4248_s6 + $0x10] sm:$0xff]  }
 0x11f   : > { %v3238_v50 = vpop.f32.mrf.mxu0  ;;  %v3278_v51 = vpop.f32.mrf.mxu1 }
 0x120   : > { %v3239_v52 = vadd.f32 %v3238_v50, %v3237_v46  ;;  %v3279_v53 = vadd.f32 %v3278_v51, %v3277_v47  ;;  %v4521_v46 = vld [vmem:[%s4248_s6 + $0x48] sm:$0xff]   ;;  %v4533_v50 = vld [vmem:[%s4248_s6] sm:$0xff]   ;;  %v4012_v51 = vld [vmem:[#allocation2 + $0x194] ss:$8 sps:$4 sm:$0xff]  }
 0x121   : > { %3311 = vmatpush3.bf16.msra.mxu0 %v4284_v7  ;;  %v4525_v47 = vld [vmem:[%s4248_s6 + $0x8] sm:$0xff]  }
 0x122   : > { %v485_v55 = vpack.c.bf16 %v3239_v52, %v3236_v48  ;;  %v619_v56 = vpack.c.bf16 %v3279_v53, %v3276_v49  ;;  %3312 = vmatprep.subr.bf16.mxu0 %v4289_v8  ;;  %v4529_v48 = vld [vmem:[%s4248_s6 + $0x40] sm:$0xff]   ;;  %v4014_v52 = vld [vmem:[#allocation2 + $0x190] ss:$8 sps:$4 sm:$0xff]  }
 0x123   : > { %v4009_v49 = vld [vmem:[#allocation2 + $0x180] ss:$8 sps:$4 sm:$0xff]   ;;  %v4015_v53 = vld [vmem:[#allocation2 + $0x1a4] ss:$8 sps:$4 sm:$0xff]  }
 0x124   : > { %3689 = vmatmul.mubr.bf16.gmra.mxu0 %v619_v56  ;;  %3713 = vmatmul.mubr.bf16.gmra.mxu1 %v485_v55  ;;  %v4018_v55 = vld [vmem:[#allocation2 + $0x1b4] ss:$8 sps:$4 sm:$0xff]   ;;  %v4020_v56 = vld [vmem:[#allocation2 + $0x1b0] ss:$8 sps:$4 sm:$0xff]  }
 0x125   : > { %3313 = vmatpush3.bf16.msra.mxu0 %v4294_v9  ;;  %944 = vmatprep.mubr.bf16.mxu0 %v3963_v54  ;;  %v4017_v54 = vld [vmem:[#allocation2 + $0x1a0] ss:$8 sps:$4 sm:$0xff]  }
 0x126   : > { %3314 = vmatprep.subr.bf16.mxu0 %v4299_v10 }
 0x129   : > { %3315 = vmatpush3.bf16.msra.mxu0 %v4304_v13 }
 0x12a   : > { %3316 = vmatprep.subr.bf16.mxu0 %v4309_v14 }
 0x12d   : > { %3317 = vmatpush3.bf16.msra.mxu0 %v4314_v15 }
 0x12e   : > { %3318 = vmatprep.subr.bf16.mxu0 %v4319_v16 }
 0x131   : > { %3319 = vmatpush3.bf16.msra.mxu0 %v4322_v17 }
 0x132   : > { %3356 = vmatprep.subr.bf16.mxu0 %v4251_v0 }
 0x134   : > { %945 = vmatmul.mubr.bf16.vlgmr.msra.gmra.mxu0 %v3961_v57  ;;  %v4023_v57 = vld [vmem:[#allocation2 + $0x1c4] ss:$8 sps:$4 sm:$0xff]  }
 0x135   : > { %3357 = vmatpush3.bf16.msra.mxu0 %v4254_v1  ;;  %952 = vmatprep.mubr.bf16.mxu0 %v3964_v58  ;;  %v4021_v58 = vld [vmem:[#allocation2 + $0x1c0] ss:$8 sps:$4 sm:$0xff]  }
 0x136   : > { %3358 = vmatprep.subr.bf16.mxu0 %v4259_v2 }
 0x139   : > { %3359 = vmatpush3.bf16.msra.mxu0 %v4264_v3 }
 0x13a   : > { %3360 = vmatprep.subr.bf16.mxu0 %v4269_v4 }
 0x13c   : > { %953 = vmatmul.mubr.bf16.gmra.mxu0 %v3966_v59  ;;  %v4024_v59 = vld [vmem:[#allocation2 + $0x1d4] ss:$8 sps:$4 sm:$0xff]  }
 0x13d   : > { %3361 = vmatpush3.bf16.msra.mxu0 %v4274_v5  ;;  %960 = vmatprep.mubr.bf16.mxu0 %v3967_v60 }
 0x13e   : > { %3362 = vmatprep.subr.bf16.mxu0 %v4279_v6 }
 0x141   : > { %3363 = vmatpush3.bf16.msra.mxu0 %v4284_v7 }
 0x142   : > { %3364 = vmatprep.subr.bf16.mxu0 %v4289_v8 }
 0x144   : > { %961 = vmatmul.mubr.bf16.gmra.mxu0 %v3969_v61 }
 0x145   : > { %3365 = vmatpush3.bf16.msra.mxu0 %v4294_v9  ;;  %968 = vmatprep.mubr.bf16.mxu0 %v3970_v62 }
 0x146   : > { %3366 = vmatprep.subr.bf16.mxu0 %v4299_v10 }
 0x149   : > { %3367 = vmatpush3.bf16.msra.mxu0 %v4304_v13 }
 0x14a   : > { %3368 = vmatprep.subr.bf16.mxu0 %v4309_v14 }
 0x14c   : > { %969 = vmatmul.mubr.bf16.gmra.mxu0 %v3972_v63 }
 0x14d   : > { %3369 = vmatpush3.bf16.msra.mxu0 %v4314_v15  ;;  %1200 = vmatprep.mubr.bf16.mxu0 %v3975_v11 }
 0x14e   : > { %3370 = vmatprep.subr.bf16.mxu0 %v4319_v16 }
 0x151   : > { %3371 = vmatpush3.bf16.msra.mxu0 %v4322_v17 }
 0x152   : > { %3408 = vmatprep.subr.bf16.mxu0 %v4251_v0  ;;  %v3982_v0 = vld [vmem:[#allocation2 + $0xf4] ss:$8 sps:$4 sm:$0xff]  }
 0x154   : > { %1201 = vmatmul.mubr.bf16.vlgmr.msra.gmra.mxu0 %v3973_v12 }
 0x155   : > { %3409 = vmatpush3.bf16.msra.mxu0 %v4254_v1  ;;  %1208 = vmatprep.mubr.bf16.mxu0 %v3976_v18  ;;  %v4030_v1 = vld [vmem:[%s4803_s2 + $0xb8] sm:$0xff]  }
 0x156   : > { %3410 = vmatprep.subr.bf16.mxu0 %v4259_v2  ;;  %3716 = vmatprep.subr.bf16.mxu1 %v4030_v1  ;;  %v3984_v2 = vld [vmem:[#allocation2 + $0xf0] ss:$8 sps:$4 sm:$0xff]  }
 0x157   : > { %3717 = vmatpush3.bf16.msra.mxu1 %v4030_v1 }
 0x159   : > { %3411 = vmatpush3.bf16.msra.mxu0 %v4264_v3  ;;  %v3987_v3 = vld [vmem:[#allocation2 + $0x104] ss:$8 sps:$4 sm:$0xff]  }
 0x15a   : > { %3412 = vmatprep.subr.bf16.mxu0 %v4269_v4  ;;  %v4031_v4 = vld [vmem:[%s4803_s2 + $0xb0] sm:$0xff]  }
 0x15b   : > { %3718 = vmatprep.subr.bf16.mxu1 %v4031_v4 }
 0x15c   : > { %1209 = vmatmul.mubr.bf16.gmra.mxu0 %v3978_v19  ;;  %3719 = vmatpush3.bf16.msra.mxu1 %v4031_v4  ;;  %v4027_v4 = vld [vmem:[#allocation2 + $0x1e0] ss:$8 sps:$4 sm:$0xff]  }
 0x15d   : > { %3413 = vmatpush3.bf16.msra.mxu0 %v4274_v5  ;;  %1216 = vmatprep.mubr.bf16.mxu0 %v3979_v20  ;;  %v4035_v5 = vld [vmem:[%s4803_s2 + $0xa8] sm:$0xff]   ;;  %v4026_v20 = vld [vmem:[#allocation2 + $0x1d0] ss:$8 sps:$4 sm:$0xff]  }
 0x15e   : > { %3414 = vmatprep.subr.bf16.mxu0 %v4279_v6  ;;  %3720 = vmatprep.subr.bf16.mxu1 %v4035_v5  ;;  %v3985_v6 = vld [vmem:[#allocation2 + $0x100] ss:$8 sps:$4 sm:$0xff]  }
 0x160   : > { %3721 = vmatpush3.bf16.msra.mxu1 %v4035_v5  ;;  %v4034_v5 = vld [vmem:[#allocation2 + $0x1f4] ss:$8 sps:$4 sm:$0xff]  }
 0x161   : > { %3415 = vmatpush3.bf16.msra.mxu0 %v4284_v7  ;;  %v3988_v7 = vld [vmem:[#allocation2 + $0x114] ss:$8 sps:$4 sm:$0xff]  }
 0x162   : > { %3416 = vmatprep.subr.bf16.mxu0 %v4289_v8  ;;  %v4036_v8 = vld [vmem:[%s4803_s2 + $0xa0] sm:$0xff]  }
 0x163   : > { %3722 = vmatprep.subr.bf16.mxu1 %v4036_v8 }
 0x164   : > { %1217 = vmatmul.mubr.bf16.gmra.mxu0 %v3981_v21  ;;  %3723 = vmatpush3.bf16.msra.mxu1 %v4036_v8 }
 0x165   : > { %3417 = vmatpush3.bf16.msra.mxu0 %v4294_v9  ;;  %1224 = vmatprep.mubr.bf16.mxu0 %v3982_v0  ;;  %v4029_v0 = vld [vmem:[#allocation2 + $0x1e4] ss:$8 sps:$4 sm:$0xff]  }
 0x166   : > { %3418 = vmatprep.subr.bf16.mxu0 %v4299_v10  ;;  %3724 = vmatprep.subr.bf16.mxu1 %v4040_v24 }
 0x168   : > { %3725 = vmatpush3.bf16.msra.mxu1 %v4040_v24 }
 0x169   : > { %3419 = vmatpush3.bf16.msra.mxu0 %v4304_v13  ;;  %3726 = vmatprep.subr.bf16.mxu1 %v4041_v29 }
 0x16a   : > { %3420 = vmatprep.subr.bf16.mxu0 %v4309_v14 }
 0x16c   : > { %1225 = vmatmul.mubr.bf16.gmra.mxu0 %v3984_v2  ;;  %3727 = vmatpush3.bf16.msra.mxu1 %v4041_v29  ;;  %v4039_v29 = vld [vmem:[#allocation2 + $0x204] ss:$8 sps:$4 sm:$0xff]  }
 0x16d   : > { %3421 = vmatpush3.bf16.msra.mxu0 %v4314_v15  ;;  %1456 = vmatprep.mubr.bf16.mxu0 %v3987_v3 }
 0x16e   : > { %3422 = vmatprep.subr.bf16.mxu0 %v4319_v16  ;;  %3728 = vmatprep.subr.bf16.mxu1 %v4045_v32 }
 0x170   : > { %3729 = vmatpush3.bf16.msra.mxu1 %v4045_v32 }
 0x171   : > { %3423 = vmatpush3.bf16.msra.mxu0 %v4322_v17  ;;  %3730 = vmatprep.subr.bf16.mxu1 %v4046_v37 }
 0x172   : > { %3460 = vmatprep.subr.bf16.mxu0 %v4439_v22 }
 0x174   : > { %1457 = vmatmul.mubr.bf16.vlgmr.msra.gmra.mxu0 %v3985_v6  ;;  %3731 = vmatpush3.bf16.msra.mxu1 %v4046_v37  ;;  %v4049_v37 = vld [vmem:[#allocation2 + $0x224] ss:$8 sps:$4 sm:$0xff]  }
 0x175   : > { %3461 = vmatpush3.bf16.msra.mxu0 %v4443_v23  ;;  %1464 = vmatprep.mubr.bf16.mxu0 %v3988_v7 }
 0x176   : > { %3462 = vmatprep.subr.bf16.mxu0 %v4450_v25  ;;  %3740 = vmatprep.subr.bf16.mxu1 %v4490_v39 }
 0x179   : > { %3463 = vmatpush3.bf16.msra.mxu0 %v4454_v27 }
 0x17a   : > { %3464 = vmatprep.subr.bf16.mxu0 %v4461_v30 }
 0x17c   : > { %1465 = vmatmul.mubr.bf16.gmra.mxu0 %v3990_v26 }
 0x17d   : > { %3465 = vmatpush3.bf16.msra.mxu0 %v4465_v31  ;;  %1472 = vmatprep.mubr.bf16.mxu0 %v3991_v28 }
 0x17e   : > { %3466 = vmatprep.subr.bf16.mxu0 %v4472_v33 }
 0x181   : > { %3467 = vmatpush3.bf16.msra.mxu0 %v4476_v35 }
 0x182   : > { %3468 = vmatprep.subr.bf16.mxu0 %v4483_v38 }
 0x184   : > { %1473 = vmatmul.mubr.bf16.gmra.mxu0 %v3993_v34 }
 0x185   : > { %3469 = vmatpush3.bf16.msra.mxu0 %v4294_v9  ;;  %1480 = vmatprep.mubr.bf16.mxu0 %v3994_v36  ;;  %v3997_v9 = vld [vmem:[#allocation2 + $0x140] ss:$8 sps:$4 sm:$0xff]   ;;  %v4042_v36 = vld [vmem:[#allocation2 + $0x210] ss:$8 sps:$4 sm:$0xff]  }
 0x186   : > { %3470 = vmatprep.subr.bf16.mxu0 %v4299_v10  ;;  %v4002_v10 = vld [vmem:[#allocation2 + $0x150] ss:$8 sps:$4 sm:$0xff]  }
 0x189   : > { %3471 = vmatpush3.bf16.msra.mxu0 %v4304_v13  ;;  %v4003_v13 = vld [vmem:[#allocation2 + $0x164] ss:$8 sps:$4 sm:$0xff]  }
 0x18a   : > { %3472 = vmatprep.subr.bf16.mxu0 %v4309_v14  ;;  %v4005_v14 = vld [vmem:[#allocation2 + $0x160] ss:$8 sps:$4 sm:$0xff]  }
 0x18c   : > { %1481 = vmatmul.mubr.bf16.gmra.mxu0 %v3996_v40 }
 0x18d   : > { %3473 = vmatpush3.bf16.msra.mxu0 %v4314_v15  ;;  %1712 = vmatprep.mubr.bf16.mxu0 %v3999_v41  ;;  %v4006_v15 = vld [vmem:[#allocation2 + $0x174] ss:$8 sps:$4 sm:$0xff]  }
 0x18e   : > { %3474 = vmatprep.subr.bf16.mxu0 %v4319_v16  ;;  %v4509_v16 = vld [vmem:[%s4248_s6 + $0x18] sm:$0xff]  }
 0x191   : > { %3475 = vmatpush3.bf16.msra.mxu0 %v4322_v17  ;;  %v4513_v17 = vld [vmem:[%s4248_s6 + $0x50] sm:$0xff]  }
 0x192   : > { %3512 = vmatprep.subr.bf16.mxu0 %v4439_v22 }
 0x194   : > { %1713 = vmatmul.mubr.bf16.vlgmr.msra.gmra.mxu0 %v3997_v9 }
 0x195   : > { %3513 = vmatpush3.bf16.msra.mxu0 %v4443_v23  ;;  %1720 = vmatprep.mubr.bf16.mxu0 %v4000_v42 }
 0x196   : > { %3514 = vmatprep.subr.bf16.mxu0 %v4450_v25 }
 0x199   : > { %3515 = vmatpush3.bf16.msra.mxu0 %v4454_v27 }
 0x19a   : > { %3516 = vmatprep.subr.bf16.mxu0 %v4461_v30 }
 0x19c   : > { %1721 = vmatmul.mubr.bf16.gmra.mxu0 %v4002_v10 }
 0x19d   : > { %3517 = vmatpush3.bf16.msra.mxu0 %v4465_v31  ;;  %1728 = vmatprep.mubr.bf16.mxu0 %v4003_v13 }
 0x19e   : > { %3518 = vmatprep.subr.bf16.mxu0 %v4472_v33 }
 0x1a1   : > { %3519 = vmatpush3.bf16.msra.mxu0 %v4476_v35 }
 0x1a2   : > { %3520 = vmatprep.subr.bf16.mxu0 %v4483_v38 }
 0x1a4   : > { %1729 = vmatmul.mubr.bf16.gmra.mxu0 %v4005_v14  ;;  %v4047_v14 = vld [vmem:[#allocation2 + $0x220] ss:$8 sps:$4 sm:$0xff]  }
 0x1a5   : > { %3521 = vmatpush3.bf16.msra.mxu0 %v4509_v16  ;;  %1736 = vmatprep.mubr.bf16.mxu0 %v4006_v15  ;;  %v4054_v15 = vld [vmem:[#allocation2 + $0x234] ss:$8 sps:$4 sm:$0xff]  }
 0x1a6   : > { %3522 = vmatprep.subr.bf16.mxu0 %v4513_v17 }
 0x1a9   : > { %3523 = vmatpush3.bf16.msra.mxu0 %v4517_v44 }
 0x1aa   : > { %3524 = vmatprep.subr.bf16.mxu0 %v4521_v46 }
 0x1ac   : > { %1737 = vmatmul.mubr.bf16.gmra.mxu0 %v4008_v43 }
 0x1ad   : > { %3525 = vmatpush3.bf16.msra.mxu0 %v4525_v47  ;;  %1968 = vmatprep.mubr.bf16.mxu0 %v4011_v45 }
 0x1ae   : > { %3526 = vmatprep.subr.bf16.mxu0 %v4529_v48 }
 0x1b1   : > { %3527 = vmatpush3.bf16.msra.mxu0 %v4533_v50 }
 0x1b2   : > { %3564 = vmatprep.subr.bf16.mxu0 %v4439_v22 }
 0x1b4   : > { %1969 = vmatmul.mubr.bf16.vlgmr.msra.gmra.mxu0 %v4009_v49  ;;  %v4052_v49 = vld [vmem:[#allocation2 + $0x230] ss:$8 sps:$4 sm:$0xff]  }
 0x1b5   : > { %3565 = vmatpush3.bf16.msra.mxu0 %v4443_v23  ;;  %1976 = vmatprep.mubr.bf16.mxu0 %v4012_v51 }
 0x1b6   : > { %3566 = vmatprep.subr.bf16.mxu0 %v4450_v25 }
 0x1b9   : > { %3567 = vmatpush3.bf16.msra.mxu0 %v4454_v27 }
 0x1ba   : > { %3568 = vmatprep.subr.bf16.mxu0 %v4461_v30 }
 0x1bc   : > { %1977 = vmatmul.mubr.bf16.gmra.mxu0 %v4014_v52 }
 0x1bd   : > { %3569 = vmatpush3.bf16.msra.mxu0 %v4465_v31  ;;  %1984 = vmatprep.mubr.bf16.mxu0 %v4015_v53 }
 0x1be   : > { %3570 = vmatprep.subr.bf16.mxu0 %v4472_v33 }
 0x1c1   : > { %3571 = vmatpush3.bf16.msra.mxu0 %v4476_v35 }
 0x1c2   : > { %3572 = vmatprep.subr.bf16.mxu0 %v4483_v38 }
 0x1c4   : > { %1985 = vmatmul.mubr.bf16.gmra.mxu0 %v4017_v54 }
 0x1c5   : > { %3573 = vmatpush3.bf16.msra.mxu0 %v4509_v16  ;;  %1992 = vmatprep.mubr.bf16.mxu0 %v4018_v55 }
 0x1c6   : > { %3574 = vmatprep.subr.bf16.mxu0 %v4513_v17 }
 0x1c9   : > { %3575 = vmatpush3.bf16.msra.mxu0 %v4517_v44 }
 0x1ca   : > { %3576 = vmatprep.subr.bf16.mxu0 %v4521_v46 }
 0x1cc   : > { %1993 = vmatmul.mubr.bf16.gmra.mxu0 %v4020_v56  ;;  %v4056_v56 = vld [vmem:[%s4803_s2 + $0xe0] sm:$0xff]  }
 0x1cd   : > { %3577 = vmatpush3.bf16.msra.mxu0 %v4525_v47  ;;  %2224 = vmatprep.mubr.bf16.mxu0 %v4023_v57 }
 0x1ce   : > { %3578 = vmatprep.subr.bf16.mxu0 %v4529_v48 }
 0x1d1   : > { %3579 = vmatpush3.bf16.msra.mxu0 %v4533_v50 }
 0x1d2   : > { %3616 = vmatprep.subr.bf16.mxu0 %v4439_v22 }
 0x1d4   : > { %2225 = vmatmul.mubr.bf16.vlgmr.msra.gmra.mxu0 %v4021_v58  ;;  %v3686_v60 = vpop.f32.mrf.mxu0  ;;  %v3710_v61 = vpop.f32.mrf.mxu1  ;;  %v4057_v58 = vld [vmem:[%s4803_s2 + $0xd8] sm:$0xff]  }
 0x1d5   : > { %v4553_v62 = vadd.f32 %v3710_v61, %v3686_v60  ;;  %3617 = vmatpush3.bf16.msra.mxu0 %v4443_v23  ;;  %2232 = vmatprep.mubr.bf16.mxu0 %v4024_v59 }
 0x1d6   : > { %v719_v63 = vpop.f32.mrf.mxu0  ;;  %v832_v11 = vpop.f32.mrf.mxu1  ;;  %3618 = vmatprep.subr.bf16.mxu0 %v4450_v25 }
 0x1d7   : > { %v4557_v12 = vadd.f32 %v832_v11, %v719_v63 }
 0x1d8   : > { %v3687_v18 = vpop.f32.mrf.mxu0  ;;  %v3711_v19 = vpop.f32.mrf.mxu1 }
 0x1d9   : > { %v4559_v21 = vadd.f32 %v3711_v19, %v3687_v18  ;;  %3619 = vmatpush3.bf16.msra.mxu0 %v4454_v27  ;;  %v4032_v27 = vld [vmem:[#allocation2 + $0x1f0] ss:$8 sps:$4 sm:$0xff]  }
 0x1da   : > { %v722_v1 = vpop.f32.mrf.mxu0  ;;  %v835_v2 = vpop.f32.mrf.mxu1  ;;  %3620 = vmatprep.subr.bf16.mxu0 %v4461_v30  ;;  %v4037_v30 = vld [vmem:[#allocation2 + $0x200] ss:$8 sps:$4 sm:$0xff]   ;;  %v4058_v18 = vld [vmem:[%s4803_s2 + $0xd0] sm:$0xff]  }
 0x1db   : > { %v4563_v3 = vadd.f32 %v835_v2, %v722_v1 }
 0x1dc   : > { %2233 = vmatmul.mubr.bf16.gmra.mxu0 %v4026_v20 }
 0x1dd   : > { %3621 = vmatpush3.bf16.msra.mxu0 %v4465_v31  ;;  %2240 = vmatprep.mubr.bf16.mxu0 %v4029_v0  ;;  %v4044_v31 = vld [vmem:[#allocation2 + $0x214] ss:$8 sps:$4 sm:$0xff]   ;;  %v4059_v0 = vld [vmem:[%s4803_s2 + $0xc8] sm:$0xff]  }
 0x1de   : > { %3622 = vmatprep.subr.bf16.mxu0 %v4472_v33 }
 0x1e1   : > { %3623 = vmatpush3.bf16.msra.mxu0 %v4476_v35 }
 0x1e2   : > { %3624 = vmatprep.subr.bf16.mxu0 %v4483_v38 }
 0x1e4   : > { %2241 = vmatmul.mubr.bf16.gmra.mxu0 %v4027_v4  ;;  %v3690_v6 = vpop.f32.mrf.mxu0  ;;  %v3714_v7 = vpop.f32.mrf.mxu1 }
 0x1e5   : > { %v4569_v8 = vadd.f32 %v3714_v7, %v3690_v6  ;;  %3625 = vmatpush3.bf16.msra.mxu0 %v4509_v16  ;;  %2248 = vmatprep.mubr.bf16.mxu0 %v4034_v5  ;;  %v4060_v7 = vld [vmem:[%s4803_s2 + $0xc0] sm:$0xff]  }
 0x1e6   : > { %v735_v22 = vpop.f32.mrf.mxu0  ;;  %v848_v23 = vpop.f32.mrf.mxu1  ;;  %3626 = vmatprep.subr.bf16.mxu0 %v4513_v17 }
 0x1e7   : > { %v4573_v24 = vadd.f32 %v848_v23, %v735_v22 }
 0x1e8   : > { %v3691_v25 = vpop.f32.mrf.mxu0  ;;  %v3715_v26 = vpop.f32.mrf.mxu1 }
 0x1e9   : > { %v4575_v28 = vadd.f32 %v3715_v26, %v3691_v25  ;;  %3627 = vmatpush3.bf16.msra.mxu0 %v4517_v44  ;;  %v4061_v25 = vld [vmem:[%s4803_s2 + $0x138] sm:$0xff]  }
 0x1ea   : > { %3628 = vmatprep.subr.bf16.mxu0 %v4521_v46  ;;  %v4582_v32 = vpop.f32.mrf.mxu0  ;;  %v4051_v46 = vld [vmem:[%s4803_s2 + $0xf0] sm:$0xff]  }
 0x1ec   : > { %2249 = vmatmul.mubr.bf16.gmra.mxu0 %v4032_v27 }
 0x1ed   : > { %3629 = vmatpush3.bf16.msra.mxu0 %v4525_v47  ;;  %2480 = vmatprep.mubr.bf16.mxu0 %v4039_v29 }
 0x1ee   : > { %3630 = vmatprep.subr.bf16.mxu0 %v4529_v48 }
 0x1f1   : > { %3631 = vmatpush3.bf16.msra.mxu0 %v4533_v50  ;;  %v4055_v50 = vld [vmem:[%s4803_s2 + $0xe8] sm:$0xff]  }
 0x1f4   : > { %v3320_v33 = vpop.f32.mrf.mxu0  ;;  %2481 = vmatmul.mubr.bf16.vlgmr.msra.gmra.mxu0 %v4037_v30 }
 0x1f5   : > { %2488 = vmatprep.mubr.bf16.mxu0 %v4044_v31 }
 0x1f6   : > { %v3321_v34 = vpop.f32.mrf.mxu0 }
 0x1f7   : > { %v3322_v40 = vadd.f32 %v3321_v34, %v3320_v33  ;;  %v4062_v33 = vld [vmem:[%s4803_s2 + $0x130] sm:$0xff]  }
 0x1f8   : > { %v3323_v35 = vpop.f32.mrf.mxu0 }
 0x1fa   : > { %v3324_v38 = vpop.f32.mrf.mxu0 }
 0x1fb   : > { %v3325_v41 = vadd.f32 %v3324_v38, %v3323_v35 }
 0x1fc   : > { %v3326_v9 = vpop.f32.mrf.mxu0  ;;  %2489 = vmatmul.mubr.bf16.gmra.mxu0 %v4042_v36  ;;  %v4063_v36 = vld [vmem:[%s4803_s2 + $0x128] sm:$0xff]  }
 0x1fd   : > { %v977_v42 = vpack.c.bf16 %v3325_v41, %v3322_v40  ;;  %2496 = vmatprep.mubr.bf16.mxu0 %v4049_v37 }
 0x1fe   : > { %v3327_v10 = vpop.f32.mrf.mxu0 }
 0x1ff   : > { %3732 = vmatprep.mubr.bf16.mxu1 %v977_v42  ;;  %v3328_v17 = vadd.f32 %v3327_v10, %v3326_v9  ;;  %v4064_v42 = vld [vmem:[%s4803_s2 + $0x120] sm:$0xff]  }
 0x200   : > { %v3329_v13 = vpop.f32.mrf.mxu0 }
 0x202   : > { %v3330_v16 = vpop.f32.mrf.mxu0 }
 0x203   : > { %v3331_v43 = vadd.f32 %v3330_v16, %v3329_v13 }
 0x204   : > { %v3332_v44 = vpop.f32.mrf.mxu0  ;;  %2497 = vmatmul.mubr.bf16.gmra.mxu0 %v4047_v14  ;;  %v4065_v14 = vld [vmem:[%s4803_s2 + $0x118] sm:$0xff]  }
 0x205   : > { %v978_v45 = vpack.c.bf16 %v3331_v43, %v3328_v17  ;;  %2504 = vmatprep.mubr.bf16.mxu0 %v4054_v15 }
 0x206   : > { %v3333_v47 = vpop.f32.mrf.mxu0 }
 0x207   : > { %3733 = vmatmul.mubr.bf16.vlgmr.msra.gmra.mxu1 %v978_v45  ;;  %v3334_v52 = vadd.f32 %v3333_v47, %v3332_v44  ;;  %v4066_v45 = vld [vmem:[%s4803_s2 + $0x110] sm:$0xff]  }
 0x208   : > { %v3335_v48 = vpop.f32.mrf.mxu0  ;;  %3741 = vmatpush3.bf16.msra.mxu1 %v4490_v39 }
 0x209   : > { %3742 = vmatprep.subr.bf16.mxu1 %v4051_v46 }
 0x20a   : > { %v3336_v51 = vpop.f32.mrf.mxu0 }
 0x20b   : > { %v3337_v53 = vadd.f32 %v3336_v51, %v3335_v48  ;;  %v4067_v48 = vld [vmem:[%s4803_s2 + $0x108] sm:$0xff]  }
 0x20c   : > { %v3338_v54 = vpop.f32.mrf.mxu0  ;;  %3743 = vmatpush3.bf16.msra.mxu1 %v4051_v46  ;;  %2505 = vmatmul.mubr.bf16.gmra.mxu0 %v4052_v49 }
 0x20d   : > { %v979_v55 = vpack.c.bf16 %v3337_v53, %v3334_v52  ;;  %3744 = vmatprep.subr.bf16.mxu1 %v4055_v50 }
 0x20e   : > { %v3339_v57 = vpop.f32.mrf.mxu0 }
 0x20f   : > { %3736 = vmatprep.mubr.bf16.mxu1 %v979_v55  ;;  %v3340_v60 = vadd.f32 %v3339_v57, %v3338_v54  ;;  %v4068_v54 = vld [vmem:[%s4803_s2 + $0x100] sm:$0xff]   ;;  %v4069_v57 = vld [vmem:[%s4803_s2 + $0x178] sm:$0xff]  }
 0x210   : > { %v3341_v39 = vpop.f32.mrf.mxu0  ;;  %3745 = vmatpush3.bf16.msra.mxu1 %v4055_v50 }
 0x211   : > { %3746 = vmatprep.subr.bf16.mxu1 %v4056_v56 }
 0x212   : > { %v3342_v59 = vpop.f32.mrf.mxu0 }
 0x213   : > { %v3343_v61 = vadd.f32 %v3342_v59, %v3341_v39 }
 0x214   : > { %v3372_v63 = vpop.f32.mrf.mxu0  ;;  %3747 = vmatpush3.bf16.msra.mxu1 %v4056_v56 }
 0x215   : > { %v980_v11 = vpack.c.bf16 %v3343_v61, %v3340_v60  ;;  %3748 = vmatprep.subr.bf16.mxu1 %v4057_v58 }
 0x216   : > { %v3373_v19 = vpop.f32.mrf.mxu0 }
 0x217   : > { %3737 = vmatmul.mubr.bf16.gmra.mxu1 %v980_v11  ;;  %v3374_v2 = vadd.f32 %v3373_v19, %v3372_v63  ;;  %v4070_v63 = vld [vmem:[%s4803_s2 + $0x170] sm:$0xff]   ;;  %v4071_v19 = vld [vmem:[%s4803_s2 + $0x168] sm:$0xff]  }
 0x218   : > { %v3375_v20 = vpop.f32.mrf.mxu0  ;;  %3749 = vmatpush3.bf16.msra.mxu1 %v4057_v58 }
 0x219   : > { %3750 = vmatprep.subr.bf16.mxu1 %v4058_v18 }
 0x21a   : > { %v3376_v1 = vpop.f32.mrf.mxu0 }
 0x21b   : > { %v3377_v4 = vadd.f32 %v3376_v1, %v3375_v20 }
 0x21c   : > { %v3378_v5 = vpop.f32.mrf.mxu0  ;;  %3751 = vmatpush3.bf16.msra.mxu1 %v4058_v18 }
 0x21d   : > { %v1233_v6 = vpack.c.bf16 %v3377_v4, %v3374_v2  ;;  %3752 = vmatprep.subr.bf16.mxu1 %v4059_v0 }
 0x21e   : > { %v3379_v22 = vpop.f32.mrf.mxu0 }
 0x21f   : > { %3756 = vmatprep.mubr.bf16.mxu1 %v1233_v6  ;;  %v3380_v27 = vadd.f32 %v3379_v22, %v3378_v5  ;;  %v4072_v5 = vld [vmem:[%s4803_s2 + $0x160] sm:$0xff]   ;;  %v4073_v22 = vld [vmem:[%s4803_s2 + $0x158] sm:$0xff]  }
 0x220   : > { %v3381_v23 = vpop.f32.mrf.mxu0  ;;  %3753 = vmatpush3.bf16.msra.mxu1 %v4059_v0 }
 0x221   : > { %3754 = vmatprep.subr.bf16.mxu1 %v4060_v7 }
 0x222   : > { %v3382_v26 = vpop.f32.mrf.mxu0 }
 0x223   : > { %v3383_v29 = vadd.f32 %v3382_v26, %v3381_v23 }
 0x224   : > { %v3384_v30 = vpop.f32.mrf.mxu0  ;;  %3755 = vmatpush3.bf16.msra.mxu1 %v4060_v7 }
 0x225   : > { %v1234_v31 = vpack.c.bf16 %v3383_v29, %v3380_v27  ;;  %3764 = vmatprep.subr.bf16.mxu1 %v4061_v25 }
 0x226   : > { %v3385_v34 = vpop.f32.mrf.mxu0 }
 0x227   : > { %3757 = vmatmul.mubr.bf16.vlgmr.msra.gmra.mxu1 %v1234_v31  ;;  %v3386_v38 = vadd.f32 %v3385_v34, %v3384_v30  ;;  %v4074_v30 = vld [vmem:[%s4803_s2 + $0x150] sm:$0xff]   ;;  %v4075_v34 = vld [vmem:[%s4803_s2 + $0x148] sm:$0xff]  }
 0x228   : > { %v3387_v35 = vpop.f32.mrf.mxu0  ;;  %3765 = vmatpush3.bf16.msra.mxu1 %v4061_v25 }
 0x229   : > { %3766 = vmatprep.subr.bf16.mxu1 %v4062_v33 }
 0x22a   : > { %v3388_v37 = vpop.f32.mrf.mxu0 }
 0x22b   : > { %v3389_v40 = vadd.f32 %v3388_v37, %v3387_v35 }
 0x22c   : > { %v3390_v41 = vpop.f32.mrf.mxu0  ;;  %3767 = vmatpush3.bf16.msra.mxu1 %v4062_v33 }
 0x22d   : > { %v1235_v9 = vpack.c.bf16 %v3389_v40, %v3386_v38  ;;  %3768 = vmatprep.subr.bf16.mxu1 %v4063_v36 }
 0x22e   : > { %v3391_v10 = vpop.f32.mrf.mxu0 }
 0x22f   : > { %3760 = vmatprep.mubr.bf16.mxu1 %v1235_v9  ;;  %v3392_v16 = vadd.f32 %v3391_v10, %v3390_v41  ;;  %v4076_v41 = vld [vmem:[%s4803_s2 + $0x140] sm:$0xff]   ;;  %v4077_v10 = vld [vmem:[%s4803_s2 + $0x1b8] sm:$0xff]  }
 0x230   : > { %v3393_v13 = vpop.f32.mrf.mxu0  ;;  %3769 = vmatpush3.bf16.msra.mxu1 %v4063_v36 }
 0x231   : > { %3770 = vmatprep.subr.bf16.mxu1 %v4064_v42 }
 0x232   : > { %v3394_v15 = vpop.f32.mrf.mxu0 }
 0x233   : > { %v3395_v17 = vadd.f32 %v3394_v15, %v3393_v13 }
 0x234   : > { %v3424_v43 = vpop.f32.mrf.mxu0  ;;  %3771 = vmatpush3.bf16.msra.mxu1 %v4064_v42 }
 0x235   : > { %v1236_v44 = vpack.c.bf16 %v3395_v17, %v3392_v16  ;;  %3772 = vmatprep.subr.bf16.mxu1 %v4065_v14 }
 0x236   : > { %v3425_v46 = vpop.f32.mrf.mxu0 }
 0x237   : > { %3761 = vmatmul.mubr.bf16.gmra.mxu1 %v1236_v44  ;;  %v3426_v50 = vadd.f32 %v3425_v46, %v3424_v43  ;;  %v4078_v43 = vld [vmem:[%s4803_s2 + $0x1b0] sm:$0xff]   ;;  %v4079_v46 = vld [vmem:[%s4803_s2 + $0x1a8] sm:$0xff]  }
 0x238   : > { %v3427_v47 = vpop.f32.mrf.mxu0  ;;  %3773 = vmatpush3.bf16.msra.mxu1 %v4065_v14 }
 0x239   : > { %3774 = vmatprep.subr.bf16.mxu1 %v4066_v45 }
 0x23a   : > { %v3428_v49 = vpop.f32.mrf.mxu0 }
 0x23b   : > { %v3429_v51 = vadd.f32 %v3428_v49, %v3427_v47 }
 0x23c   : > { %v3430_v52 = vpop.f32.mrf.mxu0  ;;  %3775 = vmatpush3.bf16.msra.mxu1 %v4066_v45 }
 0x23d   : > { %v1489_v53 = vpack.c.bf16 %v3429_v51, %v3426_v50  ;;  %3776 = vmatprep.subr.bf16.mxu1 %v4067_v48 }
 0x23e   : > { %v3431_v55 = vpop.f32.mrf.mxu0 }
 0x23f   : > { %3780 = vmatprep.mubr.bf16.mxu1 %v1489_v53  ;;  %v3432_v58 = vadd.f32 %v3431_v55, %v3430_v52  ;;  %v4080_v52 = vld [vmem:[%s4803_s2 + $0x1a0] sm:$0xff]   ;;  %v4081_v55 = vld [vmem:[%s4803_s2 + $0x198] sm:$0xff]  }
 0x240   : > { %v3433_v56 = vpop.f32.mrf.mxu0  ;;  %3777 = vmatpush3.bf16.msra.mxu1 %v4067_v48 }
 0x241   : > { %3778 = vmatprep.subr.bf16.mxu1 %v4068_v54 }
 0x242   : > { %v3434_v39 = vpop.f32.mrf.mxu0 }
 0x243   : > { %v3435_v59 = vadd.f32 %v3434_v39, %v3433_v56 }
 0x244   : > { %v3436_v60 = vpop.f32.mrf.mxu0  ;;  %3779 = vmatpush3.bf16.msra.mxu1 %v4068_v54 }
 0x245   : > { %v1490_v61 = vpack.c.bf16 %v3435_v59, %v3432_v58  ;;  %3788 = vmatprep.subr.bf16.mxu1 %v4069_v57 }
 0x246   : > { %v3437_v11 = vpop.f32.mrf.mxu0 }
 0x247   : > { %3781 = vmatmul.mubr.bf16.vlgmr.msra.gmra.mxu1 %v1490_v61  ;;  %v3438_v0 = vadd.f32 %v3437_v11, %v3436_v60  ;;  %v4082_v60 = vld [vmem:[%s4803_s2 + $0x190] sm:$0xff]   ;;  %v4083_v11 = vld [vmem:[%s4803_s2 + $0x188] sm:$0xff]  }
 0x248   : > { %v3439_v18 = vpop.f32.mrf.mxu0  ;;  %3789 = vmatpush3.bf16.msra.mxu1 %v4069_v57 }
 0x249   : > { %3790 = vmatprep.subr.bf16.mxu1 %v4070_v63 }
 0x24a   : > { %v3440_v20 = vpop.f32.mrf.mxu0 }
 0x24b   : > { %v3441_v1 = vadd.f32 %v3440_v20, %v3439_v18 }
 0x24c   : > { %v3442_v2 = vpop.f32.mrf.mxu0  ;;  %3791 = vmatpush3.bf16.msra.mxu1 %v4070_v63 }
 0x24d   : > { %v1491_v4 = vpack.c.bf16 %v3441_v1, %v3438_v0  ;;  %3792 = vmatprep.subr.bf16.mxu1 %v4071_v19 }
 0x24e   : > { %v3443_v6 = vpop.f32.mrf.mxu0 }
 0x24f   : > { %3784 = vmatprep.mubr.bf16.mxu1 %v1491_v4  ;;  %v3444_v25 = vadd.f32 %v3443_v6, %v3442_v2  ;;  %v4084_v2 = vld [vmem:[%s4803_s2 + $0x180] sm:$0xff]   ;;  %v4085_v6 = vld [vmem:[%s4803_s2 + $0x1f8] sm:$0xff]  }
 0x250   : > { %v3445_v7 = vpop.f32.mrf.mxu0  ;;  %3793 = vmatpush3.bf16.msra.mxu1 %v4071_v19 }
 0x251   : > { %3794 = vmatprep.subr.bf16.mxu1 %v4072_v5 }
 0x252   : > { %v3446_v23 = vpop.f32.mrf.mxu0 }
 0x253   : > { %v3447_v26 = vadd.f32 %v3446_v23, %v3445_v7 }
 0x254   : > { %v3476_v27 = vpop.f32.mrf.mxu0  ;;  %3795 = vmatpush3.bf16.msra.mxu1 %v4072_v5 }
 0x255   : > { %v1492_v29 = vpack.c.bf16 %v3447_v26, %v3444_v25  ;;  %3796 = vmatprep.subr.bf16.mxu1 %v4073_v22 }
 0x256   : > { %v3477_v31 = vpop.f32.mrf.mxu0 }
 0x257   : > { %3785 = vmatmul.mubr.bf16.gmra.mxu1 %v1492_v29  ;;  %v3478_v36 = vadd.f32 %v3477_v31, %v3476_v27  ;;  %v4086_v27 = vld [vmem:[%s4803_s2 + $0x1f0] sm:$0xff]   ;;  %v4087_v31 = vld [vmem:[%s4803_s2 + $0x1e8] sm:$0xff]  }
 0x258   : > { %v3479_v33 = vpop.f32.mrf.mxu0  ;;  %3797 = vmatpush3.bf16.msra.mxu1 %v4073_v22 }
 0x259   : > { %3798 = vmatprep.subr.bf16.mxu1 %v4074_v30 }
 0x25a   : > { %v3480_v35 = vpop.f32.mrf.mxu0 }
 0x25b   : > { %v3481_v37 = vadd.f32 %v3480_v35, %v3479_v33 }
 0x25c   : > { %v3482_v38 = vpop.f32.mrf.mxu0  ;;  %3799 = vmatpush3.bf16.msra.mxu1 %v4074_v30 }
 0x25d   : > { %v1745_v40 = vpack.c.bf16 %v3481_v37, %v3478_v36  ;;  %3800 = vmatprep.subr.bf16.mxu1 %v4075_v34 }
 0x25e   : > { %v3483_v9 = vpop.f32.mrf.mxu0 }
 0x25f   : > { %3804 = vmatprep.mubr.bf16.mxu1 %v1745_v40  ;;  %v3484_v14 = vadd.f32 %v3483_v9, %v3482_v38  ;;  %v4088_v38 = vld [vmem:[%s4803_s2 + $0x1e0] sm:$0xff]   ;;  %v4089_v9 = vld [vmem:[%s4803_s2 + $0x1d8] sm:$0xff]  }
 0x260   : > { %v3485_v42 = vpop.f32.mrf.mxu0  ;;  %3801 = vmatpush3.bf16.msra.mxu1 %v4075_v34 }
 0x261   : > { %3802 = vmatprep.subr.bf16.mxu1 %v4076_v41 }
 0x262   : > { %v3486_v13 = vpop.f32.mrf.mxu0 }
 0x263   : > { %v3487_v15 = vadd.f32 %v3486_v13, %v3485_v42 }
 0x264   : > { %v3488_v16 = vpop.f32.mrf.mxu0  ;;  %3803 = vmatpush3.bf16.msra.mxu1 %v4076_v41 }
 0x265   : > { %v1746_v17 = vpack.c.bf16 %v3487_v15, %v3484_v14  ;;  %3812 = vmatprep.subr.bf16.mxu1 %v4077_v10 }
 0x266   : > { %v3489_v44 = vpop.f32.mrf.mxu0 }
 0x267   : > { %3805 = vmatmul.mubr.bf16.vlgmr.msra.gmra.mxu1 %v1746_v17  ;;  %v3490_v48 = vadd.f32 %v3489_v44, %v3488_v16  ;;  %v4090_v16 = vld [vmem:[%s4803_s2 + $0x1d0] sm:$0xff]   ;;  %v4091_v44 = vld [vmem:[%s4803_s2 + $0x1c8] sm:$0xff]  }
 0x268   : > { %v3491_v45 = vpop.f32.mrf.mxu0  ;;  %3813 = vmatpush3.bf16.msra.mxu1 %v4077_v10 }
 0x269   : > { %3814 = vmatprep.subr.bf16.mxu1 %v4078_v43 }
 0x26a   : > { %v3492_v47 = vpop.f32.mrf.mxu0 }
 0x26b   : > { %v3493_v49 = vadd.f32 %v3492_v47, %v3491_v45 }
 0x26c   : > { %v3494_v50 = vpop.f32.mrf.mxu0  ;;  %3815 = vmatpush3.bf16.msra.mxu1 %v4078_v43 }
 0x26d   : > { %v1747_v51 = vpack.c.bf16 %v3493_v49, %v3490_v48  ;;  %3816 = vmatprep.subr.bf16.mxu1 %v4079_v46 }
 0x26e   : > { %v3495_v53 = vpop.f32.mrf.mxu0 }
 0x26f   : > { %3808 = vmatprep.mubr.bf16.mxu1 %v1747_v51  ;;  %v3496_v57 = vadd.f32 %v3495_v53, %v3494_v50  ;;  %v4092_v50 = vld [vmem:[%s4803_s2 + $0x1c0] sm:$0xff]   ;;  %v4093_v53 = vld [vmem:[%s4803_s2 + $0x238] sm:$0xff]  }
 0x270   : > { %v3497_v54 = vpop.f32.mrf.mxu0  ;;  %3817 = vmatpush3.bf16.msra.mxu1 %v4079_v46 }
 0x271   : > { %3818 = vmatprep.subr.bf16.mxu1 %v4080_v52 }
 0x272   : > { %v3498_v56 = vpop.f32.mrf.mxu0 }
 0x273   : > { %v3499_v39 = vadd.f32 %v3498_v56, %v3497_v54 }
 0x274   : > { %v3528_v58 = vpop.f32.mrf.mxu0  ;;  %3819 = vmatpush3.bf16.msra.mxu1 %v4080_v52 }
 0x275   : > { %v1748_v59 = vpack.c.bf16 %v3499_v39, %v3496_v57  ;;  %3820 = vmatprep.subr.bf16.mxu1 %v4081_v55 }
 0x276   : > { %v3529_v61 = vpop.f32.mrf.mxu0 }
 0x277   : > { %3809 = vmatmul.mubr.bf16.gmra.mxu1 %v1748_v59  ;;  %v3530_v19 = vadd.f32 %v3529_v61, %v3528_v58  ;;  %v4094_v58 = vld [vmem:[%s4803_s2 + $0x230] sm:$0xff]   ;;  %v4095_v61 = vld [vmem:[%s4803_s2 + $0x228] sm:$0xff]  }
 0x278   : > { %v3531_v63 = vpop.f32.mrf.mxu0  ;;  %3821 = vmatpush3.bf16.msra.mxu1 %v4081_v55 }
 0x279   : > { %3822 = vmatprep.subr.bf16.mxu1 %v4082_v60 }
 0x27a   : > { %v3532_v18 = vpop.f32.mrf.mxu0 }
 0x27b   : > { %v3533_v20 = vadd.f32 %v3532_v18, %v3531_v63 }
 0x27c   : > { %v3534_v0 = vpop.f32.mrf.mxu0  ;;  %3823 = vmatpush3.bf16.msra.mxu1 %v4082_v60 }
 0x27d   : > { %v2001_v1 = vpack.c.bf16 %v3533_v20, %v3530_v19  ;;  %3824 = vmatprep.subr.bf16.mxu1 %v4083_v11 }
 0x27e   : > { %v3535_v4 = vpop.f32.mrf.mxu0 }
 0x27f   : > { %3828 = vmatprep.mubr.bf16.mxu1 %v2001_v1  ;;  %v3536_v22 = vadd.f32 %v3535_v4, %v3534_v0  ;;  %v4096_v0 = vld [vmem:[%s4803_s2 + $0x220] sm:$0xff]   ;;  %v4097_v4 = vld [vmem:[%s4803_s2 + $0x218] sm:$0xff]  }
 0x280   : > { %v3537_v5 = vpop.f32.mrf.mxu0  ;;  %3825 = vmatpush3.bf16.msra.mxu1 %v4083_v11 }
 0x281   : > { %3826 = vmatprep.subr.bf16.mxu1 %v4084_v2 }
 0x282   : > { %v3538_v7 = vpop.f32.mrf.mxu0 }
 0x283   : > { %v3539_v23 = vadd.f32 %v3538_v7, %v3537_v5 }
 0x284   : > { %v3540_v25 = vpop.f32.mrf.mxu0  ;;  %3827 = vmatpush3.bf16.msra.mxu1 %v4084_v2 }
 0x285   : > { %v2002_v26 = vpack.c.bf16 %v3539_v23, %v3536_v22  ;;  %3836 = vmatprep.subr.bf16.mxu1 %v4085_v6 }
 0x286   : > { %v3541_v29 = vpop.f32.mrf.mxu0 }
 0x287   : > { %3829 = vmatmul.mubr.bf16.vlgmr.msra.gmra.mxu1 %v2002_v26  ;;  %v3542_v34 = vadd.f32 %v3541_v29, %v3540_v25  ;;  %v4098_v25 = vld [vmem:[%s4803_s2 + $0x210] sm:$0xff]   ;;  %v4099_v29 = vld [vmem:[%s4803_s2 + $0x208] sm:$0xff]  }
 0x288   : > { %v3543_v30 = vpop.f32.mrf.mxu0  ;;  %3837 = vmatpush3.bf16.msra.mxu1 %v4085_v6 }
 0x289   : > { %3838 = vmatprep.subr.bf16.mxu1 %v4086_v27 }
 0x28a   : > { %v3544_v33 = vpop.f32.mrf.mxu0 }
 0x28b   : > { %v3545_v35 = vadd.f32 %v3544_v33, %v3543_v30 }
 0x28c   : > { %v3546_v36 = vpop.f32.mrf.mxu0  ;;  %3839 = vmatpush3.bf16.msra.mxu1 %v4086_v27 }
 0x28d   : > { %v2003_v37 = vpack.c.bf16 %v3545_v35, %v3542_v34  ;;  %3840 = vmatprep.subr.bf16.mxu1 %v4087_v31 }
 0x28e   : > { %v3547_v40 = vpop.f32.mrf.mxu0 }
 0x28f   : > { %3832 = vmatprep.mubr.bf16.mxu1 %v2003_v37  ;;  %v3548_v10 = vadd.f32 %v3547_v40, %v3546_v36  ;;  %v4100_v36 = vld [vmem:[%s4803_s2 + $0x200] sm:$0xff]  }
 0x290   : > { %v3549_v41 = vpop.f32.mrf.mxu0  ;;  %3841 = vmatpush3.bf16.msra.mxu1 %v4087_v31 }
 0x291   : > { %3842 = vmatprep.subr.bf16.mxu1 %v4088_v38 }
 0x292   : > { %v3550_v42 = vpop.f32.mrf.mxu0 }
 0x293   : > { %v3551_v13 = vadd.f32 %v3550_v42, %v3549_v41 }
 0x294   : > { %v3580_v14 = vpop.f32.mrf.mxu0  ;;  %3843 = vmatpush3.bf16.msra.mxu1 %v4088_v38 }
 0x295   : > { %v2004_v15 = vpack.c.bf16 %v3551_v13, %v3548_v10  ;;  %3844 = vmatprep.subr.bf16.mxu1 %v4089_v9  ;;  %v851_v10 = vpop.f32.mrf.mxu1 }
 0x296   : > { %v3581_v17 = vpop.f32.mrf.mxu0 }
 0x297   : > { %3833 = vmatmul.mubr.bf16.gmra.mxu1 %v2004_v15  ;;  %v3582_v46 = vadd.f32 %v3581_v17, %v3580_v14 }
 0x298   : > { %v3583_v43 = vpop.f32.mrf.mxu0  ;;  %3845 = vmatpush3.bf16.msra.mxu1 %v4089_v9 }
 0x299   : > { %3846 = vmatprep.subr.bf16.mxu1 %v4090_v16 }
 0x29a   : > { %v3584_v45 = vpop.f32.mrf.mxu0 }
 0x29b   : > { %v3585_v47 = vadd.f32 %v3584_v45, %v3583_v43 }
 0x29c   : > { %v3586_v48 = vpop.f32.mrf.mxu0  ;;  %3847 = vmatpush3.bf16.msra.mxu1 %v4090_v16 }
 0x29d   : > { %v2257_v49 = vpack.c.bf16 %v3585_v47, %v3582_v46  ;;  %3848 = vmatprep.subr.bf16.mxu1 %v4091_v44 }
 0x29e   : > { %v3587_v51 = vpop.f32.mrf.mxu0 }
 0x29f   : > { %3852 = vmatprep.mubr.bf16.mxu1 %v2257_v49  ;;  %v3588_v55 = vadd.f32 %v3587_v51, %v3586_v48 }
 0x2a0   : > { %v3589_v52 = vpop.f32.mrf.mxu0  ;;  %3849 = vmatpush3.bf16.msra.mxu1 %v4091_v44 }
 0x2a1   : > { %3850 = vmatprep.subr.bf16.mxu1 %v4092_v50 }
 0x2a2   : > { %v3590_v54 = vpop.f32.mrf.mxu0 }
 0x2a3   : > { %v3591_v56 = vadd.f32 %v3590_v54, %v3589_v52 }
 0x2a4   : > { %v3592_v57 = vpop.f32.mrf.mxu0  ;;  %3851 = vmatpush3.bf16.msra.mxu1 %v4092_v50 }
 0x2a5   : > { %v2258_v39 = vpack.c.bf16 %v3591_v56, %v3588_v55  ;;  %3860 = vmatprep.subr.bf16.mxu1 %v4093_v53 }
 0x2a6   : > { %v3593_v59 = vpop.f32.mrf.mxu0 }
 0x2a7   : > { %3853 = vmatmul.mubr.bf16.vlgmr.msra.gmra.mxu1 %v2258_v39  ;;  %v3594_v11 = vadd.f32 %v3593_v59, %v3592_v57 }
 0x2a8   : > { %v3595_v60 = vpop.f32.mrf.mxu0  ;;  %3861 = vmatpush3.bf16.msra.mxu1 %v4093_v53 }
 0x2a9   : > { %3862 = vmatprep.subr.bf16.mxu1 %v4094_v58 }
 0x2aa   : > { %v3596_v63 = vpop.f32.mrf.mxu0 }
 0x2ab   : > { %v3597_v18 = vadd.f32 %v3596_v63, %v3595_v60 }
 0x2ac   : > { %v3598_v19 = vpop.f32.mrf.mxu0  ;;  %3863 = vmatpush3.bf16.msra.mxu1 %v4094_v58 }
 0x2ad   : > { %v2259_v20 = vpack.c.bf16 %v3597_v18, %v3594_v11  ;;  %3864 = vmatprep.subr.bf16.mxu1 %v4095_v61 }
 0x2ae   : > { %v3599_v1 = vpop.f32.mrf.mxu0 }
 0x2af   : > { %3856 = vmatprep.mubr.bf16.mxu1 %v2259_v20  ;;  %v3600_v6 = vadd.f32 %v3599_v1, %v3598_v19 }
 0x2b0   : > { %v3601_v2 = vpop.f32.mrf.mxu0  ;;  %3865 = vmatpush3.bf16.msra.mxu1 %v4095_v61  ;;  %v852_v61 = vadd.f32 %v851_v10, %v4582_v32 }
 0x2b1   : > { %3866 = vmatprep.subr.bf16.mxu1 %v4096_v0 }
 0x2b2   : > { %v3602_v5 = vpop.f32.mrf.mxu0 }
 0x2b3   : > { %v3603_v7 = vadd.f32 %v3602_v5, %v3601_v2 }
 0x2b4   : > { %v3632_v22 = vpop.f32.mrf.mxu0  ;;  %3867 = vmatpush3.bf16.msra.mxu1 %v4096_v0 }
 0x2b5   : > { %v2260_v23 = vpack.c.bf16 %v3603_v7, %v3600_v6  ;;  %3868 = vmatprep.subr.bf16.mxu1 %v4097_v4 }
 0x2b6   : > { %v3633_v26 = vpop.f32.mrf.mxu0 }
 0x2b7   : > { %3857 = vmatmul.mubr.bf16.gmra.mxu1 %v2260_v23  ;;  %v3634_v31 = vadd.f32 %v3633_v26, %v3632_v22 }
 0x2b8   : > { %v3635_v27 = vpop.f32.mrf.mxu0  ;;  %3869 = vmatpush3.bf16.msra.mxu1 %v4097_v4 }
 0x2b9   : > { %3870 = vmatprep.subr.bf16.mxu1 %v4098_v25 }
 0x2ba   : > { %v3636_v30 = vpop.f32.mrf.mxu0 }
 0x2bb   : > { %v3637_v33 = vadd.f32 %v3636_v30, %v3635_v27 }
 0x2bc   : > { %v3638_v34 = vpop.f32.mrf.mxu0  ;;  %3871 = vmatpush3.bf16.msra.mxu1 %v4098_v25 }
 0x2bd   : > { %v2513_v35 = vpack.c.bf16 %v3637_v33, %v3634_v31  ;;  %3872 = vmatprep.subr.bf16.mxu1 %v4099_v29 }
 0x2be   : > { %v3639_v37 = vpop.f32.mrf.mxu0 }
 0x2bf   : > { %3876 = vmatprep.mubr.bf16.mxu1 %v2513_v35  ;;  %v3640_v41 = vadd.f32 %v3639_v37, %v3638_v34 }
 0x2c0   : > { %v3641_v38 = vpop.f32.mrf.mxu0  ;;  %3873 = vmatpush3.bf16.msra.mxu1 %v4099_v29 }
 0x2c1   : > { %3874 = vmatprep.subr.bf16.mxu1 %v4100_v36 }
 0x2c2   : > { %v3642_v40 = vpop.f32.mrf.mxu0 }
 0x2c3   : > { %v3643_v9 = vadd.f32 %v3642_v40, %v3641_v38 }
 0x2c4   : > { %v3644_v42 = vpop.f32.mrf.mxu0  ;;  %3875 = vmatpush3.bf16.msra.mxu1 %v4100_v36 }
 0x2c5   : > { %v2514_v13 = vpack.c.bf16 %v3643_v9, %v3640_v41 }
 0x2c6   : > { %v3645_v14 = vpop.f32.mrf.mxu0 }
 0x2c7   : > { %v3734_v15 = vpop.f32.mrf.mxu1  ;;  %3877 = vmatmul.mubr.bf16.vlgmr.msra.gmra.mxu1 %v2514_v13  ;;  %v3646_v46 = vadd.f32 %v3645_v14, %v3644_v42 }
 0x2c8   : > { %v1113_v16 = vadd.f32 %v3734_v15, %v4553_v62  ;;  %v3647_v17 = vpop.f32.mrf.mxu0 }
 0x2c9   : > { %v1080_v43 = vpop.f32.mrf.mxu1 }
 0x2ca   : > { %v1111_v44 = vadd.f32 %v1080_v43, %v4557_v12  ;;  %v3648_v45 = vpop.f32.mrf.mxu0 }
 0x2cb   : > { %v3649_v47 = vadd.f32 %v3648_v45, %v3647_v17  ;;  %v3735_v48 = vpop.f32.mrf.mxu1 }
 0x2cc   : > { %v1114_v49 = vadd.f32 %v3735_v48, %v4559_v21  ;;  %v3650_v50 = vpop.f32.mrf.mxu0 }
 0x2cd   : > { %v2515_v51 = vpack.c.bf16 %v3649_v47, %v3646_v46  ;;  %v1083_v52 = vpop.f32.mrf.mxu1 }
 0x2ce   : > { %v1112_v53 = vadd.f32 %v1083_v52, %v4563_v3  ;;  %v3651_v54 = vpop.f32.mrf.mxu0 }
 0x2cf   : > { %3880 = vmatprep.mubr.bf16.mxu1 %v2515_v51  ;;  %v3652_v62 = vadd.f32 %v3651_v54, %v3650_v50 }
 0x2d0   : > { %v3653_v55 = vpop.f32.mrf.mxu0 }
 0x2d2   : > { %v3654_v56 = vpop.f32.mrf.mxu0 }
 0x2d3   : > { %v3655_v57 = vadd.f32 %v3654_v56, %v3653_v55 }
 0x2d5   : > { %v2516_v39 = vpack.c.bf16 %v3655_v57, %v3652_v62 }
 0x2d7   : > { %v3738_v58 = vpop.f32.mrf.mxu1  ;;  %3881 = vmatmul.mubr.bf16.gmra.mxu1 %v2516_v39 }
 0x2d8   : > { %v1117_v12 = vadd.f32 %v3738_v58, %v4569_v8 }
 0x2d9   : > { %v1096_v59 = vpop.f32.mrf.mxu1 }
 0x2da   : > { %v1115_v60 = vadd.f32 %v1096_v59, %v4573_v24 }
 0x2db   : > { %v3739_v21 = vpop.f32.mrf.mxu1 }
 0x2dc   : > { %v1118_v63 = vadd.f32 %v3739_v21, %v4575_v28 }
 0x2dd   : > { %v1099_v3 = vpop.f32.mrf.mxu1 }
 0x2de   : > { %v1116_v11 = vadd.f32 %v1099_v3, %v852_v61 }
 0x2e7   : > { %v3758_v18 = vpop.f32.mrf.mxu1 }
 0x2e8   : > { %v1369_v19 = vadd.f32 %v3758_v18, %v1113_v16 }
 0x2e9   : > { %v1336_v20 = vpop.f32.mrf.mxu1 }
 0x2ea   : > { %v1367_v0 = vadd.f32 %v1336_v20, %v1111_v44 }
 0x2eb   : > { %v3759_v1 = vpop.f32.mrf.mxu1 }
 0x2ec   : > { %v1370_v2 = vadd.f32 %v3759_v1, %v1114_v49 }
 0x2ed   : > { %v1339_v4 = vpop.f32.mrf.mxu1 }
 0x2ee   : > { %v1368_v5 = vadd.f32 %v1339_v4, %v1112_v53 }
 0x2f7   : > { %v3762_v6 = vpop.f32.mrf.mxu1 }
 0x2f8   : > { %v1373_v8 = vadd.f32 %v3762_v6, %v1117_v12 }
 0x2f9   : > { %v1352_v7 = vpop.f32.mrf.mxu1 }
 0x2fa   : > { %v1371_v22 = vadd.f32 %v1352_v7, %v1115_v60 }
 0x2fb   : > { %v3763_v24 = vpop.f32.mrf.mxu1 }
 0x2fc   : > { %v1374_v23 = vadd.f32 %v3763_v24, %v1118_v63 }
 0x2fd   : > { %v1355_v25 = vpop.f32.mrf.mxu1 }
 0x2fe   : > { %v1372_v32 = vadd.f32 %v1355_v25, %v1116_v11  ;;  %v4749_v11 = vld [vmem:[%s4804_s3] ss:$0 sm:$0xff] }
 0x307   : > { %v3782_v26 = vpop.f32.mrf.mxu1 }
 0x308   : > { %v1625_v55 = vadd.f32 %v3782_v26, %v1369_v19 }
 0x309   : > { %v1592_v28 = vpop.f32.mrf.mxu1 }
 0x30a   : > { %v1623_v62 = vadd.f32 %v1592_v28, %v1367_v0  ;;  %v4754_v0 = vld [vmem:[%s4805_s4] ss:$0 sm:$0xff] }
 0x30b   : > { %v3783_v27 = vpop.f32.mrf.mxu1 }
 0x30c   : > { %v1626_v39 = vadd.f32 %v3783_v27, %v1370_v2 }
 0x30d   : > { %v1595_v29 = vpop.f32.mrf.mxu1 }
 0x30e   : > { %v1624_v60 = vadd.f32 %v1595_v29, %v1368_v5 }
 0x317   : > { %v3786_v30 = vpop.f32.mrf.mxu1 }
 0x318   : > { %v4734_v31 = vadd.f32 %v3786_v30, %v1373_v8 }
 0x319   : > { %v1608_v33 = vpop.f32.mrf.mxu1 }
 0x31a   : > { %v4736_v34 = vadd.f32 %v1608_v33, %v1371_v22 }
 0x31b   : > { %v3787_v35 = vpop.f32.mrf.mxu1 }
 0x31c   : > { %v4738_v36 = vadd.f32 %v3787_v35, %v1374_v23 }
 0x31d   : > { %v1611_v37 = vpop.f32.mrf.mxu1 }
 0x31e   : > { %v4740_v38 = vadd.f32 %v1611_v37, %v1372_v32 }
 0x327   : > { %v3806_v40 = vpop.f32.mrf.mxu1 }
 0x328   : > { %v1881_v57 = vadd.f32 %v3806_v40, %v1625_v55 }
 0x329   : > { %v1848_v41 = vpop.f32.mrf.mxu1 }
 0x32a   : > { %v1879_v58 = vadd.f32 %v1848_v41, %v1623_v62 }
 0x32b   : > { %v3807_v9 = vpop.f32.mrf.mxu1 }
 0x32c   : > { %v1882_v21 = vadd.f32 %v3807_v9, %v1626_v39 }
 0x32d   : > { %v1851_v42 = vpop.f32.mrf.mxu1 }
 0x32e   : > { %v1880_v18 = vadd.f32 %v1851_v42, %v1624_v60 }
 0x337   : > { %v3810_v10 = vpop.f32.mrf.mxu1 }
 0x338   : > { %v1885_v37 = vadd.f32 %v3810_v10, %v4734_v31 }
 0x339   : > { %v1864_v13 = vpop.f32.mrf.mxu1 }
 0x33a   : > { %v1883_v9 = vadd.f32 %v1864_v13, %v4736_v34 }
 0x33b   : > { %v3811_v14 = vpop.f32.mrf.mxu1 }
 0x33d   : > { %v4742_v15 = vpop.f32.mrf.mxu1 }
 0x347   : > { %v3830_v16 = vpop.f32.mrf.mxu1 }
 0x348   : > { %v2137_v12 = vadd.f32 %v3830_v16, %v1881_v57 }
 0x349   : > { %v2104_v17 = vpop.f32.mrf.mxu1 }
 0x34a   : > { %v2135_v61 = vadd.f32 %v2104_v17, %v1879_v58  ;;  %v1886_v17 = vadd.f32 %v3811_v14, %v4738_v36 }
 0x34b   : > { %v3831_v43 = vpop.f32.mrf.mxu1 }
 0x34c   : > { %v2138_v20 = vadd.f32 %v3831_v43, %v1882_v21 }
 0x34d   : > { %v2107_v44 = vpop.f32.mrf.mxu1 }
 0x34e   : > { %v2136_v4 = vadd.f32 %v2107_v44, %v1880_v18 }
 0x357   : > { %v3834_v45 = vpop.f32.mrf.mxu1 }
 0x358   : > { %v2141_v42 = vadd.f32 %v3834_v45, %v1885_v37 }
 0x359   : > { %v2120_v46 = vpop.f32.mrf.mxu1 }
 0x35a   : > { %v2139_v43 = vadd.f32 %v2120_v46, %v1883_v9 }
 0x35b   : > { %v3835_v47 = vpop.f32.mrf.mxu1 }
 0x35d   : > { %v4744_v48 = vpop.f32.mrf.mxu1 }
 0x367   : > { %v3854_v49 = vpop.f32.mrf.mxu1 }
 0x368   : > { %v2393_v63 = vadd.f32 %v3854_v49, %v2137_v12 }
 0x369   : > { %v2360_v50 = vpop.f32.mrf.mxu1 }
 0x36a   : > { %v2391_v19 = vadd.f32 %v2360_v50, %v2135_v61  ;;  %v2142_v50 = vadd.f32 %v3835_v47, %v1886_v17 }
 0x36b   : > { %v3855_v51 = vpop.f32.mrf.mxu1 }
 0x36c   : > { %v2394_v5 = vadd.f32 %v3855_v51, %v2138_v20  ;;  %v1884_v51 = vadd.f32 %v4742_v15, %v4740_v38 }
 0x36d   : > { %v2363_v52 = vpop.f32.mrf.mxu1 }
 0x36e   : > { %v2392_v22 = vadd.f32 %v2363_v52, %v2136_v4  ;;  %v2140_v45 = vadd.f32 %v4744_v48, %v1884_v51 }
 0x377   : > { %v3858_v53 = vpop.f32.mrf.mxu1 }
 0x378   : > { %v2397_v44 = vadd.f32 %v3858_v53, %v2141_v42 }
 0x379   : > { %v2376_v54 = vpop.f32.mrf.mxu1 }
 0x37a   : > { %v2395_v31 = vadd.f32 %v2376_v54, %v2139_v43 }
 0x37b   : > { %v3859_v56 = vpop.f32.mrf.mxu1 }
 0x37c   : > { %v2398_v55 = vadd.f32 %v3859_v56, %v2142_v50 }
 0x37d   : > { %v2379_v59 = vpop.f32.mrf.mxu1 }
 0x37e   : > { %v2396_v47 = vadd.f32 %v2379_v59, %v2140_v45 }
 0x387   : > { %v3878_v3 = vpop.f32.mrf.mxu1 }
 0x388   : > { %v2649_v1 = vadd.f32 %v3878_v3, %v2393_v63 }
 0x389   : > { %v2616_v2 = vpop.f32.mrf.mxu1 }
 0x38a   : > { %v2664_v6 = vmul.f32 %v4749_v11, %v2649_v1  ;;  %v2647_v8 = vadd.f32 %v2616_v2, %v2391_v19 }
 0x38b   : > { %v3879_v7 = vpop.f32.mrf.mxu1 }
 0x38c   : > { %v4758_v24 = vadd.f32 %v4754_v0, %v2664_v6  ;;  %v2662_v23 = vmul.f32 %v4749_v11, %v2647_v8  ;;  %v2650_v25 = vadd.f32 %v3879_v7, %v2394_v5 }
 0x38d   : > { %v2619_v32 = vpop.f32.mrf.mxu1 }
 0x38e   : > { %v3151_v26 = vmul.f32 -1.442695, %v4758_v24  ;;  %v4763_v28 = vadd.f32 %v4754_v0, %v2662_v23  ;;  %v2665_v27 = vmul.f32 %v4749_v11, %v2650_v25  ;;  %v2648_v29 = vadd.f32 %v2619_v32, %v2392_v22 }
 0x390   : > { %4101 = vpow2.f32 %v3151_v26  ;;  %v3149_v30 = vmul.f32 -1.442695, %v4763_v28  ;;  %v4768_v33 = vadd.f32 %v4754_v0, %v2665_v27  ;;  %v2663_v35 = vmul.f32 %v4749_v11, %v2648_v29 }
 0x392   : > { %4103 = vpow2.f32 %v3149_v30  ;;  %v3152_v40 = vmul.f32 -1.442695, %v4768_v33  ;;  %v4774_v41 = vadd.f32 %v4754_v0, %v2663_v35 }
 0x394   : > { %4105 = vpow2.f32 %v3152_v40  ;;  %v3150_v16 = vmul.f32 -1.442695, %v4774_v41 }
 0x396   : > { %4107 = vpow2.f32 %v3150_v16 }
 0x397   : > { %v3882_v49 = vpop.f32.mrf.mxu1 }
 0x398   : > { %v2653_v10 = vadd.f32 %v3882_v49, %v2397_v44 }
 0x399   : > { %v2632_v52 = vpop.f32.mrf.mxu1 }
 0x39a   : > { %v2668_v34 = vmul.f32 %v4749_v11, %v2653_v10  ;;  %v2651_v13 = vadd.f32 %v2632_v52, %v2395_v31 }
 0x39b   : > { %v3883_v62 = vpop.f32.mrf.mxu1 }
 0x39c   : > { %v2683_v36 = vadd.f32 %v4754_v0, %v2668_v34  ;;  %v2666_v14 = vmul.f32 %v4749_v11, %v2651_v13  ;;  %v2654_v46 = vadd.f32 %v3883_v62, %v2398_v55 }
 0x39d   : > { %v4102_v53 = vpop.eup %4101  ;;  %v2635_v54 = vpop.f32.mrf.mxu1 }
 0x39e   : > { %v2711_v57 = vadd.f32 1.0, %v4102_v53  ;;  %v3155_v39 = vmul.f32 -1.442695, %v2683_v36  ;;  %v2681_v38 = vadd.f32 %v4754_v0, %v2666_v14  ;;  %v2669_v15 = vmul.f32 %v4749_v11, %v2654_v46 }
 0x39f   : > { %v4104_v56 = vpop.eup %4103  ;;  %v2652_v58 = vadd.f32 %v2635_v54, %v2396_v47 }
 0x3a0   : > { %4109 = vrcp.f32 %v2711_v57  ;;  %v2709_v12 = vadd.f32 1.0, %v4104_v56  ;;  %v3153_v48 = vmul.f32 -1.442695, %v2681_v38  ;;  %v2684_v60 = vadd.f32 %v4754_v0, %v2669_v15 }
 0x3a1   : > { %v4106_v21 = vpop.eup %4105  ;;  %4111 = vpow2.f32 %v3155_v39  ;;  %v2667_v61 = vmul.f32 %v4749_v11, %v2652_v58 }
 0x3a2   : > { %4113 = vrcp.f32 %v2709_v12  ;;  %v2712_v59 = vadd.f32 1.0, %v4106_v21  ;;  %v3156_v63 = vmul.f32 -1.442695, %v2684_v60 }
 0x3a3   : > { %v4108_v3 = vpop.eup %4107  ;;  %4115 = vpow2.f32 %v3153_v48  ;;  %v2682_v18 = vadd.f32 %v4754_v0, %v2667_v61 }
 0x3a4   : > { %4117 = vrcp.f32 %v2712_v59  ;;  %v2710_v20 = vadd.f32 1.0, %v4108_v3 }
 0x3a5   : > { %4119 = vpow2.f32 %v3156_v63  ;;  %v3154_v19 = vmul.f32 -1.442695, %v2682_v18 }
 0x3a6   : > { %4121 = vrcp.f32 %v2710_v20 }
 0x3a7   : > { %4123 = vpow2.f32 %v3154_v19 }
 0x3ad   : > { %v4110_v1 = vpop.eup %4109 }
 0x3ae   : > { %v4112_v2 = vpop.eup %4111  ;;  %v2735_v22 = vmul.f32 %v4110_v1, %v4758_v24 }
 0x3af   : > { %v4114_v4 = vpop.eup %4113  ;;  %v2715_v5 = vadd.f32 1.0, %v4112_v2 }
 0x3b0   : > { %v4116_v6 = vpop.eup %4115  ;;  %v2733_v26 = vmul.f32 %v4114_v4, %v4763_v28 }
 0x3b1   : > { %v4118_v11 = vpop.eup %4117  ;;  %v2713_v8 = vadd.f32 1.0, %v4116_v6  ;;  %4125 = vrcp.f32 %v2715_v5 }
 0x3b2   : > { %v4120_v7 = vpop.eup %4119  ;;  %v2736_v23 = vmul.f32 %v4118_v11, %v4768_v33 }
 0x3b3   : > { %v4122_v0 = vpop.eup %4121  ;;  %v2716_v25 = vadd.f32 1.0, %v4120_v7  ;;  %4127 = vrcp.f32 %v2713_v8 }
 0x3b4   : > { %v4124_v32 = vpop.eup %4123  ;;  %v3185_v27 = vpack.c.bf16 %v2736_v23, %v2735_v22  ;;  %v2734_v29 = vmul.f32 %v4122_v0, %v4774_v41 }
 0x3b5   : > { %4129 = vrcp.f32 %v2716_v25  ;;  %v2714_v30 = vadd.f32 1.0, %v4124_v32 }
 0x3b6   : > { %3197 = vst [vmem:[%s239_s23 + $0x8] sm:$0xff] %v3185_v27   ;;  %v3180_v24 = vpack.c.bf16 %v2734_v29, %v2733_v26 }
 0x3b7   : > { %4131 = vrcp.f32 %v2714_v30 }
 0x3b8   : > { %3181 = vst [vmem:[%s239_s23] sm:$0xff] %v3180_v24  }
 0x3be   : > { %v4126_v33 = vpop.eup %4125 }
 0x3bf   : > { %v2739_v40 = vmul.f32 %v4126_v33, %v2683_v36 }
 0x3c0   : > { %v4128_v35 = vpop.eup %4127 }
 0x3c1   : > { %v2737_v16 = vmul.f32 %v4128_v35, %v2681_v38 }
 0x3c2   : > { %v4130_v37 = vpop.eup %4129 }
 0x3c3   : > { %v2740_v9 = vmul.f32 %v4130_v37, %v2684_v60 }
 0x3c4   : > { %v4132_v42 = vpop.eup %4131 }
 0x3c5   : > { %v3195_v17 = vpack.c.bf16 %v2740_v9, %v2739_v40  ;;  %v2738_v43 = vmul.f32 %v4132_v42, %v2682_v18 }
 0x3c7   : > { %3199 = vst [vmem:[%s239_s23 + $0x18] sm:$0xff] %v3195_v17   ;;  %v3190_v28 = vpack.c.bf16 %v2738_v43, %v2737_v16 }
 0x3c9   : > { %3198 = vst [vmem:[%s239_s23 + $0x10] sm:$0xff] %v3190_v28  }
 0x3ca PF: > { %s16_s18 = sadd.s32 1, %s4185_s18  }
 0x3cb   : > { %p13_p1 = scmp.ge.s32.totalorder %s16_s18, 4  }
 0x3cd   :  { %15 = sbr.rel (!%p13_p1) target bundleno = 1 (0x1), region = 91 }
 0x3d2   :  { %2802 = vsyncpa [#allocation3], 1 }
 0x3d3   :  { %2804 = vsyncpa [#allocation3 + $0x1], 1 }

</bundles_post_ra>
